<compile_context>
chip_gen: v7x
topology: tpu7x:2x2x1
jax: 0.10.0
libtpu: 0.0.40
codegen_flags: <defaults>
</compile_context>

<pallas_src>
import functools
import math

import jax
import jax.numpy as jnp
from jax.experimental import pallas as pl
from jax.experimental.pallas import tpu as pltpu


_MAX_TIME_BLOCK = 32     # max LSTM steps per grid invocation
_LANE = 128
_SUBLANE = 8


def _round_up(n, m):
    return ((n + m - 1) // m) * m


def _choose_time_block(seq_len):
    """Pick K so that (a) K divides T when possible (no per-step masking on the
    serial path) and (b) K*Bp fills the MXU reasonably (K up to 32)."""
    if seq_len <= _MAX_TIME_BLOCK:
        return max(seq_len, 1)
    for k in range(_MAX_TIME_BLOCK, 7, -1):
        if seq_len % k == 0:
            return k
    return _MAX_TIME_BLOCK          # ragged tail -> masked in-kernel


def _pad_gate_cols(w, h, h_pad):
    """Pad the 4H gate axis per-gate (i,f,g,o each H -> h_pad). w: (rows, 4H)."""
    rows = w.shape[0]
    w4 = jnp.pad(w.reshape(rows, 4, h), ((0, 0), (0, 0), (0, h_pad - h)))
    return w4.reshape(rows, 4 * h_pad)


# --------------------- fused stacked-LSTM + head kernel ----------------------
def _make_fused_lstm_kernel(num_layers, seq_len, time_block):
    """Kernel processing `time_block` steps of ALL layers per grid invocation.

    Grid axis 0 = time blocks (sequential, "arbitrary").
    Refs (in order):
      x_ref          : (K, Bp, Din0)   input time block (time-major, padded batch)
      h0_ref, c0_ref : (L, Bp, Hp)     initial states (zero when hidden_states=None)
      per layer l    : wih (Din_l,4Hp), whh (Hp,4Hp), b (1,4Hp)   [constant, Buffered(1)]
      wout (Hp, Op), bout (1, Op)                                 [constant, Buffered(1)]
      hN_ref, cN_ref : (L, Bp, Hp)     final states (written on last block only)
      logits_ref     : (Bp, Op)        fused ordinal head (last block only)
      h_sc, c_sc     : (L, Bp, Hp)     VMEM recurrent-state carry across blocks
      y_sc           : (K, Bp, Hp)     VMEM inter-layer activation block (never hits HBM)
    Gate order follows PyTorch: i, f, g, o.
    Invariant: for ragged T (mask path) the held / stale y for padded time steps
    is fed to the next layer but that layer also masks its state updates, so the
    final h/c and logits are exact.
    """
    K = time_block
    L = num_layers

    def kernel(*refs):
        n_w = 3 * L
        x_ref, h0_ref, c0_ref = refs[0], refs[1], refs[2]
        w_refs = refs[3:3 + n_w]
        wout_ref, bout_ref = refs[3 + n_w], refs[4 + n_w]
        hN_ref, cN_ref, logits_ref = refs[5 + n_w], refs[6 + n_w], refs[7 + n_w]
        h_sc, c_sc, y_sc = refs[8 + n_w], refs[9 + n_w], refs[10 + n_w]

        _, Bp, Hp = h_sc.shape
        blk = pl.program_id(0)

        @pl.when(blk == 0)
        def _():
            h_sc[...] = h0_ref[...]
            c_sc[...] = c0_ref[...]

        needs_mask = (seq_len % K) != 0          # only if T was padded in time
        base_t = blk * K

        cur_in = x_ref[...]                      # (K, Bp, Din0)
        for li in range(L):
            wih_ref = w_refs[3 * li + 0]
            whh_ref = w_refs[3 * li + 1]
            b_ref = w_refs[3 * li + 2]
            wd = wih_ref.dtype                   # f32 (exact) or bf16 (v6e/v7x)

            # ---- hoisted input projection: one (K*Bp, Din) x (Din, 4Hp) GEMM ----
            Din = cur_in.shape[-1]
            x_flat = cur_in.reshape(K * Bp, Din).astype(wd)
            xg = (jnp.dot(x_flat, wih_ref[...],
                          preferred_element_type=jnp.float32)
                  + b_ref[...]).reshape(K, Bp, 4 * Hp)

            w_hh = whh_ref[...]
            h = h_sc[li]
            c = c_sc[li]

            # Fully unrolled serial recurrence: only h·W_hh + elementwise per step.
            for k in range(K):
                gates = xg[k] + jnp.dot(h.astype(wd), w_hh,
                                        preferred_element_type=jnp.float32)
                # Hp multiple of 128 -> each gate slice is a lane-aligned view.
                i_g = jax.nn.sigmoid(gates[:, 0 * Hp:1 * Hp])
                f_g = jax.nn.sigmoid(gates[:, 1 * Hp:2 * Hp])
                g_g = jnp.tanh(gates[:, 2 * Hp:3 * Hp])
                o_g = jax.nn.sigmoid(gates[:, 3 * Hp:4 * Hp])
                c_new = f_g * c + i_g * g_g
                h_new = o_g * jnp.tanh(c_new)
                if needs_mask:
                    valid = base_t + k < seq_len
                    h = jnp.where(valid, h_new, h)
                    c = jnp.where(valid, c_new, c)
                else:
                    h, c = h_new, c_new
                if li < L - 1:                   # last layer's y is never consumed
                    y_sc[k] = h

            h_sc[li] = h
            c_sc[li] = c
            if li < L - 1:
                cur_in = y_sc[...]               # stays in VMEM; no HBM round trip

        @pl.when(blk == pl.num_programs(0) - 1)
        def _():
            hN_ref[...] = h_sc[...]
            cN_ref[...] = c_sc[...]
            # Fused ordinal Linear head on the last layer's final hidden state.
            logits_ref[...] = (jnp.dot(h_sc[L - 1], wout_ref[...],
                                       preferred_element_type=jnp.float32)
                               + bout_ref[...])

    return kernel


def lstm_stack_pallas(x_tbd, h0, c0, layer_params, w_out_t, b_out,
                      *, seq_len, time_block):
    """Run the full stacked LSTM + head over the (time-padded) sequence.

    x_tbd : (T_pad, Bp, Din0) time-major, batch-padded input
    h0/c0 : (L, Bp, Hp) initial states
    layer_params : list of (w_ih (Din_l,4Hp), w_hh (Hp,4Hp), bias (1,4Hp))
    w_out_t (Hp, Op), b_out (1, Op)
    Returns (hN (L,Bp,Hp), cN (L,Bp,Hp), logits (Bp,Op)).
    """
    T_pad, Bp, Din0 = x_tbd.shape
    L = len(layer_params)
    Hp = layer_params[0][1].shape[0]
    Op = w_out_t.shape[1]
    K = time_block
    n_blk = T_pad // K

    def const_spec(shape):
        # Constant index map -> single-buffer (Buffered(1)): fetched once,
        # double buffering would only waste VMEM.
        return pl.BlockSpec(shape, lambda b: (0,) * len(shape),
                            pipeline_mode=pl.Buffered(1))

    in_specs = [
        pl.BlockSpec((K, Bp, Din0), lambda b: (b, 0, 0)),
        const_spec((L, Bp, Hp)),     # h0
        const_spec((L, Bp, Hp)),     # c0
    ]
    args = [x_tbd, h0, c0]
    for (w_ih_p, w_hh_p, b_p) in layer_params:
        in_specs += [const_spec(w_ih_p.shape),
                     const_spec(w_hh_p.shape),
                     const_spec(b_p.shape)]
        args += [w_ih_p, w_hh_p, b_p]
    in_specs += [const_spec(w_out_t.shape), const_spec(b_out.shape)]
    args += [w_out_t, b_out]

    out_shape = [
        jax.ShapeDtypeStruct((L, Bp, Hp), jnp.float32),
        jax.ShapeDtypeStruct((L, Bp, Hp), jnp.float32),
        jax.ShapeDtypeStruct((Bp, Op), jnp.float32),
    ]
    out_specs = [
        pl.BlockSpec((L, Bp, Hp), lambda b: (0, 0, 0)),
        pl.BlockSpec((L, Bp, Hp), lambda b: (0, 0, 0)),
        pl.BlockSpec((Bp, Op), lambda b: (0, 0)),
    ]

    # ---- explicit VMEM budget (weights single-buffered, x block double) ----
    f32 = 4
    w_bytes = sum(int(a.size) * a.dtype.itemsize for a in args[3:])
    x_blk = K * Bp * Din0 * f32 * 2                  # double-buffered input block
    state_in = 2 * L * Bp * Hp * f32                 # h0/c0, single-buffered
    outs = (2 * L * Bp * Hp + Bp * Op) * f32 * 2
    scratch = (2 * L * Bp * Hp + K * Bp * Hp) * f32
    gates_tmp = K * Bp * 4 * Hp * f32 * 2            # xg intermediate slack
    needed = w_bytes + x_blk + state_in + outs + scratch + gates_tmp
    vmem_limit = min(128 << 20, max(int(needed * 1.5) + (4 << 20), 8 << 20))

    kernel = _make_fused_lstm_kernel(L, seq_len, K)

    return pl.pallas_call(
        kernel,
        out_shape=tuple(out_shape),
        grid_spec=pltpu.PrefetchScalarGridSpec(
            num_scalar_prefetch=0,
            grid=(n_blk,),
            in_specs=in_specs,
            out_specs=out_specs,
            scratch_shapes=[
                pltpu.VMEM((L, Bp, Hp), jnp.float32),    # h carry
                pltpu.VMEM((L, Bp, Hp), jnp.float32),    # c carry
                pltpu.VMEM((K, Bp, Hp), jnp.float32),    # inter-layer y block
            ],
        ),
        compiler_params=pltpu.CompilerParams(
            dimension_semantics=("arbitrary",),          # serial recurrence over time
            vmem_limit_bytes=vmem_limit),
    )(*args)


# ----------------------------- full model ------------------------------------
class PallasRNN:
    """Pallas equivalent of PyTorchRNN (LSTM stack + ordinal output layer)."""

    def __init__(self, input_dim, hidden_dim, num_layers, dropout, num_classes,
                 key=jax.random.PRNGKey(0), weights_dtype=jnp.float32):
        self.input_dim = input_dim
        self.hidden_dim = hidden_dim
        self.num_layers = num_layers
        self.dropout = dropout
        self.num_classes = num_classes
        self.weights_dtype = weights_dtype

        H = hidden_dim
        Hp = _round_up(H, _LANE)
        out_features = num_classes - 1 if num_classes > 1 else num_classes
        Op = _round_up(out_features, _LANE)
        self.H, self.Hp = H, Hp
        self.out_features, self.Op = out_features, Op

        stdv = 1.0 / math.sqrt(hidden_dim)
        keys = jax.random.split(key, num_layers * 4 + 2)

        self.raw_params = []   # unpadded f32, for the pure-JAX reference
        self.pad_params = []   # padded, for the Pallas kernel
        for layer in range(num_layers):
            d_in = input_dim if layer == 0 else hidden_dim
            k0, k1, k2, k3 = keys[4 * layer: 4 * layer + 4]
            # PyTorch stores (4H, D)/(4H, H); we pre-transpose for x @ W.
            w_ih = jax.random.uniform(k0, (4 * H, d_in), jnp.float32, -stdv, stdv)
            w_hh = jax.random.uniform(k1, (4 * H, H), jnp.float32, -stdv, stdv)
            b_ih = jax.random.uniform(k2, (4 * H,), jnp.float32, -stdv, stdv)
            b_hh = jax.random.uniform(k3, (4 * H,), jnp.float32, -stdv, stdv)

            w_ih_t = w_ih.T                       # (d_in, 4H)
            w_hh_t = w_hh.T                       # (H, 4H)
            b = (b_ih + b_hh)[None, :]            # (1, 4H)
            self.raw_params.append((w_ih_t, w_hh_t, b))

            # Gate-wise padding H -> Hp (zeros), plus input-row padding for
            # layers >= 1 (their input is the padded hidden of the layer below).
            w_ih_p = _pad_gate_cols(w_ih_t, H, Hp)
            if layer > 0:
                w_ih_p = jnp.pad(w_ih_p, ((0, Hp - H), (0, 0)))
            w_hh_p = jnp.pad(_pad_gate_cols(w_hh_t, H, Hp), ((0, Hp - H), (0, 0)))
            b_p = _pad_gate_cols(b, H, Hp)        # bias kept f32
            self.pad_params.append((w_ih_p.astype(weights_dtype),
                                    w_hh_p.astype(weights_dtype),
                                    b_p))

        kw, kb = keys[-2], keys[-1]
        w_out = jax.random.uniform(kw, (out_features, H), jnp.float32, -stdv, stdv)
        b_out = jax.random.uniform(kb, (out_features,), jnp.float32, -stdv, stdv)
        self.w_out_t = w_out.T                     # (H, O)   raw, for reference
        self.b_out = b_out[None, :]                # (1, O)
        self.w_out_t_pad = jnp.pad(self.w_out_t,
                                   ((0, Hp - H), (0, Op - out_features)))
        self.b_out_pad = jnp.pad(self.b_out, ((0, 0), (0, Op - out_features)))

    def forward(self, x_btd, hidden_states=None):
        """x_btd: (B, T, input_dim) batch-first. hidden_states: optional (h0, c0)
        each (num_layers, B, hidden_dim), like PyTorch."""
        B = x_btd.shape[0]
        if hidden_states is None:
            h0 = jnp.zeros((self.num_layers, B, self.hidden_dim), jnp.float32)
            c0 = jnp.zeros_like(h0)
        else:
            h0, c0 = hidden_states
        return self._forward(x_btd, h0, c0)

    @functools.partial(jax.jit, static_argnums=0)
    def _forward(self, x_btd, h0, c0):
        B, T, _ = x_btd.shape
        Bp = _round_up(B, _SUBLANE)
        K = _choose_time_block(T)
        T_pad = pl.cdiv(T, K) * K

        # time-major + pad batch/time once; padded batch rows compute garbage
        # inside the kernel and are sliced away below.
        x = jnp.transpose(x_btd, (1, 0, 2)).astype(jnp.float32)     # (T, B, D)
        x = jnp.pad(x, ((0, T_pad - T), (0, Bp - B), (0, 0)))
        h0p = jnp.pad(h0.astype(jnp.float32),
                      ((0, 0), (0, Bp - B), (0, self.Hp - self.H)))
        c0p = jnp.pad(c0.astype(jnp.float32),
                      ((0, 0), (0, Bp - B), (0, self.Hp - self.H)))

        hN, cN, logits_pad = lstm_stack_pallas(
            x, h0p, c0p, self.pad_params, self.w_out_t_pad, self.b_out_pad,
            seq_len=T, time_block=K)
        # TODO(synk): train-mode inter-layer dropout would be applied between
        # layers inside the fused kernel (inference path only here).

        hidden_layer = hN[:, :B, :self.H]            # (num_layers, B, H)
        hidden_cell = cN[:, :B, :self.H]
        linear_out = logits_pad[:B, :self.out_features]
        if self.num_classes in (1, 2):
            # NOTE: matches torch `.squeeze()` exactly (also squeezes batch
            # when B == 1).
            logits = jnp.squeeze(linear_out)
        else:
            logits = jnp.reshape(linear_out, (-1, self.num_classes - 1))
        return logits, (hidden_layer, hidden_cell)


# ----------------------------- reference (pure JAX) ---------------------------
def _ref_forward(model, x_btd):
    """Pure-JAX LSTM reference (unpadded f32 weights) for a correctness check."""
    B, T, _ = x_btd.shape
    H = model.hidden_dim
    layer_in = x_btd.astype(jnp.float32)
    h_fin, c_fin = [], []
    for (w_ih_t, w_hh_t, b) in model.raw_params:
        h = jnp.zeros((B, H), jnp.float32)
        c = jnp.zeros((B, H), jnp.float32)
        ys = []
        for t in range(T):
            gates = layer_in[:, t, :] @ w_ih_t + h @ w_hh_t + b
            i = jax.nn.sigmoid(gates[:, 0 * H:1 * H])
            f = jax.nn.sigmoid(gates[:, 1 * H:2 * H])
            g = jnp.tanh(gates[:, 2 * H:3 * H])
            o = jax.nn.sigmoid(gates[:, 3 * H:4 * H])
            c = f * c + i * g
            h = o * jnp.tanh(c)
            ys.append(h)
        layer_in = jnp.stack(ys, axis=1)
        h_fin.append(h)
        c_fin.append(c)
    lin = h_fin[-1] @ model.w_out_t + model.b_out
    return lin, jnp.stack(h_fin), jnp.stack(c_fin)


if __name__ == "__main__":
    B, T = 2, 8
    input_dim, hidden_dim, num_layers = 16, 32, 2
    num_classes = 3   # ordinal head -> Linear(hidden, num_classes - 1)

    model = PallasRNN(input_dim, hidden_dim, num_layers,
                      dropout=0.0, num_classes=num_classes,
                      key=jax.random.PRNGKey(0))

    x = jax.random.normal(jax.random.PRNGKey(1), (B, T, input_dim),
                          dtype=jnp.float32)

    logits, (hidden_layer, hidden_cell) = model.forward(x)
    jax.block_until_ready((logits, hidden_layer, hidden_cell))

    # sanity check against pure-JAX reference
    ref_logits, ref_h, ref_c = _ref_forward(model, x)
    assert logits.shape == (B, num_classes - 1)
    assert hidden_layer.shape == (num_layers, B, hidden_dim)
    assert hidden_cell.shape == (num_layers, B, hidden_dim)
    assert jnp.allclose(logits, ref_logits, atol=1e-4, rtol=1e-4)
    assert jnp.allclose(hidden_layer, ref_h, atol=1e-4, rtol=1e-4)
    assert jnp.allclose(hidden_cell, ref_c, atol=1e-4, rtol=1e-4)

    print("KERNEL_OK")
</pallas_src>

<mosaic_0001>
module attributes {stable_mosaic.version = 11 : i64} {
  func.func @kernel(%arg0: i32, %arg1: memref<8x8x16xf32, #tpu.memory_space<vmem>>, %arg2: memref<2x8x128xf32, #tpu.memory_space<vmem>>, %arg3: memref<2x8x128xf32, #tpu.memory_space<vmem>>, %arg4: memref<16x512xf32, #tpu.memory_space<vmem>>, %arg5: memref<128x512xf32, #tpu.memory_space<vmem>>, %arg6: memref<1x512xf32, #tpu.memory_space<vmem>>, %arg7: memref<128x512xf32, #tpu.memory_space<vmem>>, %arg8: memref<128x512xf32, #tpu.memory_space<vmem>>, %arg9: memref<1x512xf32, #tpu.memory_space<vmem>>, %arg10: memref<128x128xf32, #tpu.memory_space<vmem>>, %arg11: memref<1x128xf32, #tpu.memory_space<vmem>>, %arg12: memref<2x8x128xf32, #tpu.memory_space<vmem>>, %arg13: memref<2x8x128xf32, #tpu.memory_space<vmem>>, %arg14: memref<8x128xf32, #tpu.memory_space<vmem>>, %arg15: memref<2x8x128xf32, #tpu.memory_space<vmem>>, %arg16: memref<2x8x128xf32, #tpu.memory_space<vmem>>, %arg17: memref<8x8x128xf32, #tpu.memory_space<vmem>>) attributes {dimension_semantics = [#tpu.dimension_semantics<arbitrary>], iteration_bounds = array<i64: 1>, scalar_prefetch = 0 : i64, scratch_operands = 3 : i64, tpu.core_type = #tpu.core_type<tc>, window_params = [{transform_indices = @transform_0, window_bounds = array<i64: 8, 8, 16>}, {pipeline_mode = #tpu.pipeline_mode<synchronous>, transform_indices = @transform_1, window_bounds = array<i64: 2, 8, 128>}, {pipeline_mode = #tpu.pipeline_mode<synchronous>, transform_indices = @transform_2, window_bounds = array<i64: 2, 8, 128>}, {pipeline_mode = #tpu.pipeline_mode<synchronous>, transform_indices = @transform_3, window_bounds = array<i64: 16, 512>}, {pipeline_mode = #tpu.pipeline_mode<synchronous>, transform_indices = @transform_4, window_bounds = array<i64: 128, 512>}, {pipeline_mode = #tpu.pipeline_mode<synchronous>, transform_indices = @transform_5, window_bounds = array<i64: 1, 512>}, {pipeline_mode = #tpu.pipeline_mode<synchronous>, transform_indices = @transform_6, window_bounds = array<i64: 128, 512>}, {pipeline_mode = #tpu.pipeline_mode<synchronous>, transform_indices = @transform_7, window_bounds = array<i64: 128, 512>}, {pipeline_mode = #tpu.pipeline_mode<synchronous>, transform_indices = @transform_8, window_bounds = array<i64: 1, 512>}, {pipeline_mode = #tpu.pipeline_mode<synchronous>, transform_indices = @transform_9, window_bounds = array<i64: 128, 128>}, {pipeline_mode = #tpu.pipeline_mode<synchronous>, transform_indices = @transform_10, window_bounds = array<i64: 1, 128>}, {pipeline_mode = #tpu.pipeline_mode<synchronous>, transform_indices = @transform_11, window_bounds = array<i64: 2, 8, 128>}, {pipeline_mode = #tpu.pipeline_mode<synchronous>, transform_indices = @transform_12, window_bounds = array<i64: 2, 8, 128>}, {pipeline_mode = #tpu.pipeline_mode<synchronous>, transform_indices = @transform_13, window_bounds = array<i64: 8, 128>}]} {
    %c0_i32 = arith.constant 0 : i32
    %0 = arith.cmpi eq, %arg0, %c0_i32 : i32
    %1 = arith.extui %0 : i1 to i32
    %c0_i32_0 = arith.constant 0 : i32
    %2 = arith.cmpi ne, %1, %c0_i32_0 : i32
    scf.if %2 {
      %c0_126 = arith.constant 0 : index
      %c0_127 = arith.constant 0 : index
      %c0_128 = arith.constant 0 : index
      %532 = vector.load %arg2[%c0_126, %c0_127, %c0_128] : memref<2x8x128xf32, #tpu.memory_space<vmem>>, vector<2x8x128xf32>
      %c0_129 = arith.constant 0 : index
      %c0_130 = arith.constant 0 : index
      %c0_131 = arith.constant 0 : index
      %533 = vector.load %arg15[%c0_129, %c0_130, %c0_131] : memref<2x8x128xf32, #tpu.memory_space<vmem>>, vector<2x8x128xf32>
      tpu.vector_store %arg15[%c0_129, %c0_130, %c0_131], %532 {strides = array<i32>} : memref<2x8x128xf32, #tpu.memory_space<vmem>>, vector<2x8x128xf32>,
      %c0_132 = arith.constant 0 : index
      %c0_133 = arith.constant 0 : index
      %c0_134 = arith.constant 0 : index
      %534 = vector.load %arg3[%c0_132, %c0_133, %c0_134] : memref<2x8x128xf32, #tpu.memory_space<vmem>>, vector<2x8x128xf32>
      %c0_135 = arith.constant 0 : index
      %c0_136 = arith.constant 0 : index
      %c0_137 = arith.constant 0 : index
      %535 = vector.load %arg16[%c0_135, %c0_136, %c0_137] : memref<2x8x128xf32, #tpu.memory_space<vmem>>, vector<2x8x128xf32>
      tpu.vector_store %arg16[%c0_135, %c0_136, %c0_137], %534 {strides = array<i32>} : memref<2x8x128xf32, #tpu.memory_space<vmem>>, vector<2x8x128xf32>,
    } else {
    }
    %c0 = arith.constant 0 : index
    %c0_1 = arith.constant 0 : index
    %c0_2 = arith.constant 0 : index
    %3 = vector.load %arg1[%c0, %c0_1, %c0_2] : memref<8x8x16xf32, #tpu.memory_space<vmem>>, vector<8x8x16xf32>
    %4 = vector.shape_cast %3 : vector<8x8x16xf32> to vector<64x16xf32>
    %c0_3 = arith.constant 0 : index
    %c0_4 = arith.constant 0 : index
    %5 = vector.load %arg4[%c0_3, %c0_4] : memref<16x512xf32, #tpu.memory_space<vmem>>, vector<16x512xf32>
    %cst = arith.constant dense<0.000000e+00> : vector<64x512xf32>
    %6 = tpu.matmul %4, %5, %cst {dimension_numbers = #tpu.dot_dimension_numbers<[1], [0], [0], [1], [0, 0, 1, 1], [], []>} : vector<64x16xf32>, vector<16x512xf32>, vector<64x512xf32> -> vector<64x512xf32>
    %c0_5 = arith.constant 0 : index
    %c0_6 = arith.constant 0 : index
    %7 = vector.load %arg6[%c0_5, %c0_6] : memref<1x512xf32, #tpu.memory_space<vmem>>, vector<1x512xf32>
    %8 = vector.broadcast %7 : vector<1x512xf32> to vector<64x512xf32>
    %9 = arith.addf %6, %8 : vector<64x512xf32>
    %10 = vector.shape_cast %9 : vector<64x512xf32> to vector<8x8x512xf32>
    %c0_7 = arith.constant 0 : index
    %c0_8 = arith.constant 0 : index
    %11 = vector.load %arg5[%c0_7, %c0_8] : memref<128x512xf32, #tpu.memory_space<vmem>>, vector<128x512xf32>
    %c0_9 = arith.constant 0 : index
    %c0_10 = arith.constant 0 : index
    %c0_11 = arith.constant 0 : index
    %12 = vector.load %arg15[%c0_9, %c0_10, %c0_11] : memref<2x8x128xf32, #tpu.memory_space<vmem>>, vector<1x8x128xf32>
    %13 = vector.shape_cast %12 : vector<1x8x128xf32> to vector<8x128xf32>
    %c0_12 = arith.constant 0 : index
    %c0_13 = arith.constant 0 : index
    %c0_14 = arith.constant 0 : index
    %14 = vector.load %arg16[%c0_12, %c0_13, %c0_14] : memref<2x8x128xf32, #tpu.memory_space<vmem>>, vector<1x8x128xf32>
    %15 = vector.shape_cast %14 : vector<1x8x128xf32> to vector<8x128xf32>
    %16 = vector.extract_strided_slice %10 {offsets = [0, 0, 0], sizes = [1, 8, 512], strides = [1, 1, 1]} : vector<8x8x512xf32> to vector<1x8x512xf32>
    %17 = vector.shape_cast %16 : vector<1x8x512xf32> to vector<8x512xf32>
    %cst_15 = arith.constant dense<0.000000e+00> : vector<8x512xf32>
    %18 = tpu.matmul %13, %11, %cst_15 {dimension_numbers = #tpu.dot_dimension_numbers<[1], [0], [0], [1], [0, 0, 1, 1], [], []>} : vector<8x128xf32>, vector<128x512xf32>, vector<8x512xf32> -> vector<8x512xf32>
    %19 = arith.addf %17, %18 : vector<8x512xf32>
    %20 = vector.extract_strided_slice %19 {offsets = [0, 0], sizes = [8, 128], strides = [1, 1]} : vector<8x512xf32> to vector<8x128xf32>
    %21 = arith.negf %20 : vector<8x128xf32>
    %22 = math.exp %21 : vector<8x128xf32>
    %cst_16 = arith.constant 1.000000e+00 : f32
    %23 = vector.broadcast %cst_16 : f32 to vector<8x128xf32>
    %24 = arith.addf %23, %22 : vector<8x128xf32>
    %25 = arith.divf %23, %24 : vector<8x128xf32>
    %26 = vector.extract_strided_slice %19 {offsets = [0, 128], sizes = [8, 128], strides = [1, 1]} : vector<8x512xf32> to vector<8x128xf32>
    %27 = arith.negf %26 : vector<8x128xf32>
    %28 = math.exp %27 : vector<8x128xf32>
    %cst_17 = arith.constant 1.000000e+00 : f32
    %29 = vector.broadcast %cst_17 : f32 to vector<8x128xf32>
    %30 = arith.addf %29, %28 : vector<8x128xf32>
    %31 = arith.divf %29, %30 : vector<8x128xf32>
    %32 = vector.extract_strided_slice %19 {offsets = [0, 256], sizes = [8, 128], strides = [1, 1]} : vector<8x512xf32> to vector<8x128xf32>
    %33 = math.tanh %32 : vector<8x128xf32>
    %34 = vector.extract_strided_slice %19 {offsets = [0, 384], sizes = [8, 128], strides = [1, 1]} : vector<8x512xf32> to vector<8x128xf32>
    %35 = arith.negf %34 : vector<8x128xf32>
    %36 = math.exp %35 : vector<8x128xf32>
    %cst_18 = arith.constant 1.000000e+00 : f32
    %37 = vector.broadcast %cst_18 : f32 to vector<8x128xf32>
    %38 = arith.addf %37, %36 : vector<8x128xf32>
    %39 = arith.divf %37, %38 : vector<8x128xf32>
    %40 = arith.mulf %31, %15 : vector<8x128xf32>
    %41 = arith.mulf %25, %33 : vector<8x128xf32>
    %42 = arith.addf %40, %41 : vector<8x128xf32>
    %43 = math.tanh %42 : vector<8x128xf32>
    %44 = arith.mulf %39, %43 : vector<8x128xf32>
    %c0_19 = arith.constant 0 : index
    %c0_20 = arith.constant 0 : index
    %c0_21 = arith.constant 0 : index
    %45 = vector.load %arg17[%c0_19, %c0_20, %c0_21] : memref<8x8x128xf32, #tpu.memory_space<vmem>>, vector<1x8x128xf32>
    %46 = vector.shape_cast %45 : vector<1x8x128xf32> to vector<8x128xf32>
    %47 = vector.shape_cast %44 : vector<8x128xf32> to vector<1x8x128xf32>
    tpu.vector_store %arg17[%c0_19, %c0_20, %c0_21], %47 {strides = array<i32>} : memref<8x8x128xf32, #tpu.memory_space<vmem>>, vector<1x8x128xf32>,
    %48 = vector.extract_strided_slice %10 {offsets = [1, 0, 0], sizes = [1, 8, 512], strides = [1, 1, 1]} : vector<8x8x512xf32> to vector<1x8x512xf32>
    %49 = vector.shape_cast %48 : vector<1x8x512xf32> to vector<8x512xf32>
    %cst_22 = arith.constant dense<0.000000e+00> : vector<8x512xf32>
    %50 = tpu.matmul %44, %11, %cst_22 {dimension_numbers = #tpu.dot_dimension_numbers<[1], [0], [0], [1], [0, 0, 1, 1], [], []>} : vector<8x128xf32>, vector<128x512xf32>, vector<8x512xf32> -> vector<8x512xf32>
    %51 = arith.addf %49, %50 : vector<8x512xf32>
    %52 = vector.extract_strided_slice %51 {offsets = [0, 0], sizes = [8, 128], strides = [1, 1]} : vector<8x512xf32> to vector<8x128xf32>
    %53 = arith.negf %52 : vector<8x128xf32>
    %54 = math.exp %53 : vector<8x128xf32>
    %cst_23 = arith.constant 1.000000e+00 : f32
    %55 = vector.broadcast %cst_23 : f32 to vector<8x128xf32>
    %56 = arith.addf %55, %54 : vector<8x128xf32>
    %57 = arith.divf %55, %56 : vector<8x128xf32>
    %58 = vector.extract_strided_slice %51 {offsets = [0, 128], sizes = [8, 128], strides = [1, 1]} : vector<8x512xf32> to vector<8x128xf32>
    %59 = arith.negf %58 : vector<8x128xf32>
    %60 = math.exp %59 : vector<8x128xf32>
    %cst_24 = arith.constant 1.000000e+00 : f32
    %61 = vector.broadcast %cst_24 : f32 to vector<8x128xf32>
    %62 = arith.addf %61, %60 : vector<8x128xf32>
    %63 = arith.divf %61, %62 : vector<8x128xf32>
    %64 = vector.extract_strided_slice %51 {offsets = [0, 256], sizes = [8, 128], strides = [1, 1]} : vector<8x512xf32> to vector<8x128xf32>
    %65 = math.tanh %64 : vector<8x128xf32>
    %66 = vector.extract_strided_slice %51 {offsets = [0, 384], sizes = [8, 128], strides = [1, 1]} : vector<8x512xf32> to vector<8x128xf32>
    %67 = arith.negf %66 : vector<8x128xf32>
    %68 = math.exp %67 : vector<8x128xf32>
    %cst_25 = arith.constant 1.000000e+00 : f32
    %69 = vector.broadcast %cst_25 : f32 to vector<8x128xf32>
    %70 = arith.addf %69, %68 : vector<8x128xf32>
    %71 = arith.divf %69, %70 : vector<8x128xf32>
    %72 = arith.mulf %63, %42 : vector<8x128xf32>
    %73 = arith.mulf %57, %65 : vector<8x128xf32>
    %74 = arith.addf %72, %73 : vector<8x128xf32>
    %75 = math.tanh %74 : vector<8x128xf32>
    %76 = arith.mulf %71, %75 : vector<8x128xf32>
    %c1 = arith.constant 1 : index
    %c0_26 = arith.constant 0 : index
    %c0_27 = arith.constant 0 : index
    %77 = vector.load %arg17[%c1, %c0_26, %c0_27] : memref<8x8x128xf32, #tpu.memory_space<vmem>>, vector<1x8x128xf32>
    %78 = vector.shape_cast %77 : vector<1x8x128xf32> to vector<8x128xf32>
    %79 = vector.shape_cast %76 : vector<8x128xf32> to vector<1x8x128xf32>
    tpu.vector_store %arg17[%c1, %c0_26, %c0_27], %79 {strides = array<i32>} : memref<8x8x128xf32, #tpu.memory_space<vmem>>, vector<1x8x128xf32>,
    %80 = vector.extract_strided_slice %10 {offsets = [2, 0, 0], sizes = [1, 8, 512], strides = [1, 1, 1]} : vector<8x8x512xf32> to vector<1x8x512xf32>
    %81 = vector.shape_cast %80 : vector<1x8x512xf32> to vector<8x512xf32>
    %cst_28 = arith.constant dense<0.000000e+00> : vector<8x512xf32>
    %82 = tpu.matmul %76, %11, %cst_28 {dimension_numbers = #tpu.dot_dimension_numbers<[1], [0], [0], [1], [0, 0, 1, 1], [], []>} : vector<8x128xf32>, vector<128x512xf32>, vector<8x512xf32> -> vector<8x512xf32>
    %83 = arith.addf %81, %82 : vector<8x512xf32>
    %84 = vector.extract_strided_slice %83 {offsets = [0, 0], sizes = [8, 128], strides = [1, 1]} : vector<8x512xf32> to vector<8x128xf32>
    %85 = arith.negf %84 : vector<8x128xf32>
    %86 = math.exp %85 : vector<8x128xf32>
    %cst_29 = arith.constant 1.000000e+00 : f32
    %87 = vector.broadcast %cst_29 : f32 to vector<8x128xf32>
    %88 = arith.addf %87, %86 : vector<8x128xf32>
    %89 = arith.divf %87, %88 : vector<8x128xf32>
    %90 = vector.extract_strided_slice %83 {offsets = [0, 128], sizes = [8, 128], strides = [1, 1]} : vector<8x512xf32> to vector<8x128xf32>
    %91 = arith.negf %90 : vector<8x128xf32>
    %92 = math.exp %91 : vector<8x128xf32>
    %cst_30 = arith.constant 1.000000e+00 : f32
    %93 = vector.broadcast %cst_30 : f32 to vector<8x128xf32>
    %94 = arith.addf %93, %92 : vector<8x128xf32>
    %95 = arith.divf %93, %94 : vector<8x128xf32>
    %96 = vector.extract_strided_slice %83 {offsets = [0, 256], sizes = [8, 128], strides = [1, 1]} : vector<8x512xf32> to vector<8x128xf32>
    %97 = math.tanh %96 : vector<8x128xf32>
    %98 = vector.extract_strided_slice %83 {offsets = [0, 384], sizes = [8, 128], strides = [1, 1]} : vector<8x512xf32> to vector<8x128xf32>
    %99 = arith.negf %98 : vector<8x128xf32>
    %100 = math.exp %99 : vector<8x128xf32>
    %cst_31 = arith.constant 1.000000e+00 : f32
    %101 = vector.broadcast %cst_31 : f32 to vector<8x128xf32>
    %102 = arith.addf %101, %100 : vector<8x128xf32>
    %103 = arith.divf %101, %102 : vector<8x128xf32>
    %104 = arith.mulf %95, %74 : vector<8x128xf32>
    %105 = arith.mulf %89, %97 : vector<8x128xf32>
    %106 = arith.addf %104, %105 : vector<8x128xf32>
    %107 = math.tanh %106 : vector<8x128xf32>
    %108 = arith.mulf %103, %107 : vector<8x128xf32>
    %c2 = arith.constant 2 : index
    %c0_32 = arith.constant 0 : index
    %c0_33 = arith.constant 0 : index
    %109 = vector.load %arg17[%c2, %c0_32, %c0_33] : memref<8x8x128xf32, #tpu.memory_space<vmem>>, vector<1x8x128xf32>
    %110 = vector.shape_cast %109 : vector<1x8x128xf32> to vector<8x128xf32>
    %111 = vector.shape_cast %108 : vector<8x128xf32> to vector<1x8x128xf32>
    tpu.vector_store %arg17[%c2, %c0_32, %c0_33], %111 {strides = array<i32>} : memref<8x8x128xf32, #tpu.memory_space<vmem>>, vector<1x8x128xf32>,
    %112 = vector.extract_strided_slice %10 {offsets = [3, 0, 0], sizes = [1, 8, 512], strides = [1, 1, 1]} : vector<8x8x512xf32> to vector<1x8x512xf32>
    %113 = vector.shape_cast %112 : vector<1x8x512xf32> to vector<8x512xf32>
    %cst_34 = arith.constant dense<0.000000e+00> : vector<8x512xf32>
    %114 = tpu.matmul %108, %11, %cst_34 {dimension_numbers = #tpu.dot_dimension_numbers<[1], [0], [0], [1], [0, 0, 1, 1], [], []>} : vector<8x128xf32>, vector<128x512xf32>, vector<8x512xf32> -> vector<8x512xf32>
    %115 = arith.addf %113, %114 : vector<8x512xf32>
    %116 = vector.extract_strided_slice %115 {offsets = [0, 0], sizes = [8, 128], strides = [1, 1]} : vector<8x512xf32> to vector<8x128xf32>
    %117 = arith.negf %116 : vector<8x128xf32>
    %118 = math.exp %117 : vector<8x128xf32>
    %cst_35 = arith.constant 1.000000e+00 : f32
    %119 = vector.broadcast %cst_35 : f32 to vector<8x128xf32>
    %120 = arith.addf %119, %118 : vector<8x128xf32>
    %121 = arith.divf %119, %120 : vector<8x128xf32>
    %122 = vector.extract_strided_slice %115 {offsets = [0, 128], sizes = [8, 128], strides = [1, 1]} : vector<8x512xf32> to vector<8x128xf32>
    %123 = arith.negf %122 : vector<8x128xf32>
    %124 = math.exp %123 : vector<8x128xf32>
    %cst_36 = arith.constant 1.000000e+00 : f32
    %125 = vector.broadcast %cst_36 : f32 to vector<8x128xf32>
    %126 = arith.addf %125, %124 : vector<8x128xf32>
    %127 = arith.divf %125, %126 : vector<8x128xf32>
    %128 = vector.extract_strided_slice %115 {offsets = [0, 256], sizes = [8, 128], strides = [1, 1]} : vector<8x512xf32> to vector<8x128xf32>
    %129 = math.tanh %128 : vector<8x128xf32>
    %130 = vector.extract_strided_slice %115 {offsets = [0, 384], sizes = [8, 128], strides = [1, 1]} : vector<8x512xf32> to vector<8x128xf32>
    %131 = arith.negf %130 : vector<8x128xf32>
    %132 = math.exp %131 : vector<8x128xf32>
    %cst_37 = arith.constant 1.000000e+00 : f32
    %133 = vector.broadcast %cst_37 : f32 to vector<8x128xf32>
    %134 = arith.addf %133, %132 : vector<8x128xf32>
    %135 = arith.divf %133, %134 : vector<8x128xf32>
    %136 = arith.mulf %127, %106 : vector<8x128xf32>
    %137 = arith.mulf %121, %129 : vector<8x128xf32>
    %138 = arith.addf %136, %137 : vector<8x128xf32>
    %139 = math.tanh %138 : vector<8x128xf32>
    %140 = arith.mulf %135, %139 : vector<8x128xf32>
    %c3 = arith.constant 3 : index
    %c0_38 = arith.constant 0 : index
    %c0_39 = arith.constant 0 : index
    %141 = vector.load %arg17[%c3, %c0_38, %c0_39] : memref<8x8x128xf32, #tpu.memory_space<vmem>>, vector<1x8x128xf32>
    %142 = vector.shape_cast %141 : vector<1x8x128xf32> to vector<8x128xf32>
    %143 = vector.shape_cast %140 : vector<8x128xf32> to vector<1x8x128xf32>
    tpu.vector_store %arg17[%c3, %c0_38, %c0_39], %143 {strides = array<i32>} : memref<8x8x128xf32, #tpu.memory_space<vmem>>, vector<1x8x128xf32>,
    %144 = vector.extract_strided_slice %10 {offsets = [4, 0, 0], sizes = [1, 8, 512], strides = [1, 1, 1]} : vector<8x8x512xf32> to vector<1x8x512xf32>
    %145 = vector.shape_cast %144 : vector<1x8x512xf32> to vector<8x512xf32>
    %cst_40 = arith.constant dense<0.000000e+00> : vector<8x512xf32>
    %146 = tpu.matmul %140, %11, %cst_40 {dimension_numbers = #tpu.dot_dimension_numbers<[1], [0], [0], [1], [0, 0, 1, 1], [], []>} : vector<8x128xf32>, vector<128x512xf32>, vector<8x512xf32> -> vector<8x512xf32>
    %147 = arith.addf %145, %146 : vector<8x512xf32>
    %148 = vector.extract_strided_slice %147 {offsets = [0, 0], sizes = [8, 128], strides = [1, 1]} : vector<8x512xf32> to vector<8x128xf32>
    %149 = arith.negf %148 : vector<8x128xf32>
    %150 = math.exp %149 : vector<8x128xf32>
    %cst_41 = arith.constant 1.000000e+00 : f32
    %151 = vector.broadcast %cst_41 : f32 to vector<8x128xf32>
    %152 = arith.addf %151, %150 : vector<8x128xf32>
    %153 = arith.divf %151, %152 : vector<8x128xf32>
    %154 = vector.extract_strided_slice %147 {offsets = [0, 128], sizes = [8, 128], strides = [1, 1]} : vector<8x512xf32> to vector<8x128xf32>
    %155 = arith.negf %154 : vector<8x128xf32>
    %156 = math.exp %155 : vector<8x128xf32>
    %cst_42 = arith.constant 1.000000e+00 : f32
    %157 = vector.broadcast %cst_42 : f32 to vector<8x128xf32>
    %158 = arith.addf %157, %156 : vector<8x128xf32>
    %159 = arith.divf %157, %158 : vector<8x128xf32>
    %160 = vector.extract_strided_slice %147 {offsets = [0, 256], sizes = [8, 128], strides = [1, 1]} : vector<8x512xf32> to vector<8x128xf32>
    %161 = math.tanh %160 : vector<8x128xf32>
    %162 = vector.extract_strided_slice %147 {offsets = [0, 384], sizes = [8, 128], strides = [1, 1]} : vector<8x512xf32> to vector<8x128xf32>
    %163 = arith.negf %162 : vector<8x128xf32>
    %164 = math.exp %163 : vector<8x128xf32>
    %cst_43 = arith.constant 1.000000e+00 : f32
    %165 = vector.broadcast %cst_43 : f32 to vector<8x128xf32>
    %166 = arith.addf %165, %164 : vector<8x128xf32>
    %167 = arith.divf %165, %166 : vector<8x128xf32>
    %168 = arith.mulf %159, %138 : vector<8x128xf32>
    %169 = arith.mulf %153, %161 : vector<8x128xf32>
    %170 = arith.addf %168, %169 : vector<8x128xf32>
    %171 = math.tanh %170 : vector<8x128xf32>
    %172 = arith.mulf %167, %171 : vector<8x128xf32>
    %c4 = arith.constant 4 : index
    %c0_44 = arith.constant 0 : index
    %c0_45 = arith.constant 0 : index
    %173 = vector.load %arg17[%c4, %c0_44, %c0_45] : memref<8x8x128xf32, #tpu.memory_space<vmem>>, vector<1x8x128xf32>
    %174 = vector.shape_cast %173 : vector<1x8x128xf32> to vector<8x128xf32>
    %175 = vector.shape_cast %172 : vector<8x128xf32> to vector<1x8x128xf32>
    tpu.vector_store %arg17[%c4, %c0_44, %c0_45], %175 {strides = array<i32>} : memref<8x8x128xf32, #tpu.memory_space<vmem>>, vector<1x8x128xf32>,
    %176 = vector.extract_strided_slice %10 {offsets = [5, 0, 0], sizes = [1, 8, 512], strides = [1, 1, 1]} : vector<8x8x512xf32> to vector<1x8x512xf32>
    %177 = vector.shape_cast %176 : vector<1x8x512xf32> to vector<8x512xf32>
    %cst_46 = arith.constant dense<0.000000e+00> : vector<8x512xf32>
    %178 = tpu.matmul %172, %11, %cst_46 {dimension_numbers = #tpu.dot_dimension_numbers<[1], [0], [0], [1], [0, 0, 1, 1], [], []>} : vector<8x128xf32>, vector<128x512xf32>, vector<8x512xf32> -> vector<8x512xf32>
    %179 = arith.addf %177, %178 : vector<8x512xf32>
    %180 = vector.extract_strided_slice %179 {offsets = [0, 0], sizes = [8, 128], strides = [1, 1]} : vector<8x512xf32> to vector<8x128xf32>
    %181 = arith.negf %180 : vector<8x128xf32>
    %182 = math.exp %181 : vector<8x128xf32>
    %cst_47 = arith.constant 1.000000e+00 : f32
    %183 = vector.broadcast %cst_47 : f32 to vector<8x128xf32>
    %184 = arith.addf %183, %182 : vector<8x128xf32>
    %185 = arith.divf %183, %184 : vector<8x128xf32>
    %186 = vector.extract_strided_slice %179 {offsets = [0, 128], sizes = [8, 128], strides = [1, 1]} : vector<8x512xf32> to vector<8x128xf32>
    %187 = arith.negf %186 : vector<8x128xf32>
    %188 = math.exp %187 : vector<8x128xf32>
    %cst_48 = arith.constant 1.000000e+00 : f32
    %189 = vector.broadcast %cst_48 : f32 to vector<8x128xf32>
    %190 = arith.addf %189, %188 : vector<8x128xf32>
    %191 = arith.divf %189, %190 : vector<8x128xf32>
    %192 = vector.extract_strided_slice %179 {offsets = [0, 256], sizes = [8, 128], strides = [1, 1]} : vector<8x512xf32> to vector<8x128xf32>
    %193 = math.tanh %192 : vector<8x128xf32>
    %194 = vector.extract_strided_slice %179 {offsets = [0, 384], sizes = [8, 128], strides = [1, 1]} : vector<8x512xf32> to vector<8x128xf32>
    %195 = arith.negf %194 : vector<8x128xf32>
    %196 = math.exp %195 : vector<8x128xf32>
    %cst_49 = arith.constant 1.000000e+00 : f32
    %197 = vector.broadcast %cst_49 : f32 to vector<8x128xf32>
    %198 = arith.addf %197, %196 : vector<8x128xf32>
    %199 = arith.divf %197, %198 : vector<8x128xf32>
    %200 = arith.mulf %191, %170 : vector<8x128xf32>
    %201 = arith.mulf %185, %193 : vector<8x128xf32>
    %202 = arith.addf %200, %201 : vector<8x128xf32>
    %203 = math.tanh %202 : vector<8x128xf32>
    %204 = arith.mulf %199, %203 : vector<8x128xf32>
    %c5 = arith.constant 5 : index
    %c0_50 = arith.constant 0 : index
    %c0_51 = arith.constant 0 : index
    %205 = vector.load %arg17[%c5, %c0_50, %c0_51] : memref<8x8x128xf32, #tpu.memory_space<vmem>>, vector<1x8x128xf32>
    %206 = vector.shape_cast %205 : vector<1x8x128xf32> to vector<8x128xf32>
    %207 = vector.shape_cast %204 : vector<8x128xf32> to vector<1x8x128xf32>
    tpu.vector_store %arg17[%c5, %c0_50, %c0_51], %207 {strides = array<i32>} : memref<8x8x128xf32, #tpu.memory_space<vmem>>, vector<1x8x128xf32>,
    %208 = vector.extract_strided_slice %10 {offsets = [6, 0, 0], sizes = [1, 8, 512], strides = [1, 1, 1]} : vector<8x8x512xf32> to vector<1x8x512xf32>
    %209 = vector.shape_cast %208 : vector<1x8x512xf32> to vector<8x512xf32>
    %cst_52 = arith.constant dense<0.000000e+00> : vector<8x512xf32>
    %210 = tpu.matmul %204, %11, %cst_52 {dimension_numbers = #tpu.dot_dimension_numbers<[1], [0], [0], [1], [0, 0, 1, 1], [], []>} : vector<8x128xf32>, vector<128x512xf32>, vector<8x512xf32> -> vector<8x512xf32>
    %211 = arith.addf %209, %210 : vector<8x512xf32>
    %212 = vector.extract_strided_slice %211 {offsets = [0, 0], sizes = [8, 128], strides = [1, 1]} : vector<8x512xf32> to vector<8x128xf32>
    %213 = arith.negf %212 : vector<8x128xf32>
    %214 = math.exp %213 : vector<8x128xf32>
    %cst_53 = arith.constant 1.000000e+00 : f32
    %215 = vector.broadcast %cst_53 : f32 to vector<8x128xf32>
    %216 = arith.addf %215, %214 : vector<8x128xf32>
    %217 = arith.divf %215, %216 : vector<8x128xf32>
    %218 = vector.extract_strided_slice %211 {offsets = [0, 128], sizes = [8, 128], strides = [1, 1]} : vector<8x512xf32> to vector<8x128xf32>
    %219 = arith.negf %218 : vector<8x128xf32>
    %220 = math.exp %219 : vector<8x128xf32>
    %cst_54 = arith.constant 1.000000e+00 : f32
    %221 = vector.broadcast %cst_54 : f32 to vector<8x128xf32>
    %222 = arith.addf %221, %220 : vector<8x128xf32>
    %223 = arith.divf %221, %222 : vector<8x128xf32>
    %224 = vector.extract_strided_slice %211 {offsets = [0, 256], sizes = [8, 128], strides = [1, 1]} : vector<8x512xf32> to vector<8x128xf32>
    %225 = math.tanh %224 : vector<8x128xf32>
    %226 = vector.extract_strided_slice %211 {offsets = [0, 384], sizes = [8, 128], strides = [1, 1]} : vector<8x512xf32> to vector<8x128xf32>
    %227 = arith.negf %226 : vector<8x128xf32>
    %228 = math.exp %227 : vector<8x128xf32>
    %cst_55 = arith.constant 1.000000e+00 : f32
    %229 = vector.broadcast %cst_55 : f32 to vector<8x128xf32>
    %230 = arith.addf %229, %228 : vector<8x128xf32>
    %231 = arith.divf %229, %230 : vector<8x128xf32>
    %232 = arith.mulf %223, %202 : vector<8x128xf32>
    %233 = arith.mulf %217, %225 : vector<8x128xf32>
    %234 = arith.addf %232, %233 : vector<8x128xf32>
    %235 = math.tanh %234 : vector<8x128xf32>
    %236 = arith.mulf %231, %235 : vector<8x128xf32>
    %c6 = arith.constant 6 : index
    %c0_56 = arith.constant 0 : index
    %c0_57 = arith.constant 0 : index
    %237 = vector.load %arg17[%c6, %c0_56, %c0_57] : memref<8x8x128xf32, #tpu.memory_space<vmem>>, vector<1x8x128xf32>
    %238 = vector.shape_cast %237 : vector<1x8x128xf32> to vector<8x128xf32>
    %239 = vector.shape_cast %236 : vector<8x128xf32> to vector<1x8x128xf32>
    tpu.vector_store %arg17[%c6, %c0_56, %c0_57], %239 {strides = array<i32>} : memref<8x8x128xf32, #tpu.memory_space<vmem>>, vector<1x8x128xf32>,
    %240 = vector.extract_strided_slice %10 {offsets = [7, 0, 0], sizes = [1, 8, 512], strides = [1, 1, 1]} : vector<8x8x512xf32> to vector<1x8x512xf32>
    %241 = vector.shape_cast %240 : vector<1x8x512xf32> to vector<8x512xf32>
    %cst_58 = arith.constant dense<0.000000e+00> : vector<8x512xf32>
    %242 = tpu.matmul %236, %11, %cst_58 {dimension_numbers = #tpu.dot_dimension_numbers<[1], [0], [0], [1], [0, 0, 1, 1], [], []>} : vector<8x128xf32>, vector<128x512xf32>, vector<8x512xf32> -> vector<8x512xf32>
    %243 = arith.addf %241, %242 : vector<8x512xf32>
    %244 = vector.extract_strided_slice %243 {offsets = [0, 0], sizes = [8, 128], strides = [1, 1]} : vector<8x512xf32> to vector<8x128xf32>
    %245 = arith.negf %244 : vector<8x128xf32>
    %246 = math.exp %245 : vector<8x128xf32>
    %cst_59 = arith.constant 1.000000e+00 : f32
    %247 = vector.broadcast %cst_59 : f32 to vector<8x128xf32>
    %248 = arith.addf %247, %246 : vector<8x128xf32>
    %249 = arith.divf %247, %248 : vector<8x128xf32>
    %250 = vector.extract_strided_slice %243 {offsets = [0, 128], sizes = [8, 128], strides = [1, 1]} : vector<8x512xf32> to vector<8x128xf32>
    %251 = arith.negf %250 : vector<8x128xf32>
    %252 = math.exp %251 : vector<8x128xf32>
    %cst_60 = arith.constant 1.000000e+00 : f32
    %253 = vector.broadcast %cst_60 : f32 to vector<8x128xf32>
    %254 = arith.addf %253, %252 : vector<8x128xf32>
    %255 = arith.divf %253, %254 : vector<8x128xf32>
    %256 = vector.extract_strided_slice %243 {offsets = [0, 256], sizes = [8, 128], strides = [1, 1]} : vector<8x512xf32> to vector<8x128xf32>
    %257 = math.tanh %256 : vector<8x128xf32>
    %258 = vector.extract_strided_slice %243 {offsets = [0, 384], sizes = [8, 128], strides = [1, 1]} : vector<8x512xf32> to vector<8x128xf32>
    %259 = arith.negf %258 : vector<8x128xf32>
    %260 = math.exp %259 : vector<8x128xf32>
    %cst_61 = arith.constant 1.000000e+00 : f32
    %261 = vector.broadcast %cst_61 : f32 to vector<8x128xf32>
    %262 = arith.addf %261, %260 : vector<8x128xf32>
    %263 = arith.divf %261, %262 : vector<8x128xf32>
    %264 = arith.mulf %255, %234 : vector<8x128xf32>
    %265 = arith.mulf %249, %257 : vector<8x128xf32>
    %266 = arith.addf %264, %265 : vector<8x128xf32>
    %267 = math.tanh %266 : vector<8x128xf32>
    %268 = arith.mulf %263, %267 : vector<8x128xf32>
    %c7 = arith.constant 7 : index
    %c0_62 = arith.constant 0 : index
    %c0_63 = arith.constant 0 : index
    %269 = vector.load %arg17[%c7, %c0_62, %c0_63] : memref<8x8x128xf32, #tpu.memory_space<vmem>>, vector<1x8x128xf32>
    %270 = vector.shape_cast %269 : vector<1x8x128xf32> to vector<8x128xf32>
    %271 = vector.shape_cast %268 : vector<8x128xf32> to vector<1x8x128xf32>
    tpu.vector_store %arg17[%c7, %c0_62, %c0_63], %271 {strides = array<i32>} : memref<8x8x128xf32, #tpu.memory_space<vmem>>, vector<1x8x128xf32>,
    %c0_64 = arith.constant 0 : index
    %c0_65 = arith.constant 0 : index
    %c0_66 = arith.constant 0 : index
    %272 = vector.load %arg15[%c0_64, %c0_65, %c0_66] : memref<2x8x128xf32, #tpu.memory_space<vmem>>, vector<1x8x128xf32>
    %273 = vector.shape_cast %272 : vector<1x8x128xf32> to vector<8x128xf32>
    %274 = vector.shape_cast %268 : vector<8x128xf32> to vector<1x8x128xf32>
    tpu.vector_store %arg15[%c0_64, %c0_65, %c0_66], %274 {strides = array<i32>} : memref<2x8x128xf32, #tpu.memory_space<vmem>>, vector<1x8x128xf32>,
    %c0_67 = arith.constant 0 : index
    %c0_68 = arith.constant 0 : index
    %c0_69 = arith.constant 0 : index
    %275 = vector.load %arg16[%c0_67, %c0_68, %c0_69] : memref<2x8x128xf32, #tpu.memory_space<vmem>>, vector<1x8x128xf32>
    %276 = vector.shape_cast %275 : vector<1x8x128xf32> to vector<8x128xf32>
    %277 = vector.shape_cast %266 : vector<8x128xf32> to vector<1x8x128xf32>
    tpu.vector_store %arg16[%c0_67, %c0_68, %c0_69], %277 {strides = array<i32>} : memref<2x8x128xf32, #tpu.memory_space<vmem>>, vector<1x8x128xf32>,
    %c0_70 = arith.constant 0 : index
    %c0_71 = arith.constant 0 : index
    %c0_72 = arith.constant 0 : index
    %278 = vector.load %arg17[%c0_70, %c0_71, %c0_72] : memref<8x8x128xf32, #tpu.memory_space<vmem>>, vector<8x8x128xf32>
    %279 = vector.shape_cast %278 : vector<8x8x128xf32> to vector<64x128xf32>
    %c0_73 = arith.constant 0 : index
    %c0_74 = arith.constant 0 : index
    %280 = vector.load %arg7[%c0_73, %c0_74] : memref<128x512xf32, #tpu.memory_space<vmem>>, vector<128x512xf32>
    %cst_75 = arith.constant dense<0.000000e+00> : vector<64x512xf32>
    %281 = tpu.matmul %279, %280, %cst_75 {dimension_numbers = #tpu.dot_dimension_numbers<[1], [0], [0], [1], [0, 0, 1, 1], [], []>} : vector<64x128xf32>, vector<128x512xf32>, vector<64x512xf32> -> vector<64x512xf32>
    %c0_76 = arith.constant 0 : index
    %c0_77 = arith.constant 0 : index
    %282 = vector.load %arg9[%c0_76, %c0_77] : memref<1x512xf32, #tpu.memory_space<vmem>>, vector<1x512xf32>
    %283 = vector.broadcast %282 : vector<1x512xf32> to vector<64x512xf32>
    %284 = arith.addf %281, %283 : vector<64x512xf32>
    %285 = vector.shape_cast %284 : vector<64x512xf32> to vector<8x8x512xf32>
    %c0_78 = arith.constant 0 : index
    %c0_79 = arith.constant 0 : index
    %286 = vector.load %arg8[%c0_78, %c0_79] : memref<128x512xf32, #tpu.memory_space<vmem>>, vector<128x512xf32>
    %c1_80 = arith.constant 1 : index
    %c0_81 = arith.constant 0 : index
    %c0_82 = arith.constant 0 : index
    %287 = vector.load %arg15[%c1_80, %c0_81, %c0_82] : memref<2x8x128xf32, #tpu.memory_space<vmem>>, vector<1x8x128xf32>
    %288 = vector.shape_cast %287 : vector<1x8x128xf32> to vector<8x128xf32>
    %c1_83 = arith.constant 1 : index
    %c0_84 = arith.constant 0 : index
    %c0_85 = arith.constant 0 : index
    %289 = vector.load %arg16[%c1_83, %c0_84, %c0_85] : memref<2x8x128xf32, #tpu.memory_space<vmem>>, vector<1x8x128xf32>
    %290 = vector.shape_cast %289 : vector<1x8x128xf32> to vector<8x128xf32>
    %291 = vector.extract_strided_slice %285 {offsets = [0, 0, 0], sizes = [1, 8, 512], strides = [1, 1, 1]} : vector<8x8x512xf32> to vector<1x8x512xf32>
    %292 = vector.shape_cast %291 : vector<1x8x512xf32> to vector<8x512xf32>
    %cst_86 = arith.constant dense<0.000000e+00> : vector<8x512xf32>
    %293 = tpu.matmul %288, %286, %cst_86 {dimension_numbers = #tpu.dot_dimension_numbers<[1], [0], [0], [1], [0, 0, 1, 1], [], []>} : vector<8x128xf32>, vector<128x512xf32>, vector<8x512xf32> -> vector<8x512xf32>
    %294 = arith.addf %292, %293 : vector<8x512xf32>
    %295 = vector.extract_strided_slice %294 {offsets = [0, 0], sizes = [8, 128], strides = [1, 1]} : vector<8x512xf32> to vector<8x128xf32>
    %296 = arith.negf %295 : vector<8x128xf32>
    %297 = math.exp %296 : vector<8x128xf32>
    %cst_87 = arith.constant 1.000000e+00 : f32
    %298 = vector.broadcast %cst_87 : f32 to vector<8x128xf32>
    %299 = arith.addf %298, %297 : vector<8x128xf32>
    %300 = arith.divf %298, %299 : vector<8x128xf32>
    %301 = vector.extract_strided_slice %294 {offsets = [0, 128], sizes = [8, 128], strides = [1, 1]} : vector<8x512xf32> to vector<8x128xf32>
    %302 = arith.negf %301 : vector<8x128xf32>
    %303 = math.exp %302 : vector<8x128xf32>
    %cst_88 = arith.constant 1.000000e+00 : f32
    %304 = vector.broadcast %cst_88 : f32 to vector<8x128xf32>
    %305 = arith.addf %304, %303 : vector<8x128xf32>
    %306 = arith.divf %304, %305 : vector<8x128xf32>
    %307 = vector.extract_strided_slice %294 {offsets = [0, 256], sizes = [8, 128], strides = [1, 1]} : vector<8x512xf32> to vector<8x128xf32>
    %308 = math.tanh %307 : vector<8x128xf32>
    %309 = vector.extract_strided_slice %294 {offsets = [0, 384], sizes = [8, 128], strides = [1, 1]} : vector<8x512xf32> to vector<8x128xf32>
    %310 = arith.negf %309 : vector<8x128xf32>
    %311 = math.exp %310 : vector<8x128xf32>
    %cst_89 = arith.constant 1.000000e+00 : f32
    %312 = vector.broadcast %cst_89 : f32 to vector<8x128xf32>
    %313 = arith.addf %312, %311 : vector<8x128xf32>
    %314 = arith.divf %312, %313 : vector<8x128xf32>
    %315 = arith.mulf %306, %290 : vector<8x128xf32>
    %316 = arith.mulf %300, %308 : vector<8x128xf32>
    %317 = arith.addf %315, %316 : vector<8x128xf32>
    %318 = math.tanh %317 : vector<8x128xf32>
    %319 = arith.mulf %314, %318 : vector<8x128xf32>
    %320 = vector.extract_strided_slice %285 {offsets = [1, 0, 0], sizes = [1, 8, 512], strides = [1, 1, 1]} : vector<8x8x512xf32> to vector<1x8x512xf32>
    %321 = vector.shape_cast %320 : vector<1x8x512xf32> to vector<8x512xf32>
    %cst_90 = arith.constant dense<0.000000e+00> : vector<8x512xf32>
    %322 = tpu.matmul %319, %286, %cst_90 {dimension_numbers = #tpu.dot_dimension_numbers<[1], [0], [0], [1], [0, 0, 1, 1], [], []>} : vector<8x128xf32>, vector<128x512xf32>, vector<8x512xf32> -> vector<8x512xf32>
    %323 = arith.addf %321, %322 : vector<8x512xf32>
    %324 = vector.extract_strided_slice %323 {offsets = [0, 0], sizes = [8, 128], strides = [1, 1]} : vector<8x512xf32> to vector<8x128xf32>
    %325 = arith.negf %324 : vector<8x128xf32>
    %326 = math.exp %325 : vector<8x128xf32>
    %cst_91 = arith.constant 1.000000e+00 : f32
    %327 = vector.broadcast %cst_91 : f32 to vector<8x128xf32>
    %328 = arith.addf %327, %326 : vector<8x128xf32>
    %329 = arith.divf %327, %328 : vector<8x128xf32>
    %330 = vector.extract_strided_slice %323 {offsets = [0, 128], sizes = [8, 128], strides = [1, 1]} : vector<8x512xf32> to vector<8x128xf32>
    %331 = arith.negf %330 : vector<8x128xf32>
    %332 = math.exp %331 : vector<8x128xf32>
    %cst_92 = arith.constant 1.000000e+00 : f32
    %333 = vector.broadcast %cst_92 : f32 to vector<8x128xf32>
    %334 = arith.addf %333, %332 : vector<8x128xf32>
    %335 = arith.divf %333, %334 : vector<8x128xf32>
    %336 = vector.extract_strided_slice %323 {offsets = [0, 256], sizes = [8, 128], strides = [1, 1]} : vector<8x512xf32> to vector<8x128xf32>
    %337 = math.tanh %336 : vector<8x128xf32>
    %338 = vector.extract_strided_slice %323 {offsets = [0, 384], sizes = [8, 128], strides = [1, 1]} : vector<8x512xf32> to vector<8x128xf32>
    %339 = arith.negf %338 : vector<8x128xf32>
    %340 = math.exp %339 : vector<8x128xf32>
    %cst_93 = arith.constant 1.000000e+00 : f32
    %341 = vector.broadcast %cst_93 : f32 to vector<8x128xf32>
    %342 = arith.addf %341, %340 : vector<8x128xf32>
    %343 = arith.divf %341, %342 : vector<8x128xf32>
    %344 = arith.mulf %335, %317 : vector<8x128xf32>
    %345 = arith.mulf %329, %337 : vector<8x128xf32>
    %346 = arith.addf %344, %345 : vector<8x128xf32>
    %347 = math.tanh %346 : vector<8x128xf32>
    %348 = arith.mulf %343, %347 : vector<8x128xf32>
    %349 = vector.extract_strided_slice %285 {offsets = [2, 0, 0], sizes = [1, 8, 512], strides = [1, 1, 1]} : vector<8x8x512xf32> to vector<1x8x512xf32>
    %350 = vector.shape_cast %349 : vector<1x8x512xf32> to vector<8x512xf32>
    %cst_94 = arith.constant dense<0.000000e+00> : vector<8x512xf32>
    %351 = tpu.matmul %348, %286, %cst_94 {dimension_numbers = #tpu.dot_dimension_numbers<[1], [0], [0], [1], [0, 0, 1, 1], [], []>} : vector<8x128xf32>, vector<128x512xf32>, vector<8x512xf32> -> vector<8x512xf32>
    %352 = arith.addf %350, %351 : vector<8x512xf32>
    %353 = vector.extract_strided_slice %352 {offsets = [0, 0], sizes = [8, 128], strides = [1, 1]} : vector<8x512xf32> to vector<8x128xf32>
    %354 = arith.negf %353 : vector<8x128xf32>
    %355 = math.exp %354 : vector<8x128xf32>
    %cst_95 = arith.constant 1.000000e+00 : f32
    %356 = vector.broadcast %cst_95 : f32 to vector<8x128xf32>
    %357 = arith.addf %356, %355 : vector<8x128xf32>
    %358 = arith.divf %356, %357 : vector<8x128xf32>
    %359 = vector.extract_strided_slice %352 {offsets = [0, 128], sizes = [8, 128], strides = [1, 1]} : vector<8x512xf32> to vector<8x128xf32>
    %360 = arith.negf %359 : vector<8x128xf32>
    %361 = math.exp %360 : vector<8x128xf32>
    %cst_96 = arith.constant 1.000000e+00 : f32
    %362 = vector.broadcast %cst_96 : f32 to vector<8x128xf32>
    %363 = arith.addf %362, %361 : vector<8x128xf32>
    %364 = arith.divf %362, %363 : vector<8x128xf32>
    %365 = vector.extract_strided_slice %352 {offsets = [0, 256], sizes = [8, 128], strides = [1, 1]} : vector<8x512xf32> to vector<8x128xf32>
    %366 = math.tanh %365 : vector<8x128xf32>
    %367 = vector.extract_strided_slice %352 {offsets = [0, 384], sizes = [8, 128], strides = [1, 1]} : vector<8x512xf32> to vector<8x128xf32>
    %368 = arith.negf %367 : vector<8x128xf32>
    %369 = math.exp %368 : vector<8x128xf32>
    %cst_97 = arith.constant 1.000000e+00 : f32
    %370 = vector.broadcast %cst_97 : f32 to vector<8x128xf32>
    %371 = arith.addf %370, %369 : vector<8x128xf32>
    %372 = arith.divf %370, %371 : vector<8x128xf32>
    %373 = arith.mulf %364, %346 : vector<8x128xf32>
    %374 = arith.mulf %358, %366 : vector<8x128xf32>
    %375 = arith.addf %373, %374 : vector<8x128xf32>
    %376 = math.tanh %375 : vector<8x128xf32>
    %377 = arith.mulf %372, %376 : vector<8x128xf32>
    %378 = vector.extract_strided_slice %285 {offsets = [3, 0, 0], sizes = [1, 8, 512], strides = [1, 1, 1]} : vector<8x8x512xf32> to vector<1x8x512xf32>
    %379 = vector.shape_cast %378 : vector<1x8x512xf32> to vector<8x512xf32>
    %cst_98 = arith.constant dense<0.000000e+00> : vector<8x512xf32>
    %380 = tpu.matmul %377, %286, %cst_98 {dimension_numbers = #tpu.dot_dimension_numbers<[1], [0], [0], [1], [0, 0, 1, 1], [], []>} : vector<8x128xf32>, vector<128x512xf32>, vector<8x512xf32> -> vector<8x512xf32>
    %381 = arith.addf %379, %380 : vector<8x512xf32>
    %382 = vector.extract_strided_slice %381 {offsets = [0, 0], sizes = [8, 128], strides = [1, 1]} : vector<8x512xf32> to vector<8x128xf32>
    %383 = arith.negf %382 : vector<8x128xf32>
    %384 = math.exp %383 : vector<8x128xf32>
    %cst_99 = arith.constant 1.000000e+00 : f32
    %385 = vector.broadcast %cst_99 : f32 to vector<8x128xf32>
    %386 = arith.addf %385, %384 : vector<8x128xf32>
    %387 = arith.divf %385, %386 : vector<8x128xf32>
    %388 = vector.extract_strided_slice %381 {offsets = [0, 128], sizes = [8, 128], strides = [1, 1]} : vector<8x512xf32> to vector<8x128xf32>
    %389 = arith.negf %388 : vector<8x128xf32>
    %390 = math.exp %389 : vector<8x128xf32>
    %cst_100 = arith.constant 1.000000e+00 : f32
    %391 = vector.broadcast %cst_100 : f32 to vector<8x128xf32>
    %392 = arith.addf %391, %390 : vector<8x128xf32>
    %393 = arith.divf %391, %392 : vector<8x128xf32>
    %394 = vector.extract_strided_slice %381 {offsets = [0, 256], sizes = [8, 128], strides = [1, 1]} : vector<8x512xf32> to vector<8x128xf32>
    %395 = math.tanh %394 : vector<8x128xf32>
    %396 = vector.extract_strided_slice %381 {offsets = [0, 384], sizes = [8, 128], strides = [1, 1]} : vector<8x512xf32> to vector<8x128xf32>
    %397 = arith.negf %396 : vector<8x128xf32>
    %398 = math.exp %397 : vector<8x128xf32>
    %cst_101 = arith.constant 1.000000e+00 : f32
    %399 = vector.broadcast %cst_101 : f32 to vector<8x128xf32>
    %400 = arith.addf %399, %398 : vector<8x128xf32>
    %401 = arith.divf %399, %400 : vector<8x128xf32>
    %402 = arith.mulf %393, %375 : vector<8x128xf32>
    %403 = arith.mulf %387, %395 : vector<8x128xf32>
    %404 = arith.addf %402, %403 : vector<8x128xf32>
    %405 = math.tanh %404 : vector<8x128xf32>
    %406 = arith.mulf %401, %405 : vector<8x128xf32>
    %407 = vector.extract_strided_slice %285 {offsets = [4, 0, 0], sizes = [1, 8, 512], strides = [1, 1, 1]} : vector<8x8x512xf32> to vector<1x8x512xf32>
    %408 = vector.shape_cast %407 : vector<1x8x512xf32> to vector<8x512xf32>
    %cst_102 = arith.constant dense<0.000000e+00> : vector<8x512xf32>
    %409 = tpu.matmul %406, %286, %cst_102 {dimension_numbers = #tpu.dot_dimension_numbers<[1], [0], [0], [1], [0, 0, 1, 1], [], []>} : vector<8x128xf32>, vector<128x512xf32>, vector<8x512xf32> -> vector<8x512xf32>
    %410 = arith.addf %408, %409 : vector<8x512xf32>
    %411 = vector.extract_strided_slice %410 {offsets = [0, 0], sizes = [8, 128], strides = [1, 1]} : vector<8x512xf32> to vector<8x128xf32>
    %412 = arith.negf %411 : vector<8x128xf32>
    %413 = math.exp %412 : vector<8x128xf32>
    %cst_103 = arith.constant 1.000000e+00 : f32
    %414 = vector.broadcast %cst_103 : f32 to vector<8x128xf32>
    %415 = arith.addf %414, %413 : vector<8x128xf32>
    %416 = arith.divf %414, %415 : vector<8x128xf32>
    %417 = vector.extract_strided_slice %410 {offsets = [0, 128], sizes = [8, 128], strides = [1, 1]} : vector<8x512xf32> to vector<8x128xf32>
    %418 = arith.negf %417 : vector<8x128xf32>
    %419 = math.exp %418 : vector<8x128xf32>
    %cst_104 = arith.constant 1.000000e+00 : f32
    %420 = vector.broadcast %cst_104 : f32 to vector<8x128xf32>
    %421 = arith.addf %420, %419 : vector<8x128xf32>
    %422 = arith.divf %420, %421 : vector<8x128xf32>
    %423 = vector.extract_strided_slice %410 {offsets = [0, 256], sizes = [8, 128], strides = [1, 1]} : vector<8x512xf32> to vector<8x128xf32>
    %424 = math.tanh %423 : vector<8x128xf32>
    %425 = vector.extract_strided_slice %410 {offsets = [0, 384], sizes = [8, 128], strides = [1, 1]} : vector<8x512xf32> to vector<8x128xf32>
    %426 = arith.negf %425 : vector<8x128xf32>
    %427 = math.exp %426 : vector<8x128xf32>
    %cst_105 = arith.constant 1.000000e+00 : f32
    %428 = vector.broadcast %cst_105 : f32 to vector<8x128xf32>
    %429 = arith.addf %428, %427 : vector<8x128xf32>
    %430 = arith.divf %428, %429 : vector<8x128xf32>
    %431 = arith.mulf %422, %404 : vector<8x128xf32>
    %432 = arith.mulf %416, %424 : vector<8x128xf32>
    %433 = arith.addf %431, %432 : vector<8x128xf32>
    %434 = math.tanh %433 : vector<8x128xf32>
    %435 = arith.mulf %430, %434 : vector<8x128xf32>
    %436 = vector.extract_strided_slice %285 {offsets = [5, 0, 0], sizes = [1, 8, 512], strides = [1, 1, 1]} : vector<8x8x512xf32> to vector<1x8x512xf32>
    %437 = vector.shape_cast %436 : vector<1x8x512xf32> to vector<8x512xf32>
    %cst_106 = arith.constant dense<0.000000e+00> : vector<8x512xf32>
    %438 = tpu.matmul %435, %286, %cst_106 {dimension_numbers = #tpu.dot_dimension_numbers<[1], [0], [0], [1], [0, 0, 1, 1], [], []>} : vector<8x128xf32>, vector<128x512xf32>, vector<8x512xf32> -> vector<8x512xf32>
    %439 = arith.addf %437, %438 : vector<8x512xf32>
    %440 = vector.extract_strided_slice %439 {offsets = [0, 0], sizes = [8, 128], strides = [1, 1]} : vector<8x512xf32> to vector<8x128xf32>
    %441 = arith.negf %440 : vector<8x128xf32>
    %442 = math.exp %441 : vector<8x128xf32>
    %cst_107 = arith.constant 1.000000e+00 : f32
    %443 = vector.broadcast %cst_107 : f32 to vector<8x128xf32>
    %444 = arith.addf %443, %442 : vector<8x128xf32>
    %445 = arith.divf %443, %444 : vector<8x128xf32>
    %446 = vector.extract_strided_slice %439 {offsets = [0, 128], sizes = [8, 128], strides = [1, 1]} : vector<8x512xf32> to vector<8x128xf32>
    %447 = arith.negf %446 : vector<8x128xf32>
    %448 = math.exp %447 : vector<8x128xf32>
    %cst_108 = arith.constant 1.000000e+00 : f32
    %449 = vector.broadcast %cst_108 : f32 to vector<8x128xf32>
    %450 = arith.addf %449, %448 : vector<8x128xf32>
    %451 = arith.divf %449, %450 : vector<8x128xf32>
    %452 = vector.extract_strided_slice %439 {offsets = [0, 256], sizes = [8, 128], strides = [1, 1]} : vector<8x512xf32> to vector<8x128xf32>
    %453 = math.tanh %452 : vector<8x128xf32>
    %454 = vector.extract_strided_slice %439 {offsets = [0, 384], sizes = [8, 128], strides = [1, 1]} : vector<8x512xf32> to vector<8x128xf32>
    %455 = arith.negf %454 : vector<8x128xf32>
    %456 = math.exp %455 : vector<8x128xf32>
    %cst_109 = arith.constant 1.000000e+00 : f32
    %457 = vector.broadcast %cst_109 : f32 to vector<8x128xf32>
    %458 = arith.addf %457, %456 : vector<8x128xf32>
    %459 = arith.divf %457, %458 : vector<8x128xf32>
    %460 = arith.mulf %451, %433 : vector<8x128xf32>
    %461 = arith.mulf %445, %453 : vector<8x128xf32>
    %462 = arith.addf %460, %461 : vector<8x128xf32>
    %463 = math.tanh %462 : vector<8x128xf32>
    %464 = arith.mulf %459, %463 : vector<8x128xf32>
    %465 = vector.extract_strided_slice %285 {offsets = [6, 0, 0], sizes = [1, 8, 512], strides = [1, 1, 1]} : vector<8x8x512xf32> to vector<1x8x512xf32>
    %466 = vector.shape_cast %465 : vector<1x8x512xf32> to vector<8x512xf32>
    %cst_110 = arith.constant dense<0.000000e+00> : vector<8x512xf32>
    %467 = tpu.matmul %464, %286, %cst_110 {dimension_numbers = #tpu.dot_dimension_numbers<[1], [0], [0], [1], [0, 0, 1, 1], [], []>} : vector<8x128xf32>, vector<128x512xf32>, vector<8x512xf32> -> vector<8x512xf32>
    %468 = arith.addf %466, %467 : vector<8x512xf32>
    %469 = vector.extract_strided_slice %468 {offsets = [0, 0], sizes = [8, 128], strides = [1, 1]} : vector<8x512xf32> to vector<8x128xf32>
    %470 = arith.negf %469 : vector<8x128xf32>
    %471 = math.exp %470 : vector<8x128xf32>
    %cst_111 = arith.constant 1.000000e+00 : f32
    %472 = vector.broadcast %cst_111 : f32 to vector<8x128xf32>
    %473 = arith.addf %472, %471 : vector<8x128xf32>
    %474 = arith.divf %472, %473 : vector<8x128xf32>
    %475 = vector.extract_strided_slice %468 {offsets = [0, 128], sizes = [8, 128], strides = [1, 1]} : vector<8x512xf32> to vector<8x128xf32>
    %476 = arith.negf %475 : vector<8x128xf32>
    %477 = math.exp %476 : vector<8x128xf32>
    %cst_112 = arith.constant 1.000000e+00 : f32
    %478 = vector.broadcast %cst_112 : f32 to vector<8x128xf32>
    %479 = arith.addf %478, %477 : vector<8x128xf32>
    %480 = arith.divf %478, %479 : vector<8x128xf32>
    %481 = vector.extract_strided_slice %468 {offsets = [0, 256], sizes = [8, 128], strides = [1, 1]} : vector<8x512xf32> to vector<8x128xf32>
    %482 = math.tanh %481 : vector<8x128xf32>
    %483 = vector.extract_strided_slice %468 {offsets = [0, 384], sizes = [8, 128], strides = [1, 1]} : vector<8x512xf32> to vector<8x128xf32>
    %484 = arith.negf %483 : vector<8x128xf32>
    %485 = math.exp %484 : vector<8x128xf32>
    %cst_113 = arith.constant 1.000000e+00 : f32
    %486 = vector.broadcast %cst_113 : f32 to vector<8x128xf32>
    %487 = arith.addf %486, %485 : vector<8x128xf32>
    %488 = arith.divf %486, %487 : vector<8x128xf32>
    %489 = arith.mulf %480, %462 : vector<8x128xf32>
    %490 = arith.mulf %474, %482 : vector<8x128xf32>
    %491 = arith.addf %489, %490 : vector<8x128xf32>
    %492 = math.tanh %491 : vector<8x128xf32>
    %493 = arith.mulf %488, %492 : vector<8x128xf32>
    %494 = vector.extract_strided_slice %285 {offsets = [7, 0, 0], sizes = [1, 8, 512], strides = [1, 1, 1]} : vector<8x8x512xf32> to vector<1x8x512xf32>
    %495 = vector.shape_cast %494 : vector<1x8x512xf32> to vector<8x512xf32>
    %cst_114 = arith.constant dense<0.000000e+00> : vector<8x512xf32>
    %496 = tpu.matmul %493, %286, %cst_114 {dimension_numbers = #tpu.dot_dimension_numbers<[1], [0], [0], [1], [0, 0, 1, 1], [], []>} : vector<8x128xf32>, vector<128x512xf32>, vector<8x512xf32> -> vector<8x512xf32>
    %497 = arith.addf %495, %496 : vector<8x512xf32>
    %498 = vector.extract_strided_slice %497 {offsets = [0, 0], sizes = [8, 128], strides = [1, 1]} : vector<8x512xf32> to vector<8x128xf32>
    %499 = arith.negf %498 : vector<8x128xf32>
    %500 = math.exp %499 : vector<8x128xf32>
    %cst_115 = arith.constant 1.000000e+00 : f32
    %501 = vector.broadcast %cst_115 : f32 to vector<8x128xf32>
    %502 = arith.addf %501, %500 : vector<8x128xf32>
    %503 = arith.divf %501, %502 : vector<8x128xf32>
    %504 = vector.extract_strided_slice %497 {offsets = [0, 128], sizes = [8, 128], strides = [1, 1]} : vector<8x512xf32> to vector<8x128xf32>
    %505 = arith.negf %504 : vector<8x128xf32>
    %506 = math.exp %505 : vector<8x128xf32>
    %cst_116 = arith.constant 1.000000e+00 : f32
    %507 = vector.broadcast %cst_116 : f32 to vector<8x128xf32>
    %508 = arith.addf %507, %506 : vector<8x128xf32>
    %509 = arith.divf %507, %508 : vector<8x128xf32>
    %510 = vector.extract_strided_slice %497 {offsets = [0, 256], sizes = [8, 128], strides = [1, 1]} : vector<8x512xf32> to vector<8x128xf32>
    %511 = math.tanh %510 : vector<8x128xf32>
    %512 = vector.extract_strided_slice %497 {offsets = [0, 384], sizes = [8, 128], strides = [1, 1]} : vector<8x512xf32> to vector<8x128xf32>
    %513 = arith.negf %512 : vector<8x128xf32>
    %514 = math.exp %513 : vector<8x128xf32>
    %cst_117 = arith.constant 1.000000e+00 : f32
    %515 = vector.broadcast %cst_117 : f32 to vector<8x128xf32>
    %516 = arith.addf %515, %514 : vector<8x128xf32>
    %517 = arith.divf %515, %516 : vector<8x128xf32>
    %518 = arith.mulf %509, %491 : vector<8x128xf32>
    %519 = arith.mulf %503, %511 : vector<8x128xf32>
    %520 = arith.addf %518, %519 : vector<8x128xf32>
    %521 = math.tanh %520 : vector<8x128xf32>
    %522 = arith.mulf %517, %521 : vector<8x128xf32>
    %c1_118 = arith.constant 1 : index
    %c0_119 = arith.constant 0 : index
    %c0_120 = arith.constant 0 : index
    %523 = vector.load %arg15[%c1_118, %c0_119, %c0_120] : memref<2x8x128xf32, #tpu.memory_space<vmem>>, vector<1x8x128xf32>
    %524 = vector.shape_cast %523 : vector<1x8x128xf32> to vector<8x128xf32>
    %525 = vector.shape_cast %522 : vector<8x128xf32> to vector<1x8x128xf32>
    tpu.vector_store %arg15[%c1_118, %c0_119, %c0_120], %525 {strides = array<i32>} : memref<2x8x128xf32, #tpu.memory_space<vmem>>, vector<1x8x128xf32>,
    %c1_121 = arith.constant 1 : index
    %c0_122 = arith.constant 0 : index
    %c0_123 = arith.constant 0 : index
    %526 = vector.load %arg16[%c1_121, %c0_122, %c0_123] : memref<2x8x128xf32, #tpu.memory_space<vmem>>, vector<1x8x128xf32>
    %527 = vector.shape_cast %526 : vector<1x8x128xf32> to vector<8x128xf32>
    %528 = vector.shape_cast %520 : vector<8x128xf32> to vector<1x8x128xf32>
    tpu.vector_store %arg16[%c1_121, %c0_122, %c0_123], %528 {strides = array<i32>} : memref<2x8x128xf32, #tpu.memory_space<vmem>>, vector<1x8x128xf32>,
    %c0_i32_124 = arith.constant 0 : i32
    %529 = arith.cmpi eq, %arg0, %c0_i32_124 : i32
    %530 = arith.extui %529 : i1 to i32
    %c0_i32_125 = arith.constant 0 : i32
    %531 = arith.cmpi ne, %530, %c0_i32_125 : i32
    scf.if %531 {
      %c0_126 = arith.constant 0 : index
      %c0_127 = arith.constant 0 : index
      %c0_128 = arith.constant 0 : index
      %532 = vector.load %arg15[%c0_126, %c0_127, %c0_128] : memref<2x8x128xf32, #tpu.memory_space<vmem>>, vector<2x8x128xf32>
      %c0_129 = arith.constant 0 : index
      %c0_130 = arith.constant 0 : index
      %c0_131 = arith.constant 0 : index
      %533 = vector.load %arg12[%c0_129, %c0_130, %c0_131] : memref<2x8x128xf32, #tpu.memory_space<vmem>>, vector<2x8x128xf32>
      tpu.vector_store %arg12[%c0_129, %c0_130, %c0_131], %532 {strides = array<i32>} : memref<2x8x128xf32, #tpu.memory_space<vmem>>, vector<2x8x128xf32>,
      %c0_132 = arith.constant 0 : index
      %c0_133 = arith.constant 0 : index
      %c0_134 = arith.constant 0 : index
      %534 = vector.load %arg16[%c0_132, %c0_133, %c0_134] : memref<2x8x128xf32, #tpu.memory_space<vmem>>, vector<2x8x128xf32>
      %c0_135 = arith.constant 0 : index
      %c0_136 = arith.constant 0 : index
      %c0_137 = arith.constant 0 : index
      %535 = vector.load %arg13[%c0_135, %c0_136, %c0_137] : memref<2x8x128xf32, #tpu.memory_space<vmem>>, vector<2x8x128xf32>
      tpu.vector_store %arg13[%c0_135, %c0_136, %c0_137], %534 {strides = array<i32>} : memref<2x8x128xf32, #tpu.memory_space<vmem>>, vector<2x8x128xf32>,
      %c1_138 = arith.constant 1 : index
      %c0_139 = arith.constant 0 : index
      %c0_140 = arith.constant 0 : index
      %536 = vector.load %arg15[%c1_138, %c0_139, %c0_140] : memref<2x8x128xf32, #tpu.memory_space<vmem>>, vector<1x8x128xf32>
      %537 = vector.shape_cast %536 : vector<1x8x128xf32> to vector<8x128xf32>
      %c0_141 = arith.constant 0 : index
      %c0_142 = arith.constant 0 : index
      %538 = vector.load %arg10[%c0_141, %c0_142] : memref<128x128xf32, #tpu.memory_space<vmem>>, vector<128x128xf32>
      %cst_143 = arith.constant dense<0.000000e+00> : vector<8x128xf32>
      %539 = tpu.matmul %537, %538, %cst_143 {dimension_numbers = #tpu.dot_dimension_numbers<[1], [0], [0], [1], [0, 0, 1, 1], [], []>} : vector<8x128xf32>, vector<128x128xf32>, vector<8x128xf32> -> vector<8x128xf32>
      %c0_144 = arith.constant 0 : index
      %c0_145 = arith.constant 0 : index
      %540 = vector.load %arg11[%c0_144, %c0_145] : memref<1x128xf32, #tpu.memory_space<vmem>>, vector<1x128xf32>
      %541 = vector.broadcast %540 : vector<1x128xf32> to vector<8x128xf32>
      %542 = arith.addf %539, %541 : vector<8x128xf32>
      %c0_146 = arith.constant 0 : index
      %c0_147 = arith.constant 0 : index
      %543 = vector.load %arg14[%c0_146, %c0_147] : memref<8x128xf32, #tpu.memory_space<vmem>>, vector<8x128xf32>
      tpu.vector_store %arg14[%c0_146, %c0_147], %542 {strides = array<i32>} : memref<8x128xf32, #tpu.memory_space<vmem>>, vector<8x128xf32>,
    } else {
    }
    return
  }
  func.func @transform_0(%arg0: i32) -> (i32, i32, i32) {
    %c0_i32 = arith.constant 0 : i32
    %c0_i32_0 = arith.constant 0 : i32
    %c0_i32_1 = arith.constant 0 : i32
    return %arg0, %c0_i32, %c0_i32_0 : i32, i32, i32
  }
  func.func @transform_1(%arg0: i32) -> (i32, i32, i32) {
    %c0_i32 = arith.constant 0 : i32
    %c0_i32_0 = arith.constant 0 : i32
    %c0_i32_1 = arith.constant 0 : i32
    %c0_i32_2 = arith.constant 0 : i32
    return %c0_i32, %c0_i32_0, %c0_i32_1 : i32, i32, i32
  }
  func.func @transform_2(%arg0: i32) -> (i32, i32, i32) {
    %c0_i32 = arith.constant 0 : i32
    %c0_i32_0 = arith.constant 0 : i32
    %c0_i32_1 = arith.constant 0 : i32
    %c0_i32_2 = arith.constant 0 : i32
    return %c0_i32, %c0_i32_0, %c0_i32_1 : i32, i32, i32
  }
  func.func @transform_3(%arg0: i32) -> (i32, i32) {
    %c0_i32 = arith.constant 0 : i32
    %c0_i32_0 = arith.constant 0 : i32
    %c0_i32_1 = arith.constant 0 : i32
    return %c0_i32, %c0_i32_0 : i32, i32
  }
  func.func @transform_4(%arg0: i32) -> (i32, i32) {
    %c0_i32 = arith.constant 0 : i32
    %c0_i32_0 = arith.constant 0 : i32
    %c0_i32_1 = arith.constant 0 : i32
    return %c0_i32, %c0_i32_0 : i32, i32
  }
  func.func @transform_5(%arg0: i32) -> (i32, i32) {
    %c0_i32 = arith.constant 0 : i32
    %c0_i32_0 = arith.constant 0 : i32
    %c0_i32_1 = arith.constant 0 : i32
    return %c0_i32, %c0_i32_0 : i32, i32
  }
  func.func @transform_6(%arg0: i32) -> (i32, i32) {
    %c0_i32 = arith.constant 0 : i32
    %c0_i32_0 = arith.constant 0 : i32
    %c0_i32_1 = arith.constant 0 : i32
    return %c0_i32, %c0_i32_0 : i32, i32
  }
  func.func @transform_7(%arg0: i32) -> (i32, i32) {
    %c0_i32 = arith.constant 0 : i32
    %c0_i32_0 = arith.constant 0 : i32
    %c0_i32_1 = arith.constant 0 : i32
    return %c0_i32, %c0_i32_0 : i32, i32
  }
  func.func @transform_8(%arg0: i32) -> (i32, i32) {
    %c0_i32 = arith.constant 0 : i32
    %c0_i32_0 = arith.constant 0 : i32
    %c0_i32_1 = arith.constant 0 : i32
    return %c0_i32, %c0_i32_0 : i32, i32
  }
  func.func @transform_9(%arg0: i32) -> (i32, i32) {
    %c0_i32 = arith.constant 0 : i32
    %c0_i32_0 = arith.constant 0 : i32
    %c0_i32_1 = arith.constant 0 : i32
    return %c0_i32, %c0_i32_0 : i32, i32
  }
  func.func @transform_10(%arg0: i32) -> (i32, i32) {
    %c0_i32 = arith.constant 0 : i32
    %c0_i32_0 = arith.constant 0 : i32
    %c0_i32_1 = arith.constant 0 : i32
    return %c0_i32, %c0_i32_0 : i32, i32
  }
  func.func @transform_11(%arg0: i32) -> (i32, i32, i32) {
    %c0_i32 = arith.constant 0 : i32
    %c0_i32_0 = arith.constant 0 : i32
    %c0_i32_1 = arith.constant 0 : i32
    %c0_i32_2 = arith.constant 0 : i32
    return %c0_i32, %c0_i32_0, %c0_i32_1 : i32, i32, i32
  }
  func.func @transform_12(%arg0: i32) -> (i32, i32, i32) {
    %c0_i32 = arith.constant 0 : i32
    %c0_i32_0 = arith.constant 0 : i32
    %c0_i32_1 = arith.constant 0 : i32
    %c0_i32_2 = arith.constant 0 : i32
    return %c0_i32, %c0_i32_0, %c0_i32_1 : i32, i32, i32
  }
  func.func @transform_13(%arg0: i32) -> (i32, i32) {
    %c0_i32 = arith.constant 0 : i32
    %c0_i32_0 = arith.constant 0 : i32
    %c0_i32_1 = arith.constant 0 : i32
    return %c0_i32, %c0_i32_0 : i32, i32
  }
}

</mosaic_0001>

<bundles_post_ra>
// kernel: _forward.1
= control target key start
LH: loop header
LB: loop body
LE: loop exit
PB: predicated region body
PF: predicated region fallthrough
CT: control target
= control target key end

     0   :  { %19 = vsyncpa [#allocation6], 0  ;;  %s6617_s0 = inlined_call_operand.vmem [shape: f32[8,8,16], index: 0, kind: input, shape index: {}]   ;;  %s6618_s1 = inlined_call_operand.vmem [shape: f32[2,8,128], index: 1, kind: input, shape index: {}]   ;;  %s6619_s2 = inlined_call_operand.vmem [shape: f32[2,8,128], index: 2, kind: input, shape index: {}]   ;;  %s6620_s3 = inlined_call_operand.hbm [shape: f32[16,512], index: 3, kind: input, shape index: {}]   ;;  %s6621_s4 = inlined_call_operand.hbm [shape: f32[128,512], index: 4, kind: input, shape index: {}]   ;;  %s6622_s5 = inlined_call_operand.vmem [shape: f32[1,512], index: 5, kind: input, shape index: {}]   ;;  %s6623_s6 = inlined_call_operand.hbm [shape: f32[128,512], index: 6, kind: input, shape index: {}]   ;;  %s6624_s7 = inlined_call_operand.hbm [shape: f32[128,512], index: 7, kind: input, shape index: {}]   ;;  %s6625_s8 = inlined_call_operand.vmem [shape: f32[1,512], index: 8, kind: input, shape index: {}]   ;;  %s6626_s9 = inlined_call_operand.vmem [shape: f32[128,128], index: 9, kind: input, shape index: {}]   ;;  %s6627_s10 = inlined_call_operand.vmem [shape: f32[1,128], index: 10, kind: input, shape index: {}]   ;;  %s6628_s11 = inlined_call_operand.vmem [shape: f32[2,8,128], index: 11, kind: output, shape index: {0}]   ;;  %s6629_s12 = inlined_call_operand.vmem [shape: f32[2,8,128], index: 12, kind: output, shape index: {1}]   ;;  %s6630_s13 = inlined_call_operand.vmem [shape: f32[8,128], index: 13, kind: output, shape index: {2}]  }
   0x1   :  { %20 = vsyncpa [#allocation8], 0 }
   0x2   :  { %21 = vsyncpa [#allocation11], 0  ;;  %s5435_s25 = smov [#allocation7]   ;;  %s5436_s27 = smov [#allocation5]  }
   0x3   :  { %s45_s26 = sshll.u32 %s5435_s25, 4  ;;  %s33_s28 = sshll.u32 %s5436_s27, 4  ;;  %s46_s26 = int_to_ptr.vmem [resolvable:$true] %s45_s26  ;;  %s5514_s28 = int_to_ptr.vmem [resolvable:$true] %s33_s28 }
   0x4   :  { %s5341_s14 = scalar_lea.hbm %s6621_s4, 8192 }
   0x5   :  { %p5342_p0 = scmp.ne.s32.totalorder %s6621_s4, %s5341_s14  ;;  %p5345_p1 = scmp.lt.u32.totalorder %s5341_s14, %s6621_s4 }
   0x7   :  { %p5347_p2 = pnand %p5345_p1, %p5342_p0 }
   0x9   :  { %5350 = shalt.err (!%p5347_p2)
}
   0xa   :  { %s5351_s19 = scalar_lea.vmem %s46_s26, 8192  ;;  %p5356_p4 = scmp.lt.s32.totalorder %s46_s26, %s46_s26 }
   0xb   :  { %p5352_p3 = scmp.ne.s32.totalorder %s46_s26, %s5351_s19  ;;  %p5357_p5 = scmp.lt.s32.totalorder %s5351_s19, %s5351_s19 }
   0xd   :  { %p5358_p6 = por %p5357_p5, %p5356_p4 }
   0xf   :  { %p5359_p7 = pnand %p5358_p6, %p5352_p3 }
  0x11   :  { %5362 = shalt.err (!%p5359_p7)
}
  0x12   :  { %s5437_s20 = smov 512   ;;  %s5438_s21 = smov 32  }
  0x13   :  { %51 = dma.hbm_to_vmem [thread:$0]  %s6621_s4, 8192, %s46_s26, [#allocation8], %s5437_s20, %s5437_s20, %s5438_s21  }
  0x14   :  { %s5363_s27 = scalar_lea.hbm %s6620_s3, 1024 }
  0x15   :  { %p5364_p8 = scmp.ne.s32.totalorder %s6620_s3, %s5363_s27  ;;  %p5367_p9 = scmp.lt.u32.totalorder %s5363_s27, %s6620_s3 }
  0x17   :  { %p5369_p10 = pnand %p5367_p9, %p5364_p8 }
  0x19   :  { %5372 = shalt.err (!%p5369_p10)
}
  0x1a   :  { %s5373_s16 = scalar_lea.vmem %s5514_s28, 1024  ;;  %p5378_p12 = scmp.lt.s32.totalorder %s5514_s28, %s5514_s28 }
  0x1b   :  { %p5374_p11 = scmp.ne.s32.totalorder %s5514_s28, %s5373_s16  ;;  %p5379_p13 = scmp.lt.s32.totalorder %s5373_s16, %s5373_s16 }
  0x1d   :  { %p5380_p0 = por %p5379_p13, %p5378_p12 }
  0x1f   :  { %p5381_p1 = pnand %p5380_p0, %p5374_p11 }
  0x21   :  { %5384 = shalt.err (!%p5381_p1)
}
  0x22   :  { %39 = dma.hbm_to_vmem [thread:$0]  %s6620_s3, 1024, %s5514_s28, [#allocation6], %s5437_s20, %s5437_s20, %s5438_s21  }
  0x23   :  { %s5439_s17 = smov [#allocation9]   ;;  %s5440_s19 = smov [#allocation10]  }
  0x24   :  { %s59_s18 = sshll.u32 %s5439_s17, 4  ;;  %s71_s22 = sshll.u32 %s5440_s19, 4  ;;  %s60_s18 = int_to_ptr.vmem [resolvable:$true] %s59_s18  ;;  %s5551_s22 = int_to_ptr.vmem [resolvable:$true] %s71_s22 }
  0x25   :  { %s5385_s25 = scalar_lea.hbm %s6623_s6, 8192 }
  0x26   :  { %p5386_p2 = scmp.ne.s32.totalorder %s6623_s6, %s5385_s25  ;;  %p5389_p3 = scmp.lt.u32.totalorder %s5385_s25, %s6623_s6 }
  0x28   :  { %p5391_p4 = pnand %p5389_p3, %p5386_p2 }
  0x2a   :  { %5394 = shalt.err (!%p5391_p4)
}
  0x2b   :  { %s5395_s3 = scalar_lea.vmem %s60_s18, 8192  ;;  %p5400_p6 = scmp.lt.s32.totalorder %s60_s18, %s60_s18 }
  0x2c   :  { %p5396_p5 = scmp.ne.s32.totalorder %s60_s18, %s5395_s3  ;;  %p5401_p7 = scmp.lt.s32.totalorder %s5395_s3, %s5395_s3 }
  0x2e   :  { %p5402_p8 = por %p5401_p7, %p5400_p6 }
  0x30   :  { %p5403_p9 = pnand %p5402_p8, %p5396_p5 }
  0x32   :  { %5406 = shalt.err (!%p5403_p9)
}
  0x33   :  { %65 = dma.hbm_to_vmem [thread:$0]  %s6623_s6, 8192, %s60_s18, [#allocation8], %s5437_s20, %s5437_s20, %s5438_s21  }
  0x34   :  { %s5407_s26 = scalar_lea.hbm %s6624_s7, 8192 }
  0x35   :  { %p5408_p10 = scmp.ne.s32.totalorder %s6624_s7, %s5407_s26  ;;  %p5411_p11 = scmp.lt.u32.totalorder %s5407_s26, %s6624_s7 }
  0x37   :  { %p5413_p12 = pnand %p5411_p11, %p5408_p10 }
  0x39   :  { %5416 = shalt.err (!%p5413_p12)
}
  0x3a   :  { %s5417_s25 = scalar_lea.vmem %s5551_s22, 8192  ;;  %p5422_p0 = scmp.lt.s32.totalorder %s5551_s22, %s5551_s22 }
  0x3b   :  { %p5418_p13 = scmp.ne.s32.totalorder %s5551_s22, %s5417_s25  ;;  %p5423_p1 = scmp.lt.s32.totalorder %s5417_s25, %s5417_s25 }
  0x3d   :  { %p5424_p2 = por %p5423_p1, %p5422_p0 }
  0x3f   :  { %p5425_p3 = pnand %p5424_p2, %p5418_p13 }
  0x41   :  { %5428 = shalt.err (!%p5425_p3)
}
  0x42   :  { %77 = dma.hbm_to_vmem [thread:$0]  %s6624_s7, 8192, %s5551_s22, [#allocation11], %s5437_s20, %s5437_s20, %s5438_s21  }
  0x43   :  { %5429 = dma.done.wait [#allocation6], 1024  }
  0x44   :  { %5430 = vsyncadd [#allocation6], 4294966272 }
  0x45   :  { %5431 = dma.done.wait [#allocation8], 16384  }
  0x46   :  { %5432 = vsyncadd [#allocation8], 4294950912 }
  0x47   :  { %5433 = dma.done.wait [#allocation11], 8192  }
  0x48   :  { %5434 = vsyncadd [#allocation11], 4294959104  ;;  %v5441_v0 = vmov 0.0   ;;  %v117_v1 = vld [vmem:[#allocation5 + $0x8] sm:$0xff]  ;;  %v119_v3 = vld [vmem:[#allocation5 + $0x18] sm:$0xff]  ;;  %vm146_vm0 = vcmask 130048  }
  0x49   :  { %235 = vmatprep.mubr.f32.mxu0 %v5441_v0  ;;  %348 = vmatprep.mubr.f32.mxu1 %v5441_v0  ;;  %v121_v2 = vld [vmem:[#allocation5 + $0x28] sm:$0xff]  ;;  %v123_v5 = vld [vmem:[#allocation5 + $0x38] sm:$0xff]  ;;  %v116_v6 = vld [vmem:[#allocation5] sm:$0xff]  ;;  %vm5443_vm1 = vmmov 0  }
  0x4a   :  { %v3828_v4 = vpack.c.bf16 %v121_v2, %v117_v1  ;;  %v120_v7 = vld [vmem:[#allocation5 + $0x20] sm:$0xff]  ;;  %v3832_v8 = vpack.c.bf16 %v123_v5, %v119_v3  ;;  %v118_v10 = vld [vmem:[#allocation5 + $0x10] sm:$0xff]  ;;  %v398_v14 = vld [vmem:[#allocation7 + $0x8] sm:$0xff] }
  0x4b   :  { %v3830_v9 = vpack.c.bf16 %v120_v7, %v116_v6  ;;  %v122_v11 = vld [vmem:[#allocation5 + $0x30] sm:$0xff]  ;;  %v108_v12 = vld [vmem:[%s6617_s0] sm:$0xff]  ;;  %v402_v15 = vld [vmem:[#allocation7 + $0x28] sm:$0xff] }
  0x4c   :  { %3829 = vmatprep.subr.bf16.mxu0 %v3828_v4  ;;  %v3834_v13 = vpack.c.bf16 %v122_v11, %v118_v10  ;;  %v400_v16 = vld [vmem:[#allocation7 + $0x18] sm:$0xff]  ;;  %3833 = vmatprep.subr.bf16.mxu1 %v3832_v8  ;;  %v5593_v17 = vpack.c.bf16 %v402_v15, %v398_v14  ;;  %v397_v19 = vld [vmem:[#allocation7] sm:$0xff]  ;;  %v399_v23 = vld [vmem:[#allocation7 + $0x10] sm:$0xff] }
  0x4d   :  { %3831 = vmatpush1.bf16.msra.mxu0 %v3830_v9  ;;  %v404_v18 = vld [vmem:[#allocation7 + $0x38] sm:$0xff]  ;;  %v401_v20 = vld [vmem:[#allocation7 + $0x20] sm:$0xff]  ;;  %v403_v24 = vld [vmem:[#allocation7 + $0x30] sm:$0xff] }
  0x4e   :  { %3835 = vmatpush1.bf16.msra.mxu1 %v3834_v13  ;;  %v5595_v21 = vpack.c.bf16 %v404_v18, %v400_v16  ;;  %v5597_v22 = vpack.c.bf16 %v401_v20, %v397_v19  ;;  %3837 = vmatprep.subr.bf16.mxu0 %v5593_v17  ;;  %v5600_v25 = vpack.c.bf16 %v403_v24, %v399_v23  ;;  %v406_v26 = vld [vmem:[#allocation7 + $0x48] sm:$0xff]  ;;  %v408_v28 = vld [vmem:[#allocation7 + $0x58] sm:$0xff]  ;;  %v405_v31 = vld [vmem:[#allocation7 + $0x40] sm:$0xff] }
  0x4f   :  { %v410_v27 = vld [vmem:[#allocation7 + $0x68] sm:$0xff]  ;;  %v412_v30 = vld [vmem:[#allocation7 + $0x78] sm:$0xff]  ;;  %v409_v32 = vld [vmem:[#allocation7 + $0x60] sm:$0xff] }
  0x50   :  { %3711 = vmatmul.mubr.msk.f32.vlgmr.msra.gmra.mrb[0].mxu0 %vm146_vm0, %v108_v12  ;;  %3869 = vmatprep.subr.bf16.mxu1 %v5595_v21  ;;  %v5604_v29 = vpack.c.bf16 %v410_v27, %v406_v26  ;;  %v109_v33 = vld [vmem:[%s6617_s0 + $0x8] sm:$0xff]  ;;  %v5611_v34 = vpack.c.bf16 %v412_v30, %v408_v28  ;;  %v5613_v35 = vpack.c.bf16 %v409_v32, %v405_v31  ;;  %v407_v36 = vld [vmem:[#allocation7 + $0x50] sm:$0xff]  ;;  %v416_v41 = vld [vmem:[#allocation7 + $0x98] sm:$0xff] }
  0x51   :  { %3719 = vmatmul.mubr.msk.f32.vlgmr.msra.gmra.mrb[0].mxu1 %vm146_vm0, %v108_v12  ;;  %3839 = vmatpush1.bf16.msra.mxu0 %v5597_v22  ;;  %v411_v37 = vld [vmem:[#allocation7 + $0x70] sm:$0xff]  ;;  %v414_v39 = vld [vmem:[#allocation7 + $0x88] sm:$0xff]  ;;  %v420_v43 = vld [vmem:[#allocation7 + $0xb8] sm:$0xff] }
  0x52   :  { %3871 = vmatpush1.bf16.msra.mxu1 %v5600_v25  ;;  %241 = vmatprep.mubr.f32.mxu0 %v5441_v0  ;;  %v5617_v38 = vpack.c.bf16 %v411_v37, %v407_v36  ;;  %v418_v40 = vld [vmem:[#allocation7 + $0xa8] sm:$0xff]  ;;  %v413_v44 = vld [vmem:[#allocation7 + $0x80] sm:$0xff]  ;;  %v110_v46 = vld [vmem:[%s6617_s0 + $0x10] sm:$0xff]  ;;  %v5628_v47 = vpack.c.bf16 %v420_v43, %v416_v41 }
  0x53   :  { %354 = vmatprep.mubr.f32.mxu1 %v5441_v0  ;;  %3841 = vmatprep.subr.bf16.mxu0 %v5604_v29  ;;  %v5621_v42 = vpack.c.bf16 %v418_v40, %v414_v39  ;;  %v417_v45 = vld [vmem:[#allocation7 + $0xa0] sm:$0xff]  ;;  %v415_v48 = vld [vmem:[#allocation7 + $0x90] sm:$0xff]  ;;  %v422_v51 = vld [vmem:[#allocation7 + $0xc8] sm:$0xff] }
  0x54   :  { %3712 = vmatmul.mubr.msk.f32.gmra.mrb[2].mxu0 %vm146_vm0, %v109_v33  ;;  %3873 = vmatprep.subr.bf16.mxu1 %v5611_v34  ;;  %v419_v49 = vld [vmem:[#allocation7 + $0xb0] sm:$0xff]  ;;  %v5632_v50 = vpack.c.bf16 %v417_v45, %v413_v44  ;;  %v426_v52 = vld [vmem:[#allocation7 + $0xe8] sm:$0xff]  ;;  %v424_v53 = vld [vmem:[#allocation7 + $0xd8] sm:$0xff] }
  0x55   :  { %3720 = vmatmul.mubr.msk.f32.gmra.mrb[2].mxu1 %vm146_vm0, %v109_v33  ;;  %3843 = vmatpush1.bf16.msra.mxu0 %v5613_v35  ;;  %v5636_v54 = vpack.c.bf16 %v419_v49, %v415_v48  ;;  %v428_v55 = vld [vmem:[#allocation7 + $0xf8] sm:$0xff]  ;;  %v421_v56 = vld [vmem:[#allocation7 + $0xc0] sm:$0xff]  ;;  %v5640_v58 = vpack.c.bf16 %v426_v52, %v422_v51  ;;  %v423_v59 = vld [vmem:[#allocation7 + $0xd0] sm:$0xff] }
  0x56   :  { %3875 = vmatpush1.bf16.msra.mxu1 %v5617_v38  ;;  %247 = vmatprep.mubr.f32.mxu0 %v5441_v0  ;;  %v425_v57 = vld [vmem:[#allocation7 + $0xe0] sm:$0xff]  ;;  %v427_v60 = vld [vmem:[#allocation7 + $0xf0] sm:$0xff]  ;;  %v5644_v61 = vpack.c.bf16 %v428_v55, %v424_v53  ;;  %v430_v62 = vld [vmem:[#allocation7 + $0x108] sm:$0xff] }
  0x57   :  { %360 = vmatprep.mubr.f32.mxu1 %v5441_v0  ;;  %3845 = vmatprep.subr.bf16.mxu0 %v5621_v42  ;;  %v434_v63 = vld [vmem:[#allocation7 + $0x128] sm:$0xff]  ;;  %v111_v1 = vld [vmem:[%s6617_s0 + $0x18] sm:$0xff]  ;;  %v5651_v2 = vpack.c.bf16 %v425_v57, %v421_v56  ;;  %v5655_v5 = vpack.c.bf16 %v427_v60, %v423_v59  ;;  %v429_v6 = vld [vmem:[#allocation7 + $0x100] sm:$0xff] }
  0x58   :  { %3713 = vmatmul.mubr.msk.f32.gmra.mrb[4].mxu0 %vm146_vm0, %v110_v46  ;;  %3877 = vmatprep.subr.bf16.mxu1 %v5628_v47  ;;  %v432_v3 = vld [vmem:[#allocation7 + $0x118] sm:$0xff]  ;;  %v433_v7 = vld [vmem:[#allocation7 + $0x120] sm:$0xff]  ;;  %v5659_v8 = vpack.c.bf16 %v434_v63, %v430_v62  ;;  %v431_v9 = vld [vmem:[#allocation7 + $0x110] sm:$0xff] }
  0x59   :  { %3721 = vmatmul.mubr.msk.f32.gmra.mrb[4].mxu1 %vm146_vm0, %v110_v46  ;;  %3847 = vmatpush1.bf16.msra.mxu0 %v5632_v50  ;;  %v436_v4 = vld [vmem:[#allocation7 + $0x138] sm:$0xff]  ;;  %v435_v10 = vld [vmem:[#allocation7 + $0x130] sm:$0xff]  ;;  %v438_v12 = vld [vmem:[#allocation7 + $0x148] sm:$0xff]  ;;  %v5670_v15 = vpack.c.bf16 %v433_v7, %v429_v6 }
  0x5a   :  { %3879 = vmatpush1.bf16.msra.mxu1 %v5636_v54  ;;  %253 = vmatprep.mubr.f32.mxu0 %v5441_v0  ;;  %v5663_v11 = vpack.c.bf16 %v436_v4, %v432_v3  ;;  %v442_v13 = vld [vmem:[#allocation7 + $0x168] sm:$0xff]  ;;  %v112_v14 = vld [vmem:[%s6617_s0 + $0x20] sm:$0xff]  ;;  %v440_v16 = vld [vmem:[#allocation7 + $0x158] sm:$0xff]  ;;  %v5674_v19 = vpack.c.bf16 %v435_v10, %v431_v9  ;;  %v126_v9 = vlaneseq }
  0x5b   :  { %366 = vmatprep.mubr.f32.mxu1 %v5441_v0  ;;  %3849 = vmatprep.subr.bf16.mxu0 %v5640_v58  ;;  %v444_v18 = vld [vmem:[#allocation7 + $0x178] sm:$0xff]  ;;  %v437_v20 = vld [vmem:[#allocation7 + $0x140] sm:$0xff]  ;;  %v5678_v24 = vpack.c.bf16 %v442_v13, %v438_v12  ;;  %v439_v26 = vld [vmem:[#allocation7 + $0x150] sm:$0xff] }
  0x5c   :  { %3714 = vmatmul.mubr.msk.f32.gmra.mrb[6].mxu0 %vm146_vm0, %v111_v1  ;;  %3881 = vmatprep.subr.bf16.mxu1 %v5644_v61  ;;  %v441_v23 = vld [vmem:[#allocation7 + $0x160] sm:$0xff]  ;;  %v443_v27 = vld [vmem:[#allocation7 + $0x170] sm:$0xff]  ;;  %v5682_v28 = vpack.c.bf16 %v444_v18, %v440_v16  ;;  %v446_v30 = vld [vmem:[#allocation7 + $0x188] sm:$0xff]  ;;  %v5781_v10 = vshrl.u32 %v126_v9, 7 }
  0x5d   :  { %3722 = vmatmul.mubr.msk.f32.gmra.mrb[6].mxu1 %vm146_vm0, %v111_v1  ;;  %3851 = vmatpush1.bf16.msra.mxu0 %v5651_v2  ;;  %v450_v31 = vld [vmem:[#allocation7 + $0x1a8] sm:$0xff]  ;;  %v5689_v33 = vpack.c.bf16 %v441_v23, %v437_v20  ;;  %v448_v36 = vld [vmem:[#allocation7 + $0x198] sm:$0xff]  ;;  %v5693_v39 = vpack.c.bf16 %v443_v27, %v439_v26  ;;  %v445_v40 = vld [vmem:[#allocation7 + $0x180] sm:$0xff] }
  0x5e   :  { %3883 = vmatpush1.bf16.msra.mxu1 %v5655_v5  ;;  %259 = vmatprep.mubr.f32.mxu0 %v5441_v0  ;;  %v113_v32 = vld [vmem:[%s6617_s0 + $0x28] sm:$0xff]  ;;  %v452_v37 = vld [vmem:[#allocation7 + $0x1b8] sm:$0xff]  ;;  %v449_v41 = vld [vmem:[#allocation7 + $0x1a0] sm:$0xff]  ;;  %v5697_v43 = vpack.c.bf16 %v450_v31, %v446_v30  ;;  %v128_v12 = vsub.s32 0, %v5781_v10  ;;  %v140_v23 = vsub.s32 3, %v5781_v10 }
  0x5f   :  { %372 = vmatprep.mubr.f32.mxu1 %v5441_v0  ;;  %3853 = vmatprep.subr.bf16.mxu0 %v5659_v8  ;;  %v447_v44 = vld [vmem:[#allocation7 + $0x190] sm:$0xff]  ;;  %v5701_v46 = vpack.c.bf16 %v452_v37, %v448_v36  ;;  %v454_v48 = vld [vmem:[#allocation7 + $0x1c8] sm:$0xff]  ;;  %v5708_v52 = vpack.c.bf16 %v449_v41, %v445_v40  ;;  %v456_v53 = vld [vmem:[#allocation7 + $0x1d8] sm:$0xff]  ;;  %v136_v41 = vsub.s32 2, %v5781_v10 }
  0x60   :  { %3715 = vmatmul.mubr.msk.f32.gmra.mrb[8].mxu0 %vm146_vm0, %v112_v14  ;;  %3885 = vmatprep.subr.bf16.mxu1 %v5663_v11  ;;  %v451_v45 = vld [vmem:[#allocation7 + $0x1b0] sm:$0xff]  ;;  %v458_v49 = vld [vmem:[#allocation7 + $0x1e8] sm:$0xff]  ;;  %v460_v55 = vld [vmem:[#allocation7 + $0x1f8] sm:$0xff] }
  0x61   :  { %3723 = vmatmul.mubr.msk.f32.gmra.mrb[8].mxu1 %vm146_vm0, %v112_v14  ;;  %3855 = vmatpush1.bf16.msra.mxu0 %v5670_v15  ;;  %v114_v51 = vld [vmem:[%s6617_s0 + $0x30] sm:$0xff]  ;;  %v5712_v56 = vpack.c.bf16 %v451_v45, %v447_v44  ;;  %v453_v57 = vld [vmem:[#allocation7 + $0x1c0] sm:$0xff]  ;;  %v5716_v60 = vpack.c.bf16 %v458_v49, %v454_v48  ;;  %v5720_v1 = vpack.c.bf16 %v460_v55, %v456_v53  ;;  %v115_v3 = vld [vmem:[%s6617_s0 + $0x38] sm:$0xff]  ;;  %v132_v14 = vsub.s32 1, %v5781_v10 }
  0x62   :  { %3887 = vmatpush1.bf16.msra.mxu1 %v5674_v19  ;;  %265 = vmatprep.mubr.f32.mxu0 %v5441_v0  ;;  %v457_v59 = vld [vmem:[#allocation7 + $0x1e0] sm:$0xff]  ;;  %v455_v62 = vld [vmem:[#allocation7 + $0x1d0] sm:$0xff] }
  0x63   :  { %378 = vmatprep.mubr.f32.mxu1 %v5441_v0  ;;  %3857 = vmatprep.subr.bf16.mxu0 %v5678_v24  ;;  %v459_v63 = vld [vmem:[#allocation7 + $0x1f0] sm:$0xff]  ;;  %v5727_v4 = vpack.c.bf16 %v457_v59, %v453_v57  ;;  %v100_v7 = vld [vmem:[%s6618_s1] sm:$0xff] }
  0x64   :  { %3716 = vmatmul.mubr.msk.f32.gmra.mrb[10].mxu0 %vm146_vm0, %v113_v32  ;;  %3889 = vmatprep.subr.bf16.mxu1 %v5682_v28  ;;  %v5731_v6 = vpack.c.bf16 %v459_v63, %v455_v62  ;;  %v124_v13 = vld [vmem:[%s6622_s5] sm:$0xf] }
  0x65   :  { %3724 = vmatmul.mubr.msk.f32.gmra.mrb[10].mxu1 %vm146_vm0, %v113_v32  ;;  %3859 = vmatpush1.bf16.msra.mxu0 %v5689_v33  ;;  %v5790_v16 = vrot.slane %v124_v13, %v128_v12  ;;  %v5794_v18 = vrot.slane %v124_v13, %v132_v14  ;;  %v5801_v40 = vrot.slane %v124_v13, %v140_v23  ;;  %v104_v63 = vld [vmem:[%s6619_s2] sm:$0xff] }
  0x66   :  { %3891 = vmatpush1.bf16.msra.mxu1 %v5693_v39  ;;  %271 = vmatprep.mubr.f32.mxu0 %v5441_v0  ;;  %v5807_v45 = vrot.slane %v124_v13, %v136_v41 }
  0x67   :  { %384 = vmatprep.mubr.f32.mxu1 %v5441_v0  ;;  %3861 = vmatprep.subr.bf16.mxu0 %v5697_v43 }
  0x68   :  { %3717 = vmatmul.mubr.msk.f32.gmra.mrb[12].mxu0 %vm146_vm0, %v114_v51  ;;  %3893 = vmatprep.subr.bf16.mxu1 %v5701_v46 }
  0x69   :  { %3725 = vmatmul.mubr.msk.f32.gmra.mrb[12].mxu1 %vm146_vm0, %v114_v51  ;;  %3863 = vmatpush1.bf16.msra.mxu0 %v5708_v52 }
  0x6a   :  { %3895 = vmatpush1.bf16.msra.mxu1 %v5712_v56  ;;  %277 = vmatprep.mubr.f32.mxu0 %v5441_v0 }
  0x6b   :  { %390 = vmatprep.mubr.f32.mxu1 %v5441_v0  ;;  %3865 = vmatprep.subr.bf16.mxu0 %v5716_v60 }
  0x6c   :  { %3718 = vmatmul.mubr.msk.f32.gmra.mrb[14].mxu0 %vm146_vm0, %v115_v3  ;;  %3897 = vmatprep.subr.bf16.mxu1 %v5720_v1 }
  0x6d   :  { %3726 = vmatmul.mubr.msk.f32.gmra.mrb[14].mxu1 %vm146_vm0, %v115_v3  ;;  %3867 = vmatpush1.bf16.msra.mxu0 %v5727_v4 }
  0x6e   :  { %3899 = vmatpush1.bf16.msra.mxu1 %v5731_v6  ;;  %527 = vmatprep.mubr.f32.mxu0 %v5441_v0 }
  0x6f   :  { %598 = vmatprep.mubr.f32.mxu1 %v5441_v0  ;;  %3901 = vmatprep.subr.bf16.mxu0 %v5593_v17 }
  0x70   :  { %528 = vmatmul.mubr.f32.vlgmr.msra.gmra.mrb[0].mxu0 %v100_v7  ;;  %3933 = vmatprep.subr.bf16.mxu1 %v5595_v21 }
  0x71   :  { %599 = vmatmul.mubr.f32.vlgmr.msra.gmra.mrb[0].mxu1 %v100_v7  ;;  %3903 = vmatpush1.bf16.msra.mxu0 %v5597_v22 }
  0x72   :  { %3935 = vmatpush1.bf16.msra.mxu1 %v5600_v25  ;;  %3905 = vmatprep.subr.bf16.mxu0 %v5604_v29 }
  0x73   :  { %3937 = vmatprep.subr.bf16.mxu1 %v5611_v34  ;;  %698 = vmatprep.mubr.f32.mxu0 %v5441_v0 }
  0x74   :  { %769 = vmatprep.mubr.f32.mxu1 %v5441_v0 }
  0x75   :  { %3907 = vmatpush1.bf16.msra.mxu0 %v5613_v35 }
  0x76   :  { %3939 = vmatpush1.bf16.msra.mxu1 %v5617_v38  ;;  %3909 = vmatprep.subr.bf16.mxu0 %v5621_v42 }
  0x77   :  { %3941 = vmatprep.subr.bf16.mxu1 %v5628_v47 }
  0x79   :  { %3911 = vmatpush1.bf16.msra.mxu0 %v5632_v50 }
  0x7a   :  { %3943 = vmatpush1.bf16.msra.mxu1 %v5636_v54  ;;  %3913 = vmatprep.subr.bf16.mxu0 %v5640_v58 }
  0x7b   :  { %3945 = vmatprep.subr.bf16.mxu1 %v5644_v61 }
  0x7d   :  { %3915 = vmatpush1.bf16.msra.mxu0 %v5651_v2 }
  0x7e   :  { %3947 = vmatpush1.bf16.msra.mxu1 %v5655_v5  ;;  %3917 = vmatprep.subr.bf16.mxu0 %v5659_v8 }
  0x7f   :  { %3949 = vmatprep.subr.bf16.mxu1 %v5663_v11 }
  0x81   :  { %3919 = vmatpush1.bf16.msra.mxu0 %v5670_v15 }
  0x82   :  { %3951 = vmatpush1.bf16.msra.mxu1 %v5674_v19  ;;  %3921 = vmatprep.subr.bf16.mxu0 %v5678_v24 }
  0x83   :  { %3953 = vmatprep.subr.bf16.mxu1 %v5682_v28 }
  0x85   :  { %3923 = vmatpush1.bf16.msra.mxu0 %v5689_v33 }
  0x86   :  { %3955 = vmatpush1.bf16.msra.mxu1 %v5693_v39  ;;  %3925 = vmatprep.subr.bf16.mxu0 %v5697_v43 }
  0x87   :  { %3957 = vmatprep.subr.bf16.mxu1 %v5701_v46 }
  0x89   :  { %3927 = vmatpush1.bf16.msra.mxu0 %v5708_v52 }
  0x8a   :  { %3959 = vmatpush1.bf16.msra.mxu1 %v5712_v56  ;;  %3929 = vmatprep.subr.bf16.mxu0 %v5716_v60 }
  0x8b   :  { %3961 = vmatprep.subr.bf16.mxu1 %v5720_v1 }
  0x8d   :  { %3931 = vmatpush1.bf16.msra.mxu0 %v5727_v4 }
  0x8e   :  { %3963 = vmatpush1.bf16.msra.mxu1 %v5731_v6  ;;  %3965 = vmatprep.subr.bf16.mxu0 %v5593_v17 }
  0x8f   :  { %3997 = vmatprep.subr.bf16.mxu1 %v5595_v21 }
 0x143   :  { %v529_v20 = vpop.f32.mrb[0].mxu0 }
 0x144   :  { %v4948_v26 = vadd.f32 %v529_v20, %v5790_v16  ;;  %v600_v27 = vpop.f32.mrb[0].mxu1  ;;  %v531_v30 = vpop.f32.mrb[1].mxu0 }
 0x145   :  { %v4949_v31 = vadd.f32 %v531_v30, %v5794_v18  ;;  %v602_v32 = vpop.f32.mrb[1].mxu1  ;;  %v4964_v49 = vadd.f32 %v600_v27, %v5807_v45 }
 0x146   :  { %v3727_v36 = vmul.f32 -1.442695, %v4948_v26  ;;  %v4965_v44 = vadd.f32 %v602_v32, %v5801_v40 }
 0x147   :  { %v3728_v37 = vmul.f32 -1.442695, %v4949_v31 }
 0x148   :  { %5085 = vpow2.f32 %v3727_v36  ;;  %v3729_v48 = vmul.f32 -1.442695, %v4965_v44 }
 0x149   :  { %5087 = vpow2.f32 %v3728_v37 }
 0x14a   :  { %5089 = vpow2.f32 %v3729_v48 }
 0x14b   :  { %5091 = vtanh.f32 %v4964_v49 }
 0x152   :  { %v5086_v51 = vpop.eup %5085 }
 0x153   :  { %v5088_v53 = vpop.eup %5087  ;;  %v612_v55 = vadd.f32 1.0, %v5086_v51 }
 0x154   :  { %v618_v57 = vadd.f32 1.0, %v5088_v53  ;;  %v5090_v59 = vpop.eup %5089 }
 0x155   :  { %5093 = vrcp.f32 %v612_v55  ;;  %v5092_v62 = vpop.eup %5091  ;;  %v625_v13 = vadd.f32 1.0, %v5090_v59 }
 0x156   :  { %5095 = vrcp.f32 %v618_v57 }
 0x157   :  { %5097 = vrcp.f32 %v625_v13 }
 0x15f   :  { %v5094_v3 = vpop.eup %5093 }
 0x160   :  { %v5096_v7 = vpop.eup %5095  ;;  %v629_v9 = vmul.f32 %v5094_v3, %v5092_v62 }
 0x161   :  { %v628_v20 = vmul.f32 %v5096_v7, %v104_v63  ;;  %v5098_v27 = vpop.eup %5097 }
 0x163   :  { %v5813_v26 = vadd.f32 %v629_v9, %v628_v20 }
 0x165   :  { %5099 = vtanh.f32 %v5813_v26 }
 0x16f   :  { %v5100_v30 = vpop.eup %5099 }
 0x170   :  { %v5816_v31 = vmul.f32 %v5100_v30, %v5098_v27 }
 0x172   :  { %699 = vmatmul.mubr.f32.vlgmr.msra.gmra.mrb[2].mxu0 %v5816_v31  ;;  %770 = vmatmul.mubr.f32.vlgmr.msra.gmra.mrb[2].mxu1 %v5816_v31 }
 0x173   :  { %3967 = vmatpush1.bf16.msra.mxu0 %v5597_v22  ;;  %3999 = vmatpush1.bf16.msra.mxu1 %v5600_v25 }
 0x174   :  { %3969 = vmatprep.subr.bf16.mxu0 %v5604_v29  ;;  %4001 = vmatprep.subr.bf16.mxu1 %v5611_v34 }
 0x175   :  { %870 = vmatprep.mubr.f32.mxu0 %v5441_v0  ;;  %941 = vmatprep.mubr.f32.mxu1 %v5441_v0 }
 0x177   :  { %3971 = vmatpush1.bf16.msra.mxu0 %v5613_v35  ;;  %4003 = vmatpush1.bf16.msra.mxu1 %v5617_v38 }
 0x178   :  { %3973 = vmatprep.subr.bf16.mxu0 %v5621_v42  ;;  %4005 = vmatprep.subr.bf16.mxu1 %v5628_v47 }
 0x17b   :  { %3975 = vmatpush1.bf16.msra.mxu0 %v5632_v50  ;;  %4007 = vmatpush1.bf16.msra.mxu1 %v5636_v54 }
 0x17c   :  { %3977 = vmatprep.subr.bf16.mxu0 %v5640_v58  ;;  %4009 = vmatprep.subr.bf16.mxu1 %v5644_v61 }
 0x17f   :  { %3979 = vmatpush1.bf16.msra.mxu0 %v5651_v2  ;;  %4011 = vmatpush1.bf16.msra.mxu1 %v5655_v5 }
 0x180   :  { %3981 = vmatprep.subr.bf16.mxu0 %v5659_v8  ;;  %4013 = vmatprep.subr.bf16.mxu1 %v5663_v11 }
 0x183   :  { %3983 = vmatpush1.bf16.msra.mxu0 %v5670_v15  ;;  %4015 = vmatpush1.bf16.msra.mxu1 %v5674_v19 }
 0x184   :  { %3985 = vmatprep.subr.bf16.mxu0 %v5678_v24  ;;  %4017 = vmatprep.subr.bf16.mxu1 %v5682_v28 }
 0x187   :  { %3987 = vmatpush1.bf16.msra.mxu0 %v5689_v33  ;;  %4019 = vmatpush1.bf16.msra.mxu1 %v5693_v39 }
 0x188   :  { %3989 = vmatprep.subr.bf16.mxu0 %v5697_v43  ;;  %4021 = vmatprep.subr.bf16.mxu1 %v5701_v46 }
 0x18b   :  { %3991 = vmatpush1.bf16.msra.mxu0 %v5708_v52  ;;  %4023 = vmatpush1.bf16.msra.mxu1 %v5712_v56 }
 0x18c   :  { %3993 = vmatprep.subr.bf16.mxu0 %v5716_v60  ;;  %4025 = vmatprep.subr.bf16.mxu1 %v5720_v1 }
 0x18f   :  { %3995 = vmatpush1.bf16.msra.mxu0 %v5727_v4  ;;  %4027 = vmatpush1.bf16.msra.mxu1 %v5731_v6 }
 0x190   :  { %4029 = vmatprep.subr.bf16.mxu0 %v5593_v17  ;;  %4061 = vmatprep.subr.bf16.mxu1 %v5595_v21 }
 0x245   :  { %v700_v32 = vpop.f32.mrb[2].mxu0  ;;  %v771_v36 = vpop.f32.mrb[2].mxu1 }
 0x246   :  { %v4950_v37 = vadd.f32 %v700_v32, %v5790_v16  ;;  %v702_v44 = vpop.f32.mrb[3].mxu0  ;;  %v773_v48 = vpop.f32.mrb[3].mxu1  ;;  %v4966_v59 = vadd.f32 %v771_v36, %v5807_v45 }
 0x247   :  { %v4951_v49 = vadd.f32 %v702_v44, %v5794_v18  ;;  %v4967_v55 = vadd.f32 %v773_v48, %v5801_v40 }
 0x248   :  { %v3730_v51 = vmul.f32 -1.442695, %v4950_v37 }
 0x249   :  { %v3731_v53 = vmul.f32 -1.442695, %v4951_v49  ;;  %v3732_v57 = vmul.f32 -1.442695, %v4967_v55 }
 0x24a   :  { %5101 = vpow2.f32 %v3730_v51 }
 0x24b   :  { %5103 = vpow2.f32 %v3731_v53 }
 0x24c   :  { %5105 = vpow2.f32 %v3732_v57 }
 0x24d   :  { %5107 = vtanh.f32 %v4966_v59 }
 0x254   :  { %v5102_v62 = vpop.eup %5101 }
 0x255   :  { %v5104_v63 = vpop.eup %5103  ;;  %v783_v3 = vadd.f32 1.0, %v5102_v62 }
 0x256   :  { %v789_v7 = vadd.f32 1.0, %v5104_v63  ;;  %v5106_v9 = vpop.eup %5105 }
 0x257   :  { %5109 = vrcp.f32 %v783_v3  ;;  %v5108_v13 = vpop.eup %5107  ;;  %v796_v32 = vadd.f32 1.0, %v5106_v9 }
 0x258   :  { %5111 = vrcp.f32 %v789_v7 }
 0x259   :  { %5113 = vrcp.f32 %v796_v32 }
 0x261   :  { %v5110_v20 = vpop.eup %5109 }
 0x262   :  { %v5112_v27 = vpop.eup %5111  ;;  %v800_v30 = vmul.f32 %v5110_v20, %v5108_v13 }
 0x263   :  { %v799_v37 = vmul.f32 %v5112_v27, %v5813_v26  ;;  %v5114_v36 = vpop.eup %5113 }
 0x265   :  { %v5859_v44 = vadd.f32 %v800_v30, %v799_v37 }
 0x267   :  { %5115 = vtanh.f32 %v5859_v44 }
 0x271   :  { %v5116_v48 = vpop.eup %5115 }
 0x272   :  { %v5862_v49 = vmul.f32 %v5116_v48, %v5114_v36 }
 0x274   :  { %871 = vmatmul.mubr.f32.vlgmr.msra.gmra.mrb[4].mxu0 %v5862_v49  ;;  %942 = vmatmul.mubr.f32.vlgmr.msra.gmra.mrb[4].mxu1 %v5862_v49 }
 0x275   :  { %4031 = vmatpush1.bf16.msra.mxu0 %v5597_v22  ;;  %4063 = vmatpush1.bf16.msra.mxu1 %v5600_v25 }
 0x276   :  { %4033 = vmatprep.subr.bf16.mxu0 %v5604_v29  ;;  %4065 = vmatprep.subr.bf16.mxu1 %v5611_v34 }
 0x277   :  { %1042 = vmatprep.mubr.f32.mxu0 %v5441_v0  ;;  %1113 = vmatprep.mubr.f32.mxu1 %v5441_v0 }
 0x279   :  { %4035 = vmatpush1.bf16.msra.mxu0 %v5613_v35  ;;  %4067 = vmatpush1.bf16.msra.mxu1 %v5617_v38 }
 0x27a   :  { %4037 = vmatprep.subr.bf16.mxu0 %v5621_v42  ;;  %4069 = vmatprep.subr.bf16.mxu1 %v5628_v47 }
 0x27d   :  { %4039 = vmatpush1.bf16.msra.mxu0 %v5632_v50  ;;  %4071 = vmatpush1.bf16.msra.mxu1 %v5636_v54 }
 0x27e   :  { %4041 = vmatprep.subr.bf16.mxu0 %v5640_v58  ;;  %4073 = vmatprep.subr.bf16.mxu1 %v5644_v61 }
 0x281   :  { %4043 = vmatpush1.bf16.msra.mxu0 %v5651_v2  ;;  %4075 = vmatpush1.bf16.msra.mxu1 %v5655_v5 }
 0x282   :  { %4045 = vmatprep.subr.bf16.mxu0 %v5659_v8  ;;  %4077 = vmatprep.subr.bf16.mxu1 %v5663_v11 }
 0x285   :  { %4047 = vmatpush1.bf16.msra.mxu0 %v5670_v15  ;;  %4079 = vmatpush1.bf16.msra.mxu1 %v5674_v19 }
 0x286   :  { %4049 = vmatprep.subr.bf16.mxu0 %v5678_v24  ;;  %4081 = vmatprep.subr.bf16.mxu1 %v5682_v28 }
 0x289   :  { %4051 = vmatpush1.bf16.msra.mxu0 %v5689_v33  ;;  %4083 = vmatpush1.bf16.msra.mxu1 %v5693_v39 }
 0x28a   :  { %4053 = vmatprep.subr.bf16.mxu0 %v5697_v43  ;;  %4085 = vmatprep.subr.bf16.mxu1 %v5701_v46 }
 0x28d   :  { %4055 = vmatpush1.bf16.msra.mxu0 %v5708_v52  ;;  %4087 = vmatpush1.bf16.msra.mxu1 %v5712_v56 }
 0x28e   :  { %4057 = vmatprep.subr.bf16.mxu0 %v5716_v60  ;;  %4089 = vmatprep.subr.bf16.mxu1 %v5720_v1 }
 0x291   :  { %4059 = vmatpush1.bf16.msra.mxu0 %v5727_v4  ;;  %4091 = vmatpush1.bf16.msra.mxu1 %v5731_v6 }
 0x292   :  { %4093 = vmatprep.subr.bf16.mxu0 %v5593_v17  ;;  %4125 = vmatprep.subr.bf16.mxu1 %v5595_v21 }
 0x347   :  { %v872_v26 = vpop.f32.mrb[4].mxu0  ;;  %v943_v51 = vpop.f32.mrb[4].mxu1 }
 0x348   :  { %v4952_v53 = vadd.f32 %v872_v26, %v5790_v16  ;;  %v874_v55 = vpop.f32.mrb[5].mxu0  ;;  %v945_v57 = vpop.f32.mrb[5].mxu1  ;;  %v4968_v9 = vadd.f32 %v943_v51, %v5807_v45 }
 0x349   :  { %v4953_v59 = vadd.f32 %v874_v55, %v5794_v18  ;;  %v4969_v3 = vadd.f32 %v945_v57, %v5801_v40 }
 0x34a   :  { %v3733_v62 = vmul.f32 -1.442695, %v4952_v53 }
 0x34b   :  { %v3734_v63 = vmul.f32 -1.442695, %v4953_v59  ;;  %v3735_v7 = vmul.f32 -1.442695, %v4969_v3 }
 0x34c   :  { %5117 = vpow2.f32 %v3733_v62 }
 0x34d   :  { %5119 = vpow2.f32 %v3734_v63 }
 0x34e   :  { %5121 = vpow2.f32 %v3735_v7 }
 0x34f   :  { %5123 = vtanh.f32 %v4968_v9 }
 0x356   :  { %v5118_v13 = vpop.eup %5117 }
 0x357   :  { %v5120_v20 = vpop.eup %5119  ;;  %v955_v27 = vadd.f32 1.0, %v5118_v13 }
 0x358   :  { %v961_v30 = vadd.f32 1.0, %v5120_v20  ;;  %v5122_v32 = vpop.eup %5121 }
 0x359   :  { %5125 = vrcp.f32 %v955_v27  ;;  %v5124_v37 = vpop.eup %5123  ;;  %v968_v53 = vadd.f32 1.0, %v5122_v32 }
 0x35a   :  { %5127 = vrcp.f32 %v961_v30 }
 0x35b   :  { %5129 = vrcp.f32 %v968_v53 }
 0x363   :  { %v5126_v36 = vpop.eup %5125 }
 0x364   :  { %v5128_v48 = vpop.eup %5127  ;;  %v972_v26 = vmul.f32 %v5126_v36, %v5124_v37 }
 0x365   :  { %v971_v55 = vmul.f32 %v5128_v48, %v5859_v44  ;;  %v5130_v51 = vpop.eup %5129 }
 0x367   :  { %v5905_v57 = vadd.f32 %v972_v26, %v971_v55 }
 0x369   :  { %5131 = vtanh.f32 %v5905_v57 }
 0x373   :  { %v5132_v59 = vpop.eup %5131 }
 0x374   :  { %v5908_v62 = vmul.f32 %v5132_v59, %v5130_v51 }
 0x376   :  { %1043 = vmatmul.mubr.f32.vlgmr.msra.gmra.mrb[6].mxu0 %v5908_v62  ;;  %1114 = vmatmul.mubr.f32.vlgmr.msra.gmra.mrb[6].mxu1 %v5908_v62 }
 0x377   :  { %4095 = vmatpush1.bf16.msra.mxu0 %v5597_v22  ;;  %4127 = vmatpush1.bf16.msra.mxu1 %v5600_v25 }
 0x378   :  { %4097 = vmatprep.subr.bf16.mxu0 %v5604_v29  ;;  %4129 = vmatprep.subr.bf16.mxu1 %v5611_v34 }
 0x379   :  { %1214 = vmatprep.mubr.f32.mxu0 %v5441_v0  ;;  %1285 = vmatprep.mubr.f32.mxu1 %v5441_v0 }
 0x37b   :  { %4099 = vmatpush1.bf16.msra.mxu0 %v5613_v35  ;;  %4131 = vmatpush1.bf16.msra.mxu1 %v5617_v38 }
 0x37c   :  { %4101 = vmatprep.subr.bf16.mxu0 %v5621_v42  ;;  %4133 = vmatprep.subr.bf16.mxu1 %v5628_v47 }
 0x37f   :  { %4103 = vmatpush1.bf16.msra.mxu0 %v5632_v50  ;;  %4135 = vmatpush1.bf16.msra.mxu1 %v5636_v54 }
 0x380   :  { %4105 = vmatprep.subr.bf16.mxu0 %v5640_v58  ;;  %4137 = vmatprep.subr.bf16.mxu1 %v5644_v61 }
 0x383   :  { %4107 = vmatpush1.bf16.msra.mxu0 %v5651_v2  ;;  %4139 = vmatpush1.bf16.msra.mxu1 %v5655_v5 }
 0x384   :  { %4109 = vmatprep.subr.bf16.mxu0 %v5659_v8  ;;  %4141 = vmatprep.subr.bf16.mxu1 %v5663_v11 }
 0x387   :  { %4111 = vmatpush1.bf16.msra.mxu0 %v5670_v15  ;;  %4143 = vmatpush1.bf16.msra.mxu1 %v5674_v19 }
 0x388   :  { %4113 = vmatprep.subr.bf16.mxu0 %v5678_v24  ;;  %4145 = vmatprep.subr.bf16.mxu1 %v5682_v28 }
 0x38b   :  { %4115 = vmatpush1.bf16.msra.mxu0 %v5689_v33  ;;  %4147 = vmatpush1.bf16.msra.mxu1 %v5693_v39 }
 0x38c   :  { %4117 = vmatprep.subr.bf16.mxu0 %v5697_v43  ;;  %4149 = vmatprep.subr.bf16.mxu1 %v5701_v46 }
 0x38f   :  { %4119 = vmatpush1.bf16.msra.mxu0 %v5708_v52  ;;  %4151 = vmatpush1.bf16.msra.mxu1 %v5712_v56 }
 0x390   :  { %4121 = vmatprep.subr.bf16.mxu0 %v5716_v60  ;;  %4153 = vmatprep.subr.bf16.mxu1 %v5720_v1 }
 0x393   :  { %4123 = vmatpush1.bf16.msra.mxu0 %v5727_v4  ;;  %4155 = vmatpush1.bf16.msra.mxu1 %v5731_v6 }
 0x394   :  { %4157 = vmatprep.subr.bf16.mxu0 %v5593_v17  ;;  %4189 = vmatprep.subr.bf16.mxu1 %v5595_v21 }
 0x449   :  { %v1044_v44 = vpop.f32.mrb[6].mxu0  ;;  %v1115_v63 = vpop.f32.mrb[6].mxu1 }
 0x44a   :  { %v4954_v3 = vadd.f32 %v1044_v44, %v5790_v16  ;;  %v1046_v7 = vpop.f32.mrb[7].mxu0  ;;  %v1117_v9 = vpop.f32.mrb[7].mxu1  ;;  %v4970_v37 = vadd.f32 %v1115_v63, %v5807_v45 }
 0x44b   :  { %v4955_v13 = vadd.f32 %v1046_v7, %v5794_v18  ;;  %v4971_v30 = vadd.f32 %v1117_v9, %v5801_v40 }
 0x44c   :  { %v3736_v20 = vmul.f32 -1.442695, %v4954_v3 }
 0x44d   :  { %v3737_v27 = vmul.f32 -1.442695, %v4955_v13  ;;  %v3738_v32 = vmul.f32 -1.442695, %v4971_v30 }
 0x44e   :  { %5133 = vpow2.f32 %v3736_v20 }
 0x44f   :  { %5135 = vpow2.f32 %v3737_v27 }
 0x450   :  { %5137 = vpow2.f32 %v3738_v32 }
 0x451   :  { %5139 = vtanh.f32 %v4970_v37 }
 0x458   :  { %v5134_v36 = vpop.eup %5133 }
 0x459   :  { %v5136_v48 = vpop.eup %5135  ;;  %v1127_v26 = vadd.f32 1.0, %v5134_v36 }
 0x45a   :  { %v1133_v53 = vadd.f32 1.0, %v5136_v48  ;;  %v5138_v55 = vpop.eup %5137 }
 0x45b   :  { %5141 = vrcp.f32 %v1127_v26  ;;  %v5140_v51 = vpop.eup %5139  ;;  %v1140_v7 = vadd.f32 1.0, %v5138_v55 }
 0x45c   :  { %5143 = vrcp.f32 %v1133_v53 }
 0x45d   :  { %5145 = vrcp.f32 %v1140_v7 }
 0x465   :  { %v5142_v59 = vpop.eup %5141 }
 0x466   :  { %v5144_v44 = vpop.eup %5143  ;;  %v1144_v3 = vmul.f32 %v5142_v59, %v5140_v51 }
 0x467   :  { %v1143_v13 = vmul.f32 %v5144_v44, %v5905_v57  ;;  %v5146_v63 = vpop.eup %5145 }
 0x469   :  { %v5951_v9 = vadd.f32 %v1144_v3, %v1143_v13 }
 0x46b   :  { %5147 = vtanh.f32 %v5951_v9 }
 0x475   :  { %v5148_v20 = vpop.eup %5147 }
 0x476   :  { %v5954_v27 = vmul.f32 %v5148_v20, %v5146_v63 }
 0x478   :  { %1215 = vmatmul.mubr.f32.vlgmr.msra.gmra.mrb[8].mxu0 %v5954_v27  ;;  %1286 = vmatmul.mubr.f32.vlgmr.msra.gmra.mrb[8].mxu1 %v5954_v27 }
 0x479   :  { %4159 = vmatpush1.bf16.msra.mxu0 %v5597_v22  ;;  %4191 = vmatpush1.bf16.msra.mxu1 %v5600_v25 }
 0x47a   :  { %4161 = vmatprep.subr.bf16.mxu0 %v5604_v29  ;;  %4193 = vmatprep.subr.bf16.mxu1 %v5611_v34 }
 0x47b   :  { %1386 = vmatprep.mubr.f32.mxu0 %v5441_v0  ;;  %1457 = vmatprep.mubr.f32.mxu1 %v5441_v0 }
 0x47d   :  { %4163 = vmatpush1.bf16.msra.mxu0 %v5613_v35  ;;  %4195 = vmatpush1.bf16.msra.mxu1 %v5617_v38 }
 0x47e   :  { %4165 = vmatprep.subr.bf16.mxu0 %v5621_v42  ;;  %4197 = vmatprep.subr.bf16.mxu1 %v5628_v47 }
 0x481   :  { %4167 = vmatpush1.bf16.msra.mxu0 %v5632_v50  ;;  %4199 = vmatpush1.bf16.msra.mxu1 %v5636_v54 }
 0x482   :  { %4169 = vmatprep.subr.bf16.mxu0 %v5640_v58  ;;  %4201 = vmatprep.subr.bf16.mxu1 %v5644_v61 }
 0x485   :  { %4171 = vmatpush1.bf16.msra.mxu0 %v5651_v2  ;;  %4203 = vmatpush1.bf16.msra.mxu1 %v5655_v5 }
 0x486   :  { %4173 = vmatprep.subr.bf16.mxu0 %v5659_v8  ;;  %4205 = vmatprep.subr.bf16.mxu1 %v5663_v11 }
 0x489   :  { %4175 = vmatpush1.bf16.msra.mxu0 %v5670_v15  ;;  %4207 = vmatpush1.bf16.msra.mxu1 %v5674_v19 }
 0x48a   :  { %4177 = vmatprep.subr.bf16.mxu0 %v5678_v24  ;;  %4209 = vmatprep.subr.bf16.mxu1 %v5682_v28 }
 0x48d   :  { %4179 = vmatpush1.bf16.msra.mxu0 %v5689_v33  ;;  %4211 = vmatpush1.bf16.msra.mxu1 %v5693_v39 }
 0x48e   :  { %4181 = vmatprep.subr.bf16.mxu0 %v5697_v43  ;;  %4213 = vmatprep.subr.bf16.mxu1 %v5701_v46 }
 0x491   :  { %4183 = vmatpush1.bf16.msra.mxu0 %v5708_v52  ;;  %4215 = vmatpush1.bf16.msra.mxu1 %v5712_v56 }
 0x492   :  { %4185 = vmatprep.subr.bf16.mxu0 %v5716_v60  ;;  %4217 = vmatprep.subr.bf16.mxu1 %v5720_v1 }
 0x495   :  { %4187 = vmatpush1.bf16.msra.mxu0 %v5727_v4  ;;  %4219 = vmatpush1.bf16.msra.mxu1 %v5731_v6 }
 0x496   :  { %4221 = vmatprep.subr.bf16.mxu0 %v5593_v17  ;;  %4253 = vmatprep.subr.bf16.mxu1 %v5595_v21 }
 0x54b   :  { %v1216_v57 = vpop.f32.mrb[8].mxu0  ;;  %v1287_v30 = vpop.f32.mrb[8].mxu1 }
 0x54c   :  { %v4956_v32 = vadd.f32 %v1216_v57, %v5790_v16  ;;  %v1218_v37 = vpop.f32.mrb[9].mxu0  ;;  %v1289_v36 = vpop.f32.mrb[9].mxu1  ;;  %v4972_v59 = vadd.f32 %v1287_v30, %v5807_v45 }
 0x54d   :  { %v4957_v48 = vadd.f32 %v1218_v37, %v5794_v18  ;;  %v4973_v55 = vadd.f32 %v1289_v36, %v5801_v40 }
 0x54e   :  { %v3739_v26 = vmul.f32 -1.442695, %v4956_v32 }
 0x54f   :  { %v3740_v53 = vmul.f32 -1.442695, %v4957_v48  ;;  %v3741_v51 = vmul.f32 -1.442695, %v4973_v55 }
 0x550   :  { %5149 = vpow2.f32 %v3739_v26 }
 0x551   :  { %5151 = vpow2.f32 %v3740_v53 }
 0x552   :  { %5153 = vpow2.f32 %v3741_v51 }
 0x553   :  { %5155 = vtanh.f32 %v4972_v59 }
 0x55a   :  { %v5150_v44 = vpop.eup %5149 }
 0x55b   :  { %v5152_v3 = vpop.eup %5151  ;;  %v1299_v7 = vadd.f32 1.0, %v5150_v44 }
 0x55c   :  { %v1305_v13 = vadd.f32 1.0, %v5152_v3  ;;  %v5154_v63 = vpop.eup %5153 }
 0x55d   :  { %5157 = vrcp.f32 %v1299_v7  ;;  %v5156_v20 = vpop.eup %5155  ;;  %v1312_v48 = vadd.f32 1.0, %v5154_v63 }
 0x55e   :  { %5159 = vrcp.f32 %v1305_v13 }
 0x55f   :  { %5161 = vrcp.f32 %v1312_v48 }
 0x567   :  { %v5158_v57 = vpop.eup %5157 }
 0x568   :  { %v5160_v32 = vpop.eup %5159  ;;  %v1316_v37 = vmul.f32 %v5158_v57, %v5156_v20 }
 0x569   :  { %v1315_v26 = vmul.f32 %v5160_v32, %v5951_v9  ;;  %v5162_v30 = vpop.eup %5161 }
 0x56b   :  { %v5997_v36 = vadd.f32 %v1316_v37, %v1315_v26 }
 0x56d   :  { %5163 = vtanh.f32 %v5997_v36 }
 0x577   :  { %v5164_v53 = vpop.eup %5163 }
 0x578   :  { %v6000_v55 = vmul.f32 %v5164_v53, %v5162_v30 }
 0x57a   :  { %1387 = vmatmul.mubr.f32.vlgmr.msra.gmra.mrb[10].mxu0 %v6000_v55  ;;  %1458 = vmatmul.mubr.f32.vlgmr.msra.gmra.mrb[10].mxu1 %v6000_v55 }
 0x57b   :  { %4223 = vmatpush1.bf16.msra.mxu0 %v5597_v22  ;;  %4255 = vmatpush1.bf16.msra.mxu1 %v5600_v25 }
 0x57c   :  { %4225 = vmatprep.subr.bf16.mxu0 %v5604_v29  ;;  %4257 = vmatprep.subr.bf16.mxu1 %v5611_v34 }
 0x57d   :  { %1558 = vmatprep.mubr.f32.mxu0 %v5441_v0  ;;  %1629 = vmatprep.mubr.f32.mxu1 %v5441_v0 }
 0x57f   :  { %4227 = vmatpush1.bf16.msra.mxu0 %v5613_v35  ;;  %4259 = vmatpush1.bf16.msra.mxu1 %v5617_v38 }
 0x580   :  { %4229 = vmatprep.subr.bf16.mxu0 %v5621_v42  ;;  %4261 = vmatprep.subr.bf16.mxu1 %v5628_v47 }
 0x583   :  { %4231 = vmatpush1.bf16.msra.mxu0 %v5632_v50  ;;  %4263 = vmatpush1.bf16.msra.mxu1 %v5636_v54 }
 0x584   :  { %4233 = vmatprep.subr.bf16.mxu0 %v5640_v58  ;;  %4265 = vmatprep.subr.bf16.mxu1 %v5644_v61 }
 0x587   :  { %4235 = vmatpush1.bf16.msra.mxu0 %v5651_v2  ;;  %4267 = vmatpush1.bf16.msra.mxu1 %v5655_v5 }
 0x588   :  { %4237 = vmatprep.subr.bf16.mxu0 %v5659_v8  ;;  %4269 = vmatprep.subr.bf16.mxu1 %v5663_v11 }
 0x58b   :  { %4239 = vmatpush1.bf16.msra.mxu0 %v5670_v15  ;;  %4271 = vmatpush1.bf16.msra.mxu1 %v5674_v19 }
 0x58c   :  { %4241 = vmatprep.subr.bf16.mxu0 %v5678_v24  ;;  %4273 = vmatprep.subr.bf16.mxu1 %v5682_v28 }
 0x58f   :  { %4243 = vmatpush1.bf16.msra.mxu0 %v5689_v33  ;;  %4275 = vmatpush1.bf16.msra.mxu1 %v5693_v39 }
 0x590   :  { %4245 = vmatprep.subr.bf16.mxu0 %v5697_v43  ;;  %4277 = vmatprep.subr.bf16.mxu1 %v5701_v46 }
 0x593   :  { %4247 = vmatpush1.bf16.msra.mxu0 %v5708_v52  ;;  %4279 = vmatpush1.bf16.msra.mxu1 %v5712_v56 }
 0x594   :  { %4249 = vmatprep.subr.bf16.mxu0 %v5716_v60  ;;  %4281 = vmatprep.subr.bf16.mxu1 %v5720_v1 }
 0x597   :  { %4251 = vmatpush1.bf16.msra.mxu0 %v5727_v4  ;;  %4283 = vmatpush1.bf16.msra.mxu1 %v5731_v6 }
 0x598   :  { %4285 = vmatprep.subr.bf16.mxu0 %v5593_v17  ;;  %4317 = vmatprep.subr.bf16.mxu1 %v5595_v21 }
 0x64d   :  { %v1388_v9 = vpop.f32.mrb[10].mxu0  ;;  %v1459_v51 = vpop.f32.mrb[10].mxu1 }
 0x64e   :  { %v4958_v59 = vadd.f32 %v1388_v9, %v5790_v16  ;;  %v1390_v44 = vpop.f32.mrb[11].mxu0  ;;  %v1461_v3 = vpop.f32.mrb[11].mxu1  ;;  %v4974_v32 = vadd.f32 %v1459_v51, %v5807_v45 }
 0x64f   :  { %v4959_v7 = vadd.f32 %v1390_v44, %v5794_v18  ;;  %v4975_v20 = vadd.f32 %v1461_v3, %v5801_v40 }
 0x650   :  { %v3742_v13 = vmul.f32 -1.442695, %v4958_v59 }
 0x651   :  { %v3743_v63 = vmul.f32 -1.442695, %v4959_v7  ;;  %v3744_v57 = vmul.f32 -1.442695, %v4975_v20  ;;  %v1850_v20 = vld [vmem:[#allocation9 + $0x10] sm:$0xff] }
 0x652   :  { %5165 = vpow2.f32 %v3742_v13 }
 0x653   :  { %5167 = vpow2.f32 %v3743_v63 }
 0x654   :  { %5169 = vpow2.f32 %v3744_v57  ;;  %v1854_v57 = vld [vmem:[#allocation9 + $0x30] sm:$0xff] }
 0x655   :  { %5171 = vtanh.f32 %v4974_v32  ;;  %v1857_v32 = vld [vmem:[#allocation9 + $0x48] sm:$0xff] }
 0x65c   :  { %v5166_v17 = vpop.eup %5165 }
 0x65d   :  { %v5168_v37 = vpop.eup %5167  ;;  %v1471_v21 = vadd.f32 1.0, %v5166_v17  ;;  %v1861_v17 = vld [vmem:[#allocation9 + $0x68] sm:$0xff] }
 0x65e   :  { %v1477_v48 = vadd.f32 1.0, %v5168_v37  ;;  %v5170_v26 = vpop.eup %5169  ;;  %v1859_v37 = vld [vmem:[#allocation9 + $0x58] sm:$0xff] }
 0x65f   :  { %5173 = vrcp.f32 %v1471_v21  ;;  %v5172_v30 = vpop.eup %5171  ;;  %v1484_v44 = vadd.f32 1.0, %v5170_v26  ;;  %v1863_v21 = vld [vmem:[#allocation9 + $0x78] sm:$0xff] }
 0x660   :  { %5175 = vrcp.f32 %v1477_v48 }
 0x661   :  { %5177 = vrcp.f32 %v1484_v44 }
 0x669   :  { %v5174_v53 = vpop.eup %5173 }
 0x66a   :  { %v5176_v9 = vpop.eup %5175  ;;  %v1488_v59 = vmul.f32 %v5174_v53, %v5172_v30  ;;  %v4382_v53 = vpack.c.bf16 %v1854_v57, %v1850_v20  ;;  %v1880_v20 = vld [vmem:[#allocation9 + $0x100] sm:$0xff] }
 0x66b   :  { %v1487_v7 = vmul.f32 %v5176_v9, %v5997_v36  ;;  %v5178_v51 = vpop.eup %5177  ;;  %v1852_v36 = vld [vmem:[#allocation9 + $0x20] sm:$0xff] }
 0x66c   :  { %v1856_v9 = vld [vmem:[#allocation9 + $0x40] sm:$0xff] }
 0x66d   :  { %v6043_v3 = vadd.f32 %v1488_v59, %v1487_v7  ;;  %v1860_v59 = vld [vmem:[#allocation9 + $0x60] sm:$0xff]  ;;  %v4352_v7 = vpack.c.bf16 %v1861_v17, %v1857_v32 }
 0x66e   :  { %v1884_v57 = vld [vmem:[#allocation9 + $0x120] sm:$0xff] }
 0x66f   :  { %5179 = vtanh.f32 %v6043_v3 }
 0x679   :  { %v5180_v13 = vpop.eup %5179 }
 0x67a   :  { %v6046_v63 = vmul.f32 %v5180_v13, %v5178_v51  ;;  %v1858_v51 = vld [vmem:[#allocation9 + $0x50] sm:$0xff] }
 0x67b   :  { %v1862_v13 = vld [vmem:[#allocation9 + $0x70] sm:$0xff] }
 0x67c   :  { %1559 = vmatmul.mubr.f32.vlgmr.msra.gmra.mrb[12].mxu0 %v6046_v63  ;;  %1630 = vmatmul.mubr.f32.vlgmr.msra.gmra.mrb[12].mxu1 %v6046_v63 }
 0x67d   :  { %4287 = vmatpush1.bf16.msra.mxu0 %v5597_v22  ;;  %4319 = vmatpush1.bf16.msra.mxu1 %v5600_v25  ;;  %v1849_v22 = vld [vmem:[#allocation9 + $0x8] sm:$0xff] }
 0x67e   :  { %4289 = vmatprep.subr.bf16.mxu0 %v5604_v29  ;;  %4321 = vmatprep.subr.bf16.mxu1 %v5611_v34  ;;  %v1853_v25 = vld [vmem:[#allocation9 + $0x28] sm:$0xff]  ;;  %v1851_v29 = vld [vmem:[#allocation9 + $0x18] sm:$0xff] }
 0x67f   :  { %1730 = vmatprep.mubr.f32.mxu0 %v5441_v0  ;;  %1801 = vmatprep.mubr.f32.mxu1 %v5441_v0  ;;  %v4348_v34 = vpack.c.bf16 %v1853_v25, %v1849_v22  ;;  %v1865_v22 = vld [vmem:[#allocation9 + $0x88] sm:$0xff] }
 0x680   :  { %v1869_v25 = vld [vmem:[#allocation9 + $0xa8] sm:$0xff] }
 0x681   :  { %4291 = vmatpush1.bf16.msra.mxu0 %v5613_v35  ;;  %4323 = vmatpush1.bf16.msra.mxu1 %v5617_v38  ;;  %v1855_v35 = vld [vmem:[#allocation9 + $0x38] sm:$0xff] }
 0x682   :  { %4293 = vmatprep.subr.bf16.mxu0 %v5621_v42  ;;  %4325 = vmatprep.subr.bf16.mxu1 %v5628_v47  ;;  %v4380_v38 = vpack.c.bf16 %v1855_v35, %v1851_v29  ;;  %v1867_v29 = vld [vmem:[#allocation9 + $0x98] sm:$0xff]  ;;  %v4354_v35 = vpack.c.bf16 %v1860_v59, %v1856_v9  ;;  %v4366_v9 = vpack.c.bf16 %v1884_v57, %v1880_v20  ;;  %v2162_v57 = vld [vmem:[#allocation10 + $0x10] sm:$0xff] }
 0x685   :  { %4295 = vmatpush1.bf16.msra.mxu0 %v5632_v50  ;;  %4327 = vmatpush1.bf16.msra.mxu1 %v5636_v54 }
 0x686   :  { %4297 = vmatprep.subr.bf16.mxu0 %v5640_v58  ;;  %4329 = vmatprep.subr.bf16.mxu1 %v5644_v61 }
 0x689   :  { %4299 = vmatpush1.bf16.msra.mxu0 %v5651_v2  ;;  %4331 = vmatpush1.bf16.msra.mxu1 %v5655_v5 }
 0x68a   :  { %4301 = vmatprep.subr.bf16.mxu0 %v5659_v8  ;;  %4333 = vmatprep.subr.bf16.mxu1 %v5663_v11 }
 0x68d   :  { %4303 = vmatpush1.bf16.msra.mxu0 %v5670_v15  ;;  %4335 = vmatpush1.bf16.msra.mxu1 %v5674_v19 }
 0x68e   :  { %4305 = vmatprep.subr.bf16.mxu0 %v5678_v24  ;;  %4337 = vmatprep.subr.bf16.mxu1 %v5682_v28 }
 0x691   :  { %4307 = vmatpush1.bf16.msra.mxu0 %v5689_v33  ;;  %4339 = vmatpush1.bf16.msra.mxu1 %v5693_v39 }
 0x692   :  { %4309 = vmatprep.subr.bf16.mxu0 %v5697_v43  ;;  %4341 = vmatprep.subr.bf16.mxu1 %v5701_v46 }
 0x695   :  { %4311 = vmatpush1.bf16.msra.mxu0 %v5708_v52  ;;  %4343 = vmatpush1.bf16.msra.mxu1 %v5712_v56 }
 0x696   :  { %4313 = vmatprep.subr.bf16.mxu0 %v5716_v60  ;;  %4345 = vmatprep.subr.bf16.mxu1 %v5720_v1 }
 0x699   :  { %4315 = vmatpush1.bf16.msra.mxu0 %v5727_v4  ;;  %4347 = vmatpush1.bf16.msra.mxu1 %v5731_v6  ;;  %v1848_v6 = vld [vmem:[#allocation9] sm:$0xff] }
 0x69a   :  { %4349 = vmatprep.subr.bf16.mxu0 %v4348_v34  ;;  %4381 = vmatprep.subr.bf16.mxu1 %v4380_v38  ;;  %v4350_v30 = vpack.c.bf16 %v1852_v36, %v1848_v6  ;;  %v1871_v34 = vld [vmem:[#allocation9 + $0xb8] sm:$0xff]  ;;  %v4386_v38 = vpack.c.bf16 %v1862_v13, %v1858_v51 }
 0x74f   :  { %v1560_v42 = vpop.f32.mrb[12].mxu0  ;;  %v1631_v47 = vpop.f32.mrb[12].mxu1 }
 0x750   :  { %v4960_v50 = vadd.f32 %v1560_v42, %v5790_v16  ;;  %v1562_v54 = vpop.f32.mrb[13].mxu0  ;;  %v1633_v58 = vpop.f32.mrb[13].mxu1  ;;  %v4976_v15 = vadd.f32 %v1631_v47, %v5807_v45  ;;  %v1864_v42 = vld [vmem:[#allocation9 + $0x80] sm:$0xff] }
 0x751   :  { %v4961_v61 = vadd.f32 %v1562_v54, %v5794_v18  ;;  %v4977_v8 = vadd.f32 %v1633_v58, %v5801_v40  ;;  %v1868_v47 = vld [vmem:[#allocation9 + $0xa0] sm:$0xff]  ;;  %v4388_v54 = vpack.c.bf16 %v1871_v34, %v1867_v29  ;;  %v1866_v58 = vld [vmem:[#allocation9 + $0x90] sm:$0xff]  ;;  %v1897_v29 = vld [vmem:[#allocation9 + $0x188] sm:$0xff] }
 0x752   :  { %v3745_v2 = vmul.f32 -1.442695, %v4960_v50  ;;  %v4356_v50 = vpack.c.bf16 %v1869_v25, %v1865_v22  ;;  %v1890_v22 = vld [vmem:[#allocation9 + $0x150] sm:$0xff]  ;;  %v1901_v34 = vld [vmem:[#allocation9 + $0x1a8] sm:$0xff] }
 0x753   :  { %v3746_v5 = vmul.f32 -1.442695, %v4961_v61  ;;  %v3747_v11 = vmul.f32 -1.442695, %v4977_v8  ;;  %v1870_v61 = vld [vmem:[#allocation9 + $0xb0] sm:$0xff]  ;;  %v1875_v8 = vld [vmem:[#allocation9 + $0xd8] sm:$0xff] }
 0x754   :  { %5181 = vpow2.f32 %v3745_v2  ;;  %v1873_v2 = vld [vmem:[#allocation9 + $0xc8] sm:$0xff]  ;;  %v1894_v25 = vld [vmem:[#allocation9 + $0x170] sm:$0xff] }
 0x755   :  { %5183 = vpow2.f32 %v3746_v5  ;;  %v1877_v5 = vld [vmem:[#allocation9 + $0xe8] sm:$0xff] }
 0x756   :  { %5185 = vpow2.f32 %v3747_v11  ;;  %v1879_v11 = vld [vmem:[#allocation9 + $0xf8] sm:$0xff] }
 0x757   :  { %5187 = vtanh.f32 %v4976_v15  ;;  %v4358_v15 = vpack.c.bf16 %v1868_v47, %v1864_v42  ;;  %v4402_v47 = vpack.c.bf16 %v1894_v25, %v1890_v22  ;;  %v2181_v22 = vld [vmem:[#allocation10 + $0xa8] sm:$0xff]  ;;  %v2179_v25 = vld [vmem:[#allocation10 + $0x98] sm:$0xff] }
 0x75e   :  { %v5182_v19 = vpop.eup %5181 }
 0x75f   :  { %v5184_v24 = vpop.eup %5183  ;;  %v1643_v28 = vadd.f32 1.0, %v5182_v19  ;;  %v4390_v19 = vpack.c.bf16 %v1870_v61, %v1866_v58  ;;  %v4372_v58 = vpack.c.bf16 %v1901_v34, %v1897_v29  ;;  %v2183_v34 = vld [vmem:[#allocation10 + $0xb8] sm:$0xff] }
 0x760   :  { %v1649_v33 = vadd.f32 1.0, %v5184_v24  ;;  %v5186_v39 = vpop.eup %5185  ;;  %v1872_v24 = vld [vmem:[#allocation9 + $0xc0] sm:$0xff] }
 0x761   :  { %5189 = vrcp.f32 %v1643_v28  ;;  %v5188_v43 = vpop.eup %5187  ;;  %v1656_v60 = vadd.f32 1.0, %v5186_v39  ;;  %v1876_v28 = vld [vmem:[#allocation9 + $0xe0] sm:$0xff]  ;;  %v4392_v39 = vpack.c.bf16 %v1879_v11, %v1875_v8  ;;  %v1905_v8 = vld [vmem:[#allocation9 + $0x1c8] sm:$0xff] }
 0x762   :  { %5191 = vrcp.f32 %v1649_v33  ;;  %v4360_v33 = vpack.c.bf16 %v1877_v5, %v1873_v2  ;;  %v4362_v6 = vpack.c.bf16 %v1876_v28, %v1872_v24  ;;  %v1898_v2 = vld [vmem:[#allocation9 + $0x190] sm:$0xff]  ;;  %v1909_v11 = vld [vmem:[#allocation9 + $0x1e8] sm:$0xff] }
 0x763   :  { %5193 = vrcp.f32 %v1656_v60  ;;  %v1883_v60 = vld [vmem:[#allocation9 + $0x118] sm:$0xff]  ;;  %v1902_v5 = vld [vmem:[#allocation9 + $0x1b0] sm:$0xff] }
 0x764   :  { %v4406_v28 = vpack.c.bf16 %v1902_v5, %v1898_v2  ;;  %v2189_v2 = vld [vmem:[#allocation10 + $0xe8] sm:$0xff]  ;;  %v2187_v5 = vld [vmem:[#allocation10 + $0xd8] sm:$0xff] }
 0x76b   :  { %v5190_v46 = vpop.eup %5189 }
 0x76c   :  { %v5192_v52 = vpop.eup %5191  ;;  %v1660_v56 = vmul.f32 %v5190_v46, %v5188_v43  ;;  %v1874_v43 = vld [vmem:[#allocation9 + $0xd0] sm:$0xff] }
 0x76d   :  { %v1659_v1 = vmul.f32 %v5192_v52, %v6043_v3  ;;  %v5194_v48 = vpop.eup %5193  ;;  %v4384_v3 = vpack.c.bf16 %v1863_v21, %v1859_v37  ;;  %v1878_v46 = vld [vmem:[#allocation9 + $0xf0] sm:$0xff]  ;;  %v1881_v52 = vld [vmem:[#allocation9 + $0x108] sm:$0xff] }
 0x76e   :  { %v4394_v36 = vpack.c.bf16 %v1878_v46, %v1874_v43  ;;  %v1882_v37 = vld [vmem:[#allocation9 + $0x110] sm:$0xff]  ;;  %v1908_v46 = vld [vmem:[#allocation9 + $0x1e0] sm:$0xff] }
 0x76f   :  { %v6087_v4 = vadd.f32 %v1660_v56, %v1659_v1  ;;  %v1885_v56 = vld [vmem:[#allocation9 + $0x128] sm:$0xff]  ;;  %v1887_v1 = vld [vmem:[#allocation9 + $0x138] sm:$0xff]  ;;  %v1886_v21 = vld [vmem:[#allocation9 + $0x130] sm:$0xff] }
 0x770   :  { %v4364_v32 = vpack.c.bf16 %v1885_v56, %v1881_v52  ;;  %v4396_v17 = vpack.c.bf16 %v1887_v1, %v1883_v60  ;;  %v4398_v59 = vpack.c.bf16 %v1886_v21, %v1882_v37  ;;  %v1906_v52 = vld [vmem:[#allocation9 + $0x1d0] sm:$0xff]  ;;  %v2173_v37 = vld [vmem:[#allocation10 + $0x68] sm:$0xff]  ;;  %v2171_v21 = vld [vmem:[#allocation10 + $0x58] sm:$0xff] }
 0x771   :  { %5195 = vtanh.f32 %v6087_v4  ;;  %v1910_v56 = vld [vmem:[#allocation9 + $0x1f0] sm:$0xff] }
 0x772   :  { %v4410_v1 = vpack.c.bf16 %v1910_v56, %v1906_v52  ;;  %v2197_v52 = vld [vmem:[#allocation10 + $0x128] sm:$0xff]  ;;  %v2195_v56 = vld [vmem:[#allocation10 + $0x118] sm:$0xff] }
 0x77b   :  { %v5196_v26 = vpop.eup %5195 }
 0x77c   :  { %v6090_v44 = vmul.f32 %v5196_v26, %v5194_v48  ;;  %v1889_v48 = vld [vmem:[#allocation9 + $0x148] sm:$0xff] }
 0x77d   :  { %v1893_v26 = vld [vmem:[#allocation9 + $0x168] sm:$0xff] }
 0x77e   :  { %1731 = vmatmul.mubr.f32.vlgmr.msra.gmra.mrb[14].mxu0 %v6090_v44  ;;  %1802 = vmatmul.mubr.f32.vlgmr.msra.gmra.mrb[14].mxu1 %v6090_v44  ;;  %v4368_v51 = vpack.c.bf16 %v1893_v26, %v1889_v48  ;;  %v2175_v26 = vld [vmem:[#allocation10 + $0x78] sm:$0xff] }
 0x77f   :  { %4351 = vmatpush1.bf16.msra.mxu0 %v4350_v30  ;;  %4383 = vmatpush1.bf16.msra.mxu1 %v4382_v53  ;;  %v1891_v30 = vld [vmem:[#allocation9 + $0x158] sm:$0xff] }
 0x780   :  { %4353 = vmatprep.subr.bf16.mxu0 %v4352_v7  ;;  %4385 = vmatprep.subr.bf16.mxu1 %v4384_v3  ;;  %v1895_v53 = vld [vmem:[#allocation9 + $0x178] sm:$0xff]  ;;  %v1888_v7 = vld [vmem:[#allocation9 + $0x140] sm:$0xff] }
 0x781   :  { %1998 = vmatprep.mubr.f32.mxu0 %v5441_v0  ;;  %2111 = vmatprep.mubr.f32.mxu1 %v5441_v0  ;;  %v1892_v3 = vld [vmem:[#allocation9 + $0x160] sm:$0xff]  ;;  %v4400_v13 = vpack.c.bf16 %v1895_v53, %v1891_v30 }
 0x782   :  { %v4370_v42 = vpack.c.bf16 %v1892_v3, %v1888_v7  ;;  %v2168_v30 = vld [vmem:[#allocation10 + $0x40] sm:$0xff]  ;;  %v2170_v7 = vld [vmem:[#allocation10 + $0x50] sm:$0xff] }
 0x783   :  { %4355 = vmatpush1.bf16.msra.mxu0 %v4354_v35  ;;  %4387 = vmatpush1.bf16.msra.mxu1 %v4386_v38  ;;  %v1899_v35 = vld [vmem:[#allocation9 + $0x198] sm:$0xff]  ;;  %v2172_v53 = vld [vmem:[#allocation10 + $0x60] sm:$0xff]  ;;  %v2174_v3 = vld [vmem:[#allocation10 + $0x70] sm:$0xff] }
 0x784   :  { %4357 = vmatprep.subr.bf16.mxu0 %v4356_v50  ;;  %4389 = vmatprep.subr.bf16.mxu1 %v4388_v54  ;;  %v1903_v38 = vld [vmem:[#allocation9 + $0x1b8] sm:$0xff]  ;;  %v1896_v50 = vld [vmem:[#allocation9 + $0x180] sm:$0xff] }
 0x785   :  { %v1900_v54 = vld [vmem:[#allocation9 + $0x1a0] sm:$0xff]  ;;  %v4404_v61 = vpack.c.bf16 %v1903_v38, %v1899_v35 }
 0x786   :  { %v4374_v24 = vpack.c.bf16 %v1900_v54, %v1896_v50  ;;  %v2176_v35 = vld [vmem:[#allocation10 + $0x80] sm:$0xff]  ;;  %v2178_v50 = vld [vmem:[#allocation10 + $0x90] sm:$0xff] }
 0x787   :  { %4359 = vmatpush1.bf16.msra.mxu0 %v4358_v15  ;;  %4391 = vmatpush1.bf16.msra.mxu1 %v4390_v19  ;;  %v1907_v15 = vld [vmem:[#allocation9 + $0x1d8] sm:$0xff]  ;;  %v2180_v38 = vld [vmem:[#allocation10 + $0xa0] sm:$0xff]  ;;  %v2182_v54 = vld [vmem:[#allocation10 + $0xb0] sm:$0xff] }
 0x788   :  { %4361 = vmatprep.subr.bf16.mxu0 %v4360_v33  ;;  %4393 = vmatprep.subr.bf16.mxu1 %v4392_v39  ;;  %v1911_v19 = vld [vmem:[#allocation9 + $0x1f8] sm:$0xff]  ;;  %v1904_v33 = vld [vmem:[#allocation9 + $0x1c0] sm:$0xff]  ;;  %v4376_v39 = vpack.c.bf16 %v1909_v11, %v1905_v8 }
 0x789   :  { %v4408_v43 = vpack.c.bf16 %v1911_v19, %v1907_v15  ;;  %v4378_v60 = vpack.c.bf16 %v1908_v46, %v1904_v33  ;;  %v2191_v11 = vld [vmem:[#allocation10 + $0xf8] sm:$0xff]  ;;  %v2184_v15 = vld [vmem:[#allocation10 + $0xc0] sm:$0xff]  ;;  %v2186_v33 = vld [vmem:[#allocation10 + $0xd0] sm:$0xff] }
 0x78a   :  { %v2188_v19 = vld [vmem:[#allocation10 + $0xe0] sm:$0xff] }
 0x78b   :  { %4363 = vmatpush1.bf16.msra.mxu0 %v4362_v6  ;;  %4395 = vmatpush1.bf16.msra.mxu1 %v4394_v36  ;;  %v2160_v6 = vld [vmem:[#allocation10] sm:$0xff] }
 0x78c   :  { %4365 = vmatprep.subr.bf16.mxu0 %v4364_v32  ;;  %4397 = vmatprep.subr.bf16.mxu1 %v4396_v17  ;;  %v2166_v32 = vld [vmem:[#allocation10 + $0x30] sm:$0xff]  ;;  %v2169_v17 = vld [vmem:[#allocation10 + $0x48] sm:$0xff] }
 0x78d   :  { %v6136_v48 = vpack.c.bf16 %v2173_v37, %v2169_v17 }
 0x78f   :  { %4367 = vmatpush1.bf16.msra.mxu0 %v4366_v9  ;;  %4399 = vmatpush1.bf16.msra.mxu1 %v4398_v59  ;;  %v6138_v9 = vpack.c.bf16 %v2175_v26, %v2171_v21  ;;  %v6140_v59 = vpack.c.bf16 %v2172_v53, %v2168_v30  ;;  %v2203_v21 = vld [vmem:[#allocation10 + $0x158] sm:$0xff]  ;;  %v2200_v30 = vld [vmem:[#allocation10 + $0x140] sm:$0xff] }
 0x790   :  { %4369 = vmatprep.subr.bf16.mxu0 %v4368_v51  ;;  %4401 = vmatprep.subr.bf16.mxu1 %v4400_v13  ;;  %v6143_v51 = vpack.c.bf16 %v2174_v3, %v2170_v7  ;;  %v2177_v13 = vld [vmem:[#allocation10 + $0x88] sm:$0xff]  ;;  %v2207_v26 = vld [vmem:[#allocation10 + $0x178] sm:$0xff]  ;;  %v2204_v7 = vld [vmem:[#allocation10 + $0x160] sm:$0xff] }
 0x791   :  { %v6148_v29 = vpack.c.bf16 %v2181_v22, %v2177_v13  ;;  %v6184_v53 = vpack.c.bf16 %v2207_v26, %v2203_v21  ;;  %v2202_v3 = vld [vmem:[#allocation10 + $0x150] sm:$0xff]  ;;  %v6187_v22 = vpack.c.bf16 %v2204_v7, %v2200_v30 }
 0x792   :  { %v2206_v13 = vld [vmem:[#allocation10 + $0x170] sm:$0xff] }
 0x793   :  { %4371 = vmatpush1.bf16.msra.mxu0 %v4370_v42  ;;  %4403 = vmatpush1.bf16.msra.mxu1 %v4402_v47  ;;  %v6150_v42 = vpack.c.bf16 %v2183_v34, %v2179_v25  ;;  %v6152_v47 = vpack.c.bf16 %v2180_v38, %v2176_v35  ;;  %v2209_v25 = vld [vmem:[#allocation10 + $0x188] sm:$0xff]  ;;  %v2211_v35 = vld [vmem:[#allocation10 + $0x198] sm:$0xff]  ;;  %v6191_v38 = vpack.c.bf16 %v2206_v13, %v2202_v3 }
 0x794   :  { %4373 = vmatprep.subr.bf16.mxu0 %v4372_v58  ;;  %4405 = vmatprep.subr.bf16.mxu1 %v4404_v61  ;;  %v6155_v58 = vpack.c.bf16 %v2182_v54, %v2178_v50  ;;  %v2185_v61 = vld [vmem:[#allocation10 + $0xc8] sm:$0xff]  ;;  %v2215_v54 = vld [vmem:[#allocation10 + $0x1b8] sm:$0xff] }
 0x795   :  { %v6160_v8 = vpack.c.bf16 %v2189_v2, %v2185_v61  ;;  %v2213_v34 = vld [vmem:[#allocation10 + $0x1a8] sm:$0xff]  ;;  %v2208_v61 = vld [vmem:[#allocation10 + $0x180] sm:$0xff] }
 0x796   :  { %v6193_v50 = vpack.c.bf16 %v2213_v34, %v2209_v25  ;;  %v2212_v2 = vld [vmem:[#allocation10 + $0x1a0] sm:$0xff] }
 0x797   :  { %4375 = vmatpush1.bf16.msra.mxu0 %v4374_v24  ;;  %4407 = vmatpush1.bf16.msra.mxu1 %v4406_v28  ;;  %v6162_v24 = vpack.c.bf16 %v2191_v11, %v2187_v5  ;;  %v6164_v28 = vpack.c.bf16 %v2188_v19, %v2184_v15  ;;  %v6196_v5 = vpack.c.bf16 %v2215_v54, %v2211_v35  ;;  %v2210_v11 = vld [vmem:[#allocation10 + $0x190] sm:$0xff] }
 0x798   :  { %4377 = vmatprep.subr.bf16.mxu0 %v4376_v39  ;;  %4409 = vmatprep.subr.bf16.mxu1 %v4408_v43  ;;  %v2190_v39 = vld [vmem:[#allocation10 + $0xf0] sm:$0xff]  ;;  %v2193_v43 = vld [vmem:[#allocation10 + $0x108] sm:$0xff]  ;;  %v6199_v19 = vpack.c.bf16 %v2212_v2, %v2208_v61 }
 0x799   :  { %v6167_v46 = vpack.c.bf16 %v2190_v39, %v2186_v33  ;;  %v2214_v15 = vld [vmem:[#allocation10 + $0x1b0] sm:$0xff]  ;;  %v2217_v39 = vld [vmem:[#allocation10 + $0x1c8] sm:$0xff] }
 0x79a   :  { %v6203_v33 = vpack.c.bf16 %v2214_v15, %v2210_v11 }
 0x79b   :  { %4379 = vmatpush1.bf16.msra.mxu0 %v4378_v60  ;;  %4411 = vmatpush1.bf16.msra.mxu1 %v4410_v1  ;;  %v2199_v60 = vld [vmem:[#allocation10 + $0x138] sm:$0xff]  ;;  %v6171_v1 = vpack.c.bf16 %v2197_v52, %v2193_v43  ;;  %v2221_v43 = vld [vmem:[#allocation10 + $0x1e8] sm:$0xff] }
 0x79c   :  { %v2219_v52 = vld [vmem:[#allocation10 + $0x1d8] sm:$0xff] }
 0x79e   :  { %1999 = vmatmul.mubr.f32.vlgmr.msra.gmra.mrb[16].mxu0 %v5816_v31  ;;  %2112 = vmatmul.mubr.f32.vlgmr.msra.gmra.mrb[16].mxu1 %v5816_v31  ;;  %v2161_v31 = vld [vmem:[#allocation10 + $0x8] sm:$0xff] }
 0x79f   :  { %2004 = vmatprep.mubr.f32.mxu0 %v5441_v0  ;;  %2117 = vmatprep.mubr.f32.mxu1 %v5441_v0 }
 0x7a2   :  { %2005 = vmatmul.mubr.f32.gmra.mrb[18].mxu0 %v5862_v49  ;;  %2118 = vmatmul.mubr.f32.gmra.mrb[18].mxu1 %v5862_v49  ;;  %v2165_v49 = vld [vmem:[#allocation10 + $0x28] sm:$0xff] }
 0x7a3   :  { %2010 = vmatprep.mubr.f32.mxu0 %v5441_v0  ;;  %2123 = vmatprep.mubr.f32.mxu1 %v5441_v0 }
 0x7a6   :  { %2011 = vmatmul.mubr.f32.gmra.mrb[20].mxu0 %v5908_v62  ;;  %2124 = vmatmul.mubr.f32.gmra.mrb[20].mxu1 %v5908_v62  ;;  %v2163_v62 = vld [vmem:[#allocation10 + $0x18] sm:$0xff] }
 0x7a7   :  { %2016 = vmatprep.mubr.f32.mxu0 %v5441_v0  ;;  %2129 = vmatprep.mubr.f32.mxu1 %v5441_v0 }
 0x7aa   :  { %2017 = vmatmul.mubr.f32.gmra.mrb[22].mxu0 %v5954_v27  ;;  %2130 = vmatmul.mubr.f32.gmra.mrb[22].mxu1 %v5954_v27  ;;  %v6124_v27 = vpack.c.bf16 %v2165_v49, %v2161_v31  ;;  %v6173_v31 = vpack.c.bf16 %v2199_v60, %v2195_v56  ;;  %v2192_v49 = vld [vmem:[#allocation10 + $0x100] sm:$0xff]  ;;  %v6208_v56 = vpack.c.bf16 %v2221_v43, %v2217_v39  ;;  %v2223_v60 = vld [vmem:[#allocation10 + $0x1f8] sm:$0xff] }
 0x7ab   :  { %2022 = vmatprep.mubr.f32.mxu0 %v5441_v0  ;;  %2135 = vmatprep.mubr.f32.mxu1 %v5441_v0 }
 0x7ac   :  { %4413 = vmatprep.subr.bf16.mxu0 %v6124_v27 }
 0x7ae   :  { %2023 = vmatmul.mubr.f32.gmra.mrb[24].mxu0 %v6000_v55  ;;  %2136 = vmatmul.mubr.f32.gmra.mrb[24].mxu1 %v6000_v55  ;;  %v2167_v55 = vld [vmem:[#allocation10 + $0x38] sm:$0xff] }
 0x7af   :  { %2028 = vmatprep.mubr.f32.mxu0 %v5441_v0  ;;  %2141 = vmatprep.mubr.f32.mxu1 %v5441_v0  ;;  %v6126_v36 = vpack.c.bf16 %v2167_v55, %v2163_v62  ;;  %v2196_v62 = vld [vmem:[#allocation10 + $0x120] sm:$0xff]  ;;  %v2194_v55 = vld [vmem:[#allocation10 + $0x110] sm:$0xff] }
 0x7b1   :  { %4445 = vmatprep.subr.bf16.mxu1 %v6126_v36 }
 0x7b2   :  { %2029 = vmatmul.mubr.f32.gmra.mrb[26].mxu0 %v6046_v63  ;;  %2142 = vmatmul.mubr.f32.gmra.mrb[26].mxu1 %v6046_v63  ;;  %v2164_v63 = vld [vmem:[#allocation10 + $0x20] sm:$0xff] }
 0x7b3   :  { %2034 = vmatprep.mubr.f32.mxu0 %v5441_v0  ;;  %2147 = vmatprep.mubr.f32.mxu1 %v5441_v0  ;;  %v6128_v20 = vpack.c.bf16 %v2164_v63, %v2160_v6  ;;  %v6176_v6 = vpack.c.bf16 %v2196_v62, %v2192_v49  ;;  %v2198_v63 = vld [vmem:[#allocation10 + $0x130] sm:$0xff]  ;;  %v2216_v49 = vld [vmem:[#allocation10 + $0x1c0] sm:$0xff] }
 0x7b4   :  { %v6180_v17 = vpack.c.bf16 %v2198_v63, %v2194_v55  ;;  %v2220_v62 = vld [vmem:[#allocation10 + $0x1e0] sm:$0xff]  ;;  %v6210_v55 = vpack.c.bf16 %v2223_v60, %v2219_v52 }
 0x7b5   :  { %4415 = vmatpush1.bf16.msra.mxu0 %v6128_v20  ;;  %v6212_v63 = vpack.c.bf16 %v2220_v62, %v2216_v49 }
 0x7b6   :  { %2035 = vmatmul.mubr.f32.gmra.mrb[28].mxu0 %v6090_v44  ;;  %2148 = vmatmul.mubr.f32.gmra.mrb[28].mxu1 %v6090_v44  ;;  %v6131_v44 = vpack.c.bf16 %v2166_v32, %v2162_v57  ;;  %v2201_v57 = vld [vmem:[#allocation10 + $0x148] sm:$0xff] }
 0x7b7   :  { %2040 = vmatprep.mubr.f32.mxu0 %v5441_v0  ;;  %2153 = vmatprep.mubr.f32.mxu1 %v5441_v0  ;;  %v2205_v32 = vld [vmem:[#allocation10 + $0x168] sm:$0xff] }
 0x7b8   :  { %4447 = vmatpush1.bf16.msra.mxu1 %v6131_v44  ;;  %4417 = vmatprep.subr.bf16.mxu0 %v6136_v48  ;;  %v6182_v37 = vpack.c.bf16 %v2205_v32, %v2201_v57  ;;  %v2218_v57 = vld [vmem:[#allocation10 + $0x1d0] sm:$0xff] }
 0x7b9   :  { %4449 = vmatprep.subr.bf16.mxu1 %v6138_v9  ;;  %4419 = vmatpush1.bf16.msra.mxu0 %v6140_v59  ;;  %v2222_v32 = vld [vmem:[#allocation10 + $0x1f0] sm:$0xff] }
 0x7ba   :  { %4421 = vmatprep.subr.bf16.mxu0 %v6148_v29  ;;  %v6215_v21 = vpack.c.bf16 %v2222_v32, %v2218_v57 }
 0x7bc   :  { %4451 = vmatpush1.bf16.msra.mxu1 %v6143_v51 }
 0x7bd   :  { %4453 = vmatprep.subr.bf16.mxu1 %v6150_v42  ;;  %4423 = vmatpush1.bf16.msra.mxu0 %v6152_v47 }
 0x7be   :  { %4425 = vmatprep.subr.bf16.mxu0 %v6160_v8 }
 0x7c0   :  { %4455 = vmatpush1.bf16.msra.mxu1 %v6155_v58 }
 0x7c1   :  { %4457 = vmatprep.subr.bf16.mxu1 %v6162_v24  ;;  %4427 = vmatpush1.bf16.msra.mxu0 %v6164_v28 }
 0x7c2   :  { %4429 = vmatprep.subr.bf16.mxu0 %v6171_v1 }
 0x7c4   :  { %4459 = vmatpush1.bf16.msra.mxu1 %v6167_v46 }
 0x7c5   :  { %4461 = vmatprep.subr.bf16.mxu1 %v6173_v31  ;;  %4431 = vmatpush1.bf16.msra.mxu0 %v6176_v6 }
 0x7c6   :  { %4433 = vmatprep.subr.bf16.mxu0 %v6182_v37 }
 0x7c8   :  { %4463 = vmatpush1.bf16.msra.mxu1 %v6180_v17 }
 0x7c9   :  { %4465 = vmatprep.subr.bf16.mxu1 %v6184_v53  ;;  %4435 = vmatpush1.bf16.msra.mxu0 %v6187_v22 }
 0x7ca   :  { %4437 = vmatprep.subr.bf16.mxu0 %v6193_v50 }
 0x7cc   :  { %4467 = vmatpush1.bf16.msra.mxu1 %v6191_v38 }
 0x7cd   :  { %4469 = vmatprep.subr.bf16.mxu1 %v6196_v5  ;;  %4439 = vmatpush1.bf16.msra.mxu0 %v6199_v19 }
 0x7ce   :  { %4441 = vmatprep.subr.bf16.mxu0 %v6208_v56 }
 0x7d0   :  { %4471 = vmatpush1.bf16.msra.mxu1 %v6203_v33 }
 0x7d1   :  { %4473 = vmatprep.subr.bf16.mxu1 %v6210_v55  ;;  %4443 = vmatpush1.bf16.msra.mxu0 %v6212_v63 }
 0x7d2   :  { %4477 = vmatprep.subr.bf16.mxu0 %v6124_v27 }
 0x7d4   :  { %4475 = vmatpush1.bf16.msra.mxu1 %v6215_v21 }
 0x7d5   :  { %4509 = vmatprep.subr.bf16.mxu1 %v6126_v36 }
 0x851   :  { %v1732_v26 = vpop.f32.mrb[14].mxu0  ;;  %v1803_v30 = vpop.f32.mrb[14].mxu1 }
 0x852   :  { %v4962_v7 = vadd.f32 %v1732_v26, %v5790_v16  ;;  %v1734_v3 = vpop.f32.mrb[15].mxu0  ;;  %v1805_v13 = vpop.f32.mrb[15].mxu1  ;;  %v4978_v2 = vadd.f32 %v1803_v30, %v5807_v45  ;;  %v1912_v30 = vld [vmem:[%s6625_s8] sm:$0xf] }
 0x853   :  { %v4963_v25 = vadd.f32 %v1734_v3, %v5794_v18  ;;  %v4979_v54 = vadd.f32 %v1805_v13, %v5801_v40  ;;  %v6281_v3 = vrot.slane %v1912_v30, %v132_v14  ;;  %v6292_v14 = vrot.slane %v1912_v30, %v136_v41 }
 0x854   :  { %v3748_v34 = vmul.f32 -1.442695, %v4962_v7  ;;  %v6277_v7 = vrot.slane %v1912_v30, %v128_v12 }
 0x855   :  { %v3749_v35 = vmul.f32 -1.442695, %v4963_v25  ;;  %v3750_v61 = vmul.f32 -1.442695, %v4979_v54 }
 0x856   :  { %5197 = vpow2.f32 %v3748_v34 }
 0x857   :  { %5199 = vpow2.f32 %v3749_v35 }
 0x858   :  { %5201 = vpow2.f32 %v3750_v61 }
 0x859   :  { %5203 = vtanh.f32 %v4978_v2 }
 0x860   :  { %v5198_v11 = vpop.eup %5197 }
 0x861   :  { %v5200_v15 = vpop.eup %5199  ;;  %v1815_v39 = vadd.f32 1.0, %v5198_v11 }
 0x862   :  { %v1821_v43 = vadd.f32 1.0, %v5200_v15  ;;  %v5202_v16 = vpop.eup %5201  ;;  %v6287_v15 = vrot.slane %v1912_v30, %v140_v23 }
 0x863   :  { %5205 = vrcp.f32 %v1815_v39  ;;  %v5204_v52 = vpop.eup %5203  ;;  %v1828_v62 = vadd.f32 1.0, %v5202_v16 }
 0x864   :  { %5207 = vrcp.f32 %v1821_v43 }
 0x865   :  { %5209 = vrcp.f32 %v1828_v62  ;;  %v105_v62 = vld [vmem:[%s6619_s2 + $0x8] sm:$0xff] }
 0x86d   :  { %v5206_v18 = vpop.eup %5205 }
 0x86e   :  { %v5208_v60 = vpop.eup %5207  ;;  %v1832_v49 = vmul.f32 %v5206_v18, %v5204_v52 }
 0x86f   :  { %v1831_v57 = vmul.f32 %v5208_v60, %v6087_v4  ;;  %v5210_v45 = vpop.eup %5209  ;;  %v101_v4 = vld [vmem:[%s6618_s1 + $0x8] sm:$0xff] }
 0x871   :  { %v1833_v40 = vadd.f32 %v1832_v49, %v1831_v57 }
 0x873   :  { %5211 = vtanh.f32 %v1833_v40  ;;  %3599 = vst [vmem:[%s6629_s12] sm:$0xff] %v1833_v40 }
 0x87d   :  { %v5212_v32 = vpop.eup %5211 }
 0x87e   :  { %v1835_v26 = vmul.f32 %v5212_v32, %v5210_v45 }
 0x880   :  { %2041 = vmatmul.mubr.f32.gmra.mrb[30].mxu0 %v1835_v26  ;;  %3595 = vst [vmem:[%s6628_s11] sm:$0xff] %v1835_v26  ;;  %2154 = vmatmul.mubr.f32.gmra.mrb[30].mxu1 %v1835_v26 }
 0x881   :  { %2292 = vmatprep.mubr.f32.mxu0 %v5441_v0  ;;  %2363 = vmatprep.mubr.f32.mxu1 %v5441_v0 }
 0x884   :  { %2293 = vmatmul.mubr.f32.vlgmr.msra.gmra.mrb[16].mxu0 %v101_v4  ;;  %2364 = vmatmul.mubr.f32.vlgmr.msra.gmra.mrb[16].mxu1 %v101_v4 }
 0x885   :  { %4479 = vmatpush1.bf16.msra.mxu0 %v6128_v20  ;;  %4511 = vmatpush1.bf16.msra.mxu1 %v6131_v44 }
 0x886   :  { %4481 = vmatprep.subr.bf16.mxu0 %v6136_v48  ;;  %4513 = vmatprep.subr.bf16.mxu1 %v6138_v9 }
 0x887   :  { %2462 = vmatprep.mubr.f32.mxu0 %v5441_v0  ;;  %2533 = vmatprep.mubr.f32.mxu1 %v5441_v0 }
 0x889   :  { %4483 = vmatpush1.bf16.msra.mxu0 %v6140_v59  ;;  %4515 = vmatpush1.bf16.msra.mxu1 %v6143_v51 }
 0x88a   :  { %4485 = vmatprep.subr.bf16.mxu0 %v6148_v29  ;;  %4517 = vmatprep.subr.bf16.mxu1 %v6150_v42 }
 0x88d   :  { %4487 = vmatpush1.bf16.msra.mxu0 %v6152_v47  ;;  %4519 = vmatpush1.bf16.msra.mxu1 %v6155_v58 }
 0x88e   :  { %4489 = vmatprep.subr.bf16.mxu0 %v6160_v8  ;;  %4521 = vmatprep.subr.bf16.mxu1 %v6162_v24 }
 0x891   :  { %4491 = vmatpush1.bf16.msra.mxu0 %v6164_v28  ;;  %4523 = vmatpush1.bf16.msra.mxu1 %v6167_v46 }
 0x892   :  { %4493 = vmatprep.subr.bf16.mxu0 %v6171_v1  ;;  %4525 = vmatprep.subr.bf16.mxu1 %v6173_v31 }
 0x895   :  { %4495 = vmatpush1.bf16.msra.mxu0 %v6176_v6  ;;  %4527 = vmatpush1.bf16.msra.mxu1 %v6180_v17 }
 0x896   :  { %4497 = vmatprep.subr.bf16.mxu0 %v6182_v37  ;;  %4529 = vmatprep.subr.bf16.mxu1 %v6184_v53 }
 0x899   :  { %4499 = vmatpush1.bf16.msra.mxu0 %v6187_v22  ;;  %4531 = vmatpush1.bf16.msra.mxu1 %v6191_v38 }
 0x89a   :  { %4501 = vmatprep.subr.bf16.mxu0 %v6193_v50  ;;  %4533 = vmatprep.subr.bf16.mxu1 %v6196_v5 }
 0x89d   :  { %4503 = vmatpush1.bf16.msra.mxu0 %v6199_v19  ;;  %4535 = vmatpush1.bf16.msra.mxu1 %v6203_v33 }
 0x89e   :  { %4505 = vmatprep.subr.bf16.mxu0 %v6208_v56  ;;  %4537 = vmatprep.subr.bf16.mxu1 %v6210_v55 }
 0x8a1   :  { %4507 = vmatpush1.bf16.msra.mxu0 %v6212_v63  ;;  %4539 = vmatpush1.bf16.msra.mxu1 %v6215_v21 }
 0x8a2   :  { %4541 = vmatprep.subr.bf16.mxu0 %v6124_v27  ;;  %4573 = vmatprep.subr.bf16.mxu1 %v6126_v36 }
 0x957   :  { %v2294_v13 = vpop.f32.mrb[16].mxu0  ;;  %v2365_v25 = vpop.f32.mrb[16].mxu1 }
 0x958   :  { %v4980_v34 = vadd.f32 %v2294_v13, %v6277_v7  ;;  %v2296_v35 = vpop.f32.mrb[17].mxu0  ;;  %v2367_v54 = vpop.f32.mrb[17].mxu1  ;;  %v4996_v43 = vadd.f32 %v2365_v25, %v6292_v14 }
 0x959   :  { %v4981_v61 = vadd.f32 %v2296_v35, %v6281_v3  ;;  %v4997_v12 = vadd.f32 %v2367_v54, %v6287_v15 }
 0x95a   :  { %v3751_v2 = vmul.f32 -1.442695, %v4980_v34 }
 0x95b   :  { %v3752_v11 = vmul.f32 -1.442695, %v4981_v61  ;;  %v3753_v39 = vmul.f32 -1.442695, %v4997_v12 }
 0x95c   :  { %5213 = vpow2.f32 %v3751_v2 }
 0x95d   :  { %5215 = vpow2.f32 %v3752_v11 }
 0x95e   :  { %5217 = vpow2.f32 %v3753_v39 }
 0x95f   :  { %5219 = vtanh.f32 %v4996_v43 }
 0x966   :  { %v5214_v16 = vpop.eup %5213 }
 0x967   :  { %v5216_v52 = vpop.eup %5215  ;;  %v2377_v18 = vadd.f32 1.0, %v5214_v16 }
 0x968   :  { %v2383_v60 = vadd.f32 1.0, %v5216_v52  ;;  %v5218_v23 = vpop.eup %5217 }
 0x969   :  { %5221 = vrcp.f32 %v2377_v18  ;;  %v5220_v49 = vpop.eup %5219  ;;  %v2390_v40 = vadd.f32 1.0, %v5218_v23 }
 0x96a   :  { %5223 = vrcp.f32 %v2383_v60 }
 0x96b   :  { %5225 = vrcp.f32 %v2390_v40 }
 0x973   :  { %v5222_v10 = vpop.eup %5221 }
 0x974   :  { %v5224_v41 = vpop.eup %5223  ;;  %v2394_v57 = vmul.f32 %v5222_v10, %v5220_v49 }
 0x975   :  { %v2393_v45 = vmul.f32 %v5224_v41, %v105_v62  ;;  %v5226_v26 = vpop.eup %5225 }
 0x977   :  { %v6298_v32 = vadd.f32 %v2394_v57, %v2393_v45 }
 0x979   :  { %5227 = vtanh.f32 %v6298_v32 }
 0x983   :  { %v5228_v4 = vpop.eup %5227 }
 0x984   :  { %v2397_v30 = vmul.f32 %v5228_v4, %v5226_v26 }
 0x986   :  { %2463 = vmatmul.mubr.f32.vlgmr.msra.gmra.mrb[18].mxu0 %v2397_v30  ;;  %2534 = vmatmul.mubr.f32.vlgmr.msra.gmra.mrb[18].mxu1 %v2397_v30 }
 0x987   :  { %4543 = vmatpush1.bf16.msra.mxu0 %v6128_v20  ;;  %4575 = vmatpush1.bf16.msra.mxu1 %v6131_v44 }
 0x988   :  { %4545 = vmatprep.subr.bf16.mxu0 %v6136_v48  ;;  %4577 = vmatprep.subr.bf16.mxu1 %v6138_v9 }
 0x989   :  { %2632 = vmatprep.mubr.f32.mxu0 %v5441_v0  ;;  %2703 = vmatprep.mubr.f32.mxu1 %v5441_v0 }
 0x98b   :  { %4547 = vmatpush1.bf16.msra.mxu0 %v6140_v59  ;;  %4579 = vmatpush1.bf16.msra.mxu1 %v6143_v51 }
 0x98c   :  { %4549 = vmatprep.subr.bf16.mxu0 %v6148_v29  ;;  %4581 = vmatprep.subr.bf16.mxu1 %v6150_v42 }
 0x98f   :  { %4551 = vmatpush1.bf16.msra.mxu0 %v6152_v47  ;;  %4583 = vmatpush1.bf16.msra.mxu1 %v6155_v58 }
 0x990   :  { %4553 = vmatprep.subr.bf16.mxu0 %v6160_v8  ;;  %4585 = vmatprep.subr.bf16.mxu1 %v6162_v24 }
 0x993   :  { %4555 = vmatpush1.bf16.msra.mxu0 %v6164_v28  ;;  %4587 = vmatpush1.bf16.msra.mxu1 %v6167_v46 }
 0x994   :  { %4557 = vmatprep.subr.bf16.mxu0 %v6171_v1  ;;  %4589 = vmatprep.subr.bf16.mxu1 %v6173_v31 }
 0x997   :  { %4559 = vmatpush1.bf16.msra.mxu0 %v6176_v6  ;;  %4591 = vmatpush1.bf16.msra.mxu1 %v6180_v17 }
 0x998   :  { %4561 = vmatprep.subr.bf16.mxu0 %v6182_v37  ;;  %4593 = vmatprep.subr.bf16.mxu1 %v6184_v53 }
 0x99b   :  { %4563 = vmatpush1.bf16.msra.mxu0 %v6187_v22  ;;  %4595 = vmatpush1.bf16.msra.mxu1 %v6191_v38 }
 0x99c   :  { %4565 = vmatprep.subr.bf16.mxu0 %v6193_v50  ;;  %4597 = vmatprep.subr.bf16.mxu1 %v6196_v5 }
 0x99f   :  { %4567 = vmatpush1.bf16.msra.mxu0 %v6199_v19  ;;  %4599 = vmatpush1.bf16.msra.mxu1 %v6203_v33 }
 0x9a0   :  { %4569 = vmatprep.subr.bf16.mxu0 %v6208_v56  ;;  %4601 = vmatprep.subr.bf16.mxu1 %v6210_v55 }
 0x9a3   :  { %4571 = vmatpush1.bf16.msra.mxu0 %v6212_v63  ;;  %4603 = vmatpush1.bf16.msra.mxu1 %v6215_v21 }
 0x9a4   :  { %4605 = vmatprep.subr.bf16.mxu0 %v6124_v27  ;;  %4637 = vmatprep.subr.bf16.mxu1 %v6126_v36 }
 0xa59   :  { %v2464_v13 = vpop.f32.mrb[18].mxu0  ;;  %v2535_v25 = vpop.f32.mrb[18].mxu1 }
 0xa5a   :  { %v4982_v34 = vadd.f32 %v2464_v13, %v6277_v7  ;;  %v2466_v35 = vpop.f32.mrb[19].mxu0  ;;  %v2537_v54 = vpop.f32.mrb[19].mxu1  ;;  %v4998_v43 = vadd.f32 %v2535_v25, %v6292_v14 }
 0xa5b   :  { %v4983_v61 = vadd.f32 %v2466_v35, %v6281_v3  ;;  %v4999_v12 = vadd.f32 %v2537_v54, %v6287_v15 }
 0xa5c   :  { %v3754_v2 = vmul.f32 -1.442695, %v4982_v34 }
 0xa5d   :  { %v3755_v11 = vmul.f32 -1.442695, %v4983_v61  ;;  %v3756_v39 = vmul.f32 -1.442695, %v4999_v12 }
 0xa5e   :  { %5229 = vpow2.f32 %v3754_v2 }
 0xa5f   :  { %5231 = vpow2.f32 %v3755_v11 }
 0xa60   :  { %5233 = vpow2.f32 %v3756_v39 }
 0xa61   :  { %5235 = vtanh.f32 %v4998_v43 }
 0xa68   :  { %v5230_v16 = vpop.eup %5229 }
 0xa69   :  { %v5232_v52 = vpop.eup %5231  ;;  %v2547_v18 = vadd.f32 1.0, %v5230_v16 }
 0xa6a   :  { %v2553_v60 = vadd.f32 1.0, %v5232_v52  ;;  %v5234_v23 = vpop.eup %5233 }
 0xa6b   :  { %5237 = vrcp.f32 %v2547_v18  ;;  %v5236_v49 = vpop.eup %5235  ;;  %v2560_v57 = vadd.f32 1.0, %v5234_v23 }
 0xa6c   :  { %5239 = vrcp.f32 %v2553_v60 }
 0xa6d   :  { %5241 = vrcp.f32 %v2560_v57 }
 0xa75   :  { %v5238_v62 = vpop.eup %5237 }
 0xa76   :  { %v5240_v10 = vpop.eup %5239  ;;  %v2564_v41 = vmul.f32 %v5238_v62, %v5236_v49 }
 0xa77   :  { %v2563_v40 = vmul.f32 %v5240_v10, %v6298_v32  ;;  %v5242_v26 = vpop.eup %5241 }
 0xa79   :  { %v6340_v45 = vadd.f32 %v2564_v41, %v2563_v40 }
 0xa7b   :  { %5243 = vtanh.f32 %v6340_v45 }
 0xa85   :  { %v5244_v4 = vpop.eup %5243 }
 0xa86   :  { %v2567_v30 = vmul.f32 %v5244_v4, %v5242_v26 }
 0xa88   :  { %2633 = vmatmul.mubr.f32.vlgmr.msra.gmra.mrb[20].mxu0 %v2567_v30  ;;  %2704 = vmatmul.mubr.f32.vlgmr.msra.gmra.mrb[20].mxu1 %v2567_v30 }
 0xa89   :  { %4607 = vmatpush1.bf16.msra.mxu0 %v6128_v20  ;;  %4639 = vmatpush1.bf16.msra.mxu1 %v6131_v44 }
 0xa8a   :  { %4609 = vmatprep.subr.bf16.mxu0 %v6136_v48  ;;  %4641 = vmatprep.subr.bf16.mxu1 %v6138_v9 }
 0xa8b   :  { %2802 = vmatprep.mubr.f32.mxu0 %v5441_v0  ;;  %2873 = vmatprep.mubr.f32.mxu1 %v5441_v0 }
 0xa8d   :  { %4611 = vmatpush1.bf16.msra.mxu0 %v6140_v59  ;;  %4643 = vmatpush1.bf16.msra.mxu1 %v6143_v51 }
 0xa8e   :  { %4613 = vmatprep.subr.bf16.mxu0 %v6148_v29  ;;  %4645 = vmatprep.subr.bf16.mxu1 %v6150_v42 }
 0xa91   :  { %4615 = vmatpush1.bf16.msra.mxu0 %v6152_v47  ;;  %4647 = vmatpush1.bf16.msra.mxu1 %v6155_v58 }
 0xa92   :  { %4617 = vmatprep.subr.bf16.mxu0 %v6160_v8  ;;  %4649 = vmatprep.subr.bf16.mxu1 %v6162_v24 }
 0xa95   :  { %4619 = vmatpush1.bf16.msra.mxu0 %v6164_v28  ;;  %4651 = vmatpush1.bf16.msra.mxu1 %v6167_v46 }
 0xa96   :  { %4621 = vmatprep.subr.bf16.mxu0 %v6171_v1  ;;  %4653 = vmatprep.subr.bf16.mxu1 %v6173_v31 }
 0xa99   :  { %4623 = vmatpush1.bf16.msra.mxu0 %v6176_v6  ;;  %4655 = vmatpush1.bf16.msra.mxu1 %v6180_v17 }
 0xa9a   :  { %4625 = vmatprep.subr.bf16.mxu0 %v6182_v37  ;;  %4657 = vmatprep.subr.bf16.mxu1 %v6184_v53 }
 0xa9d   :  { %4627 = vmatpush1.bf16.msra.mxu0 %v6187_v22  ;;  %4659 = vmatpush1.bf16.msra.mxu1 %v6191_v38 }
 0xa9e   :  { %4629 = vmatprep.subr.bf16.mxu0 %v6193_v50  ;;  %4661 = vmatprep.subr.bf16.mxu1 %v6196_v5 }
 0xaa1   :  { %4631 = vmatpush1.bf16.msra.mxu0 %v6199_v19  ;;  %4663 = vmatpush1.bf16.msra.mxu1 %v6203_v33 }
 0xaa2   :  { %4633 = vmatprep.subr.bf16.mxu0 %v6208_v56  ;;  %4665 = vmatprep.subr.bf16.mxu1 %v6210_v55 }
 0xaa5   :  { %4635 = vmatpush1.bf16.msra.mxu0 %v6212_v63  ;;  %4667 = vmatpush1.bf16.msra.mxu1 %v6215_v21 }
 0xaa6   :  { %4669 = vmatprep.subr.bf16.mxu0 %v6124_v27  ;;  %4701 = vmatprep.subr.bf16.mxu1 %v6126_v36 }
 0xb5b   :  { %v2634_v32 = vpop.f32.mrb[20].mxu0  ;;  %v2705_v13 = vpop.f32.mrb[20].mxu1 }
 0xb5c   :  { %v4984_v25 = vadd.f32 %v2634_v32, %v6277_v7  ;;  %v2636_v34 = vpop.f32.mrb[21].mxu0  ;;  %v2707_v35 = vpop.f32.mrb[21].mxu1  ;;  %v5000_v39 = vadd.f32 %v2705_v13, %v6292_v14 }
 0xb5d   :  { %v4985_v54 = vadd.f32 %v2636_v34, %v6281_v3  ;;  %v5001_v11 = vadd.f32 %v2707_v35, %v6287_v15 }
 0xb5e   :  { %v3757_v61 = vmul.f32 -1.442695, %v4984_v25 }
 0xb5f   :  { %v3758_v2 = vmul.f32 -1.442695, %v4985_v54  ;;  %v3759_v12 = vmul.f32 -1.442695, %v5001_v11 }
 0xb60   :  { %5245 = vpow2.f32 %v3757_v61 }
 0xb61   :  { %5247 = vpow2.f32 %v3758_v2 }
 0xb62   :  { %5249 = vpow2.f32 %v3759_v12 }
 0xb63   :  { %5251 = vtanh.f32 %v5000_v39 }
 0xb6a   :  { %v5246_v43 = vpop.eup %5245 }
 0xb6b   :  { %v5248_v16 = vpop.eup %5247  ;;  %v2717_v52 = vadd.f32 1.0, %v5246_v43 }
 0xb6c   :  { %v2723_v18 = vadd.f32 1.0, %v5248_v16  ;;  %v5250_v60 = vpop.eup %5249 }
 0xb6d   :  { %5253 = vrcp.f32 %v2717_v52  ;;  %v5252_v23 = vpop.eup %5251  ;;  %v2730_v41 = vadd.f32 1.0, %v5250_v60 }
 0xb6e   :  { %5255 = vrcp.f32 %v2723_v18 }
 0xb6f   :  { %5257 = vrcp.f32 %v2730_v41 }
 0xb77   :  { %v5254_v49 = vpop.eup %5253 }
 0xb78   :  { %v5256_v62 = vpop.eup %5255  ;;  %v2734_v10 = vmul.f32 %v5254_v49, %v5252_v23 }
 0xb79   :  { %v2733_v57 = vmul.f32 %v5256_v62, %v6340_v45  ;;  %v5258_v26 = vpop.eup %5257 }
 0xb7b   :  { %v6382_v40 = vadd.f32 %v2734_v10, %v2733_v57 }
 0xb7d   :  { %5259 = vtanh.f32 %v6382_v40 }
 0xb87   :  { %v5260_v4 = vpop.eup %5259 }
 0xb88   :  { %v2737_v30 = vmul.f32 %v5260_v4, %v5258_v26 }
 0xb8a   :  { %2803 = vmatmul.mubr.f32.vlgmr.msra.gmra.mrb[22].mxu0 %v2737_v30  ;;  %2874 = vmatmul.mubr.f32.vlgmr.msra.gmra.mrb[22].mxu1 %v2737_v30 }
 0xb8b   :  { %4671 = vmatpush1.bf16.msra.mxu0 %v6128_v20  ;;  %4703 = vmatpush1.bf16.msra.mxu1 %v6131_v44 }
 0xb8c   :  { %4673 = vmatprep.subr.bf16.mxu0 %v6136_v48  ;;  %4705 = vmatprep.subr.bf16.mxu1 %v6138_v9 }
 0xb8d   :  { %2972 = vmatprep.mubr.f32.mxu0 %v5441_v0  ;;  %3043 = vmatprep.mubr.f32.mxu1 %v5441_v0 }
 0xb8f   :  { %4675 = vmatpush1.bf16.msra.mxu0 %v6140_v59  ;;  %4707 = vmatpush1.bf16.msra.mxu1 %v6143_v51 }
 0xb90   :  { %4677 = vmatprep.subr.bf16.mxu0 %v6148_v29  ;;  %4709 = vmatprep.subr.bf16.mxu1 %v6150_v42 }
 0xb93   :  { %4679 = vmatpush1.bf16.msra.mxu0 %v6152_v47  ;;  %4711 = vmatpush1.bf16.msra.mxu1 %v6155_v58 }
 0xb94   :  { %4681 = vmatprep.subr.bf16.mxu0 %v6160_v8  ;;  %4713 = vmatprep.subr.bf16.mxu1 %v6162_v24 }
 0xb97   :  { %4683 = vmatpush1.bf16.msra.mxu0 %v6164_v28  ;;  %4715 = vmatpush1.bf16.msra.mxu1 %v6167_v46 }
 0xb98   :  { %4685 = vmatprep.subr.bf16.mxu0 %v6171_v1  ;;  %4717 = vmatprep.subr.bf16.mxu1 %v6173_v31 }
 0xb9b   :  { %4687 = vmatpush1.bf16.msra.mxu0 %v6176_v6  ;;  %4719 = vmatpush1.bf16.msra.mxu1 %v6180_v17 }
 0xb9c   :  { %4689 = vmatprep.subr.bf16.mxu0 %v6182_v37  ;;  %4721 = vmatprep.subr.bf16.mxu1 %v6184_v53 }
 0xb9f   :  { %4691 = vmatpush1.bf16.msra.mxu0 %v6187_v22  ;;  %4723 = vmatpush1.bf16.msra.mxu1 %v6191_v38 }
 0xba0   :  { %4693 = vmatprep.subr.bf16.mxu0 %v6193_v50  ;;  %4725 = vmatprep.subr.bf16.mxu1 %v6196_v5 }
 0xba3   :  { %4695 = vmatpush1.bf16.msra.mxu0 %v6199_v19  ;;  %4727 = vmatpush1.bf16.msra.mxu1 %v6203_v33 }
 0xba4   :  { %4697 = vmatprep.subr.bf16.mxu0 %v6208_v56  ;;  %4729 = vmatprep.subr.bf16.mxu1 %v6210_v55 }
 0xba7   :  { %4699 = vmatpush1.bf16.msra.mxu0 %v6212_v63  ;;  %4731 = vmatpush1.bf16.msra.mxu1 %v6215_v21 }
 0xba8   :  { %4733 = vmatprep.subr.bf16.mxu0 %v6124_v27  ;;  %4765 = vmatprep.subr.bf16.mxu1 %v6126_v36 }
 0xc5d   :  { %v2804_v45 = vpop.f32.mrb[22].mxu0  ;;  %v2875_v32 = vpop.f32.mrb[22].mxu1 }
 0xc5e   :  { %v4986_v13 = vadd.f32 %v2804_v45, %v6277_v7  ;;  %v2806_v25 = vpop.f32.mrb[23].mxu0  ;;  %v2877_v34 = vpop.f32.mrb[23].mxu1  ;;  %v5002_v12 = vadd.f32 %v2875_v32, %v6292_v14 }
 0xc5f   :  { %v4987_v35 = vadd.f32 %v2806_v25, %v6281_v3  ;;  %v5003_v2 = vadd.f32 %v2877_v34, %v6287_v15 }
 0xc60   :  { %v3760_v54 = vmul.f32 -1.442695, %v4986_v13 }
 0xc61   :  { %v3761_v61 = vmul.f32 -1.442695, %v4987_v35  ;;  %v3762_v11 = vmul.f32 -1.442695, %v5003_v2 }
 0xc62   :  { %5261 = vpow2.f32 %v3760_v54 }
 0xc63   :  { %5263 = vpow2.f32 %v3761_v61 }
 0xc64   :  { %5265 = vpow2.f32 %v3762_v11 }
 0xc65   :  { %5267 = vtanh.f32 %v5002_v12 }
 0xc6c   :  { %v5262_v39 = vpop.eup %5261 }
 0xc6d   :  { %v5264_v43 = vpop.eup %5263  ;;  %v2887_v16 = vadd.f32 1.0, %v5262_v39 }
 0xc6e   :  { %v2893_v52 = vadd.f32 1.0, %v5264_v43  ;;  %v5266_v18 = vpop.eup %5265 }
 0xc6f   :  { %5269 = vrcp.f32 %v2887_v16  ;;  %v5268_v60 = vpop.eup %5267  ;;  %v2900_v10 = vadd.f32 1.0, %v5266_v18 }
 0xc70   :  { %5271 = vrcp.f32 %v2893_v52 }
 0xc71   :  { %5273 = vrcp.f32 %v2900_v10 }
 0xc79   :  { %v5270_v23 = vpop.eup %5269 }
 0xc7a   :  { %v5272_v49 = vpop.eup %5271  ;;  %v2904_v62 = vmul.f32 %v5270_v23, %v5268_v60 }
 0xc7b   :  { %v2903_v41 = vmul.f32 %v5272_v49, %v6382_v40  ;;  %v5274_v26 = vpop.eup %5273 }
 0xc7d   :  { %v6424_v57 = vadd.f32 %v2904_v62, %v2903_v41 }
 0xc7f   :  { %5275 = vtanh.f32 %v6424_v57 }
 0xc89   :  { %v5276_v4 = vpop.eup %5275 }
 0xc8a   :  { %v2907_v30 = vmul.f32 %v5276_v4, %v5274_v26 }
 0xc8c   :  { %2973 = vmatmul.mubr.f32.vlgmr.msra.gmra.mrb[24].mxu0 %v2907_v30  ;;  %3044 = vmatmul.mubr.f32.vlgmr.msra.gmra.mrb[24].mxu1 %v2907_v30 }
 0xc8d   :  { %4735 = vmatpush1.bf16.msra.mxu0 %v6128_v20  ;;  %4767 = vmatpush1.bf16.msra.mxu1 %v6131_v44 }
 0xc8e   :  { %4737 = vmatprep.subr.bf16.mxu0 %v6136_v48  ;;  %4769 = vmatprep.subr.bf16.mxu1 %v6138_v9 }
 0xc8f   :  { %3142 = vmatprep.mubr.f32.mxu0 %v5441_v0  ;;  %3213 = vmatprep.mubr.f32.mxu1 %v5441_v0 }
 0xc91   :  { %4739 = vmatpush1.bf16.msra.mxu0 %v6140_v59  ;;  %4771 = vmatpush1.bf16.msra.mxu1 %v6143_v51 }
 0xc92   :  { %4741 = vmatprep.subr.bf16.mxu0 %v6148_v29  ;;  %4773 = vmatprep.subr.bf16.mxu1 %v6150_v42 }
 0xc95   :  { %4743 = vmatpush1.bf16.msra.mxu0 %v6152_v47  ;;  %4775 = vmatpush1.bf16.msra.mxu1 %v6155_v58 }
 0xc96   :  { %4745 = vmatprep.subr.bf16.mxu0 %v6160_v8  ;;  %4777 = vmatprep.subr.bf16.mxu1 %v6162_v24 }
 0xc99   :  { %4747 = vmatpush1.bf16.msra.mxu0 %v6164_v28  ;;  %4779 = vmatpush1.bf16.msra.mxu1 %v6167_v46 }
 0xc9a   :  { %4749 = vmatprep.subr.bf16.mxu0 %v6171_v1  ;;  %4781 = vmatprep.subr.bf16.mxu1 %v6173_v31 }
 0xc9d   :  { %4751 = vmatpush1.bf16.msra.mxu0 %v6176_v6  ;;  %4783 = vmatpush1.bf16.msra.mxu1 %v6180_v17 }
 0xc9e   :  { %4753 = vmatprep.subr.bf16.mxu0 %v6182_v37  ;;  %4785 = vmatprep.subr.bf16.mxu1 %v6184_v53 }
 0xca1   :  { %4755 = vmatpush1.bf16.msra.mxu0 %v6187_v22  ;;  %4787 = vmatpush1.bf16.msra.mxu1 %v6191_v38 }
 0xca2   :  { %4757 = vmatprep.subr.bf16.mxu0 %v6193_v50  ;;  %4789 = vmatprep.subr.bf16.mxu1 %v6196_v5 }
 0xca5   :  { %4759 = vmatpush1.bf16.msra.mxu0 %v6199_v19  ;;  %4791 = vmatpush1.bf16.msra.mxu1 %v6203_v33 }
 0xca6   :  { %4761 = vmatprep.subr.bf16.mxu0 %v6208_v56  ;;  %4793 = vmatprep.subr.bf16.mxu1 %v6210_v55 }
 0xca9   :  { %4763 = vmatpush1.bf16.msra.mxu0 %v6212_v63  ;;  %4795 = vmatpush1.bf16.msra.mxu1 %v6215_v21 }
 0xcaa   :  { %4797 = vmatprep.subr.bf16.mxu0 %v6124_v27  ;;  %4829 = vmatprep.subr.bf16.mxu1 %v6126_v36 }
 0xd5f   :  { %v2974_v40 = vpop.f32.mrb[24].mxu0  ;;  %v3045_v45 = vpop.f32.mrb[24].mxu1 }
 0xd60   :  { %v4988_v32 = vadd.f32 %v2974_v40, %v6277_v7  ;;  %v2976_v13 = vpop.f32.mrb[25].mxu0  ;;  %v3047_v25 = vpop.f32.mrb[25].mxu1  ;;  %v5004_v11 = vadd.f32 %v3045_v45, %v6292_v14 }
 0xd61   :  { %v4989_v34 = vadd.f32 %v2976_v13, %v6281_v3  ;;  %v5005_v61 = vadd.f32 %v3047_v25, %v6287_v15 }
 0xd62   :  { %v3763_v35 = vmul.f32 -1.442695, %v4988_v32 }
 0xd63   :  { %v3764_v54 = vmul.f32 -1.442695, %v4989_v34  ;;  %v3765_v2 = vmul.f32 -1.442695, %v5005_v61 }
 0xd64   :  { %5277 = vpow2.f32 %v3763_v35 }
 0xd65   :  { %5279 = vpow2.f32 %v3764_v54 }
 0xd66   :  { %5281 = vpow2.f32 %v3765_v2 }
 0xd67   :  { %5283 = vtanh.f32 %v5004_v11 }
 0xd6e   :  { %v5278_v12 = vpop.eup %5277 }
 0xd6f   :  { %v5280_v39 = vpop.eup %5279  ;;  %v3057_v43 = vadd.f32 1.0, %v5278_v12 }
 0xd70   :  { %v3063_v16 = vadd.f32 1.0, %v5280_v39  ;;  %v5282_v52 = vpop.eup %5281 }
 0xd71   :  { %5285 = vrcp.f32 %v3057_v43  ;;  %v5284_v18 = vpop.eup %5283  ;;  %v3070_v62 = vadd.f32 1.0, %v5282_v52 }
 0xd72   :  { %5287 = vrcp.f32 %v3063_v16 }
 0xd73   :  { %5289 = vrcp.f32 %v3070_v62 }
 0xd7b   :  { %v5286_v60 = vpop.eup %5285 }
 0xd7c   :  { %v5288_v23 = vpop.eup %5287  ;;  %v3074_v49 = vmul.f32 %v5286_v60, %v5284_v18 }
 0xd7d   :  { %v3073_v10 = vmul.f32 %v5288_v23, %v6424_v57  ;;  %v5290_v26 = vpop.eup %5289 }
 0xd7f   :  { %v6466_v41 = vadd.f32 %v3074_v49, %v3073_v10 }
 0xd81   :  { %5291 = vtanh.f32 %v6466_v41 }
 0xd8b   :  { %v5292_v4 = vpop.eup %5291 }
 0xd8c   :  { %v3077_v30 = vmul.f32 %v5292_v4, %v5290_v26  ;;  %v3605_v4 = vld [vmem:[%s6626_s9 + $0x18] sm:$0xff] }
 0xd8e   :  { %3143 = vmatmul.mubr.f32.vlgmr.msra.gmra.mrb[26].mxu0 %v3077_v30  ;;  %3214 = vmatmul.mubr.f32.vlgmr.msra.gmra.mrb[26].mxu1 %v3077_v30 }
 0xd8f   :  { %4799 = vmatpush1.bf16.msra.mxu0 %v6128_v20  ;;  %4831 = vmatpush1.bf16.msra.mxu1 %v6131_v44 }
 0xd90   :  { %4801 = vmatprep.subr.bf16.mxu0 %v6136_v48  ;;  %4833 = vmatprep.subr.bf16.mxu1 %v6138_v9 }
 0xd91   :  { %3312 = vmatprep.mubr.f32.mxu0 %v5441_v0  ;;  %3383 = vmatprep.mubr.f32.mxu1 %v5441_v0 }
 0xd93   :  { %4803 = vmatpush1.bf16.msra.mxu0 %v6140_v59  ;;  %4835 = vmatpush1.bf16.msra.mxu1 %v6143_v51 }
 0xd94   :  { %4805 = vmatprep.subr.bf16.mxu0 %v6148_v29  ;;  %4837 = vmatprep.subr.bf16.mxu1 %v6150_v42 }
 0xd97   :  { %4807 = vmatpush1.bf16.msra.mxu0 %v6152_v47  ;;  %4839 = vmatpush1.bf16.msra.mxu1 %v6155_v58 }
 0xd98   :  { %4809 = vmatprep.subr.bf16.mxu0 %v6160_v8  ;;  %4841 = vmatprep.subr.bf16.mxu1 %v6162_v24 }
 0xd9b   :  { %4811 = vmatpush1.bf16.msra.mxu0 %v6164_v28  ;;  %4843 = vmatpush1.bf16.msra.mxu1 %v6167_v46 }
 0xd9c   :  { %4813 = vmatprep.subr.bf16.mxu0 %v6171_v1  ;;  %4845 = vmatprep.subr.bf16.mxu1 %v6173_v31 }
 0xd9f   :  { %4815 = vmatpush1.bf16.msra.mxu0 %v6176_v6  ;;  %4847 = vmatpush1.bf16.msra.mxu1 %v6180_v17 }
 0xda0   :  { %4817 = vmatprep.subr.bf16.mxu0 %v6182_v37  ;;  %4849 = vmatprep.subr.bf16.mxu1 %v6184_v53 }
 0xda3   :  { %4819 = vmatpush1.bf16.msra.mxu0 %v6187_v22  ;;  %4851 = vmatpush1.bf16.msra.mxu1 %v6191_v38 }
 0xda4   :  { %4821 = vmatprep.subr.bf16.mxu0 %v6193_v50  ;;  %4853 = vmatprep.subr.bf16.mxu1 %v6196_v5 }
 0xda7   :  { %4823 = vmatpush1.bf16.msra.mxu0 %v6199_v19  ;;  %4855 = vmatpush1.bf16.msra.mxu1 %v6203_v33 }
 0xda8   :  { %4825 = vmatprep.subr.bf16.mxu0 %v6208_v56  ;;  %4857 = vmatprep.subr.bf16.mxu1 %v6210_v55 }
 0xdab   :  { %4827 = vmatpush1.bf16.msra.mxu0 %v6212_v63  ;;  %4859 = vmatpush1.bf16.msra.mxu1 %v6215_v21 }
 0xdac   :  { %4861 = vmatprep.subr.bf16.mxu0 %v6124_v27  ;;  %4893 = vmatprep.subr.bf16.mxu1 %v6126_v36 }
 0xe61   :  { %v3144_v57 = vpop.f32.mrb[26].mxu0  ;;  %v3215_v40 = vpop.f32.mrb[26].mxu1 }
 0xe62   :  { %v4990_v45 = vadd.f32 %v3144_v57, %v6277_v7  ;;  %v3146_v32 = vpop.f32.mrb[27].mxu0  ;;  %v3217_v13 = vpop.f32.mrb[27].mxu1  ;;  %v5006_v2 = vadd.f32 %v3215_v40, %v6292_v14  ;;  %v3606_v57 = vld [vmem:[%s6626_s9 + $0x20] sm:$0xff]  ;;  %v3607_v40 = vld [vmem:[%s6626_s9 + $0x28] sm:$0xff] }
 0xe63   :  { %v4991_v25 = vadd.f32 %v3146_v32, %v6281_v3  ;;  %v5007_v54 = vadd.f32 %v3217_v13, %v6287_v15  ;;  %v3608_v32 = vld [vmem:[%s6626_s9 + $0x30] sm:$0xff]  ;;  %v3609_v13 = vld [vmem:[%s6626_s9 + $0x38] sm:$0xff] }
 0xe64   :  { %v3766_v34 = vmul.f32 -1.442695, %v4990_v45  ;;  %v4931_v45 = vpack.c.bf16 %v3607_v40, %v3606_v57 }
 0xe65   :  { %v3767_v35 = vmul.f32 -1.442695, %v4991_v25  ;;  %v3768_v61 = vmul.f32 -1.442695, %v5007_v54  ;;  %v4934_v25 = vpack.c.bf16 %v3609_v13, %v3608_v32 }
 0xe66   :  { %5293 = vpow2.f32 %v3766_v34  ;;  %v3610_v34 = vld [vmem:[%s6626_s9 + $0x40] sm:$0xff] }
 0xe67   :  { %5295 = vpow2.f32 %v3767_v35  ;;  %v3611_v35 = vld [vmem:[%s6626_s9 + $0x48] sm:$0xff] }
 0xe68   :  { %5297 = vpow2.f32 %v3768_v61  ;;  %v4937_v54 = vpack.c.bf16 %v3611_v35, %v3610_v34  ;;  %v3612_v61 = vld [vmem:[%s6626_s9 + $0x50] sm:$0xff] }
 0xe69   :  { %5299 = vtanh.f32 %v5006_v2  ;;  %v3613_v2 = vld [vmem:[%s6626_s9 + $0x58] sm:$0xff] }
 0xe70   :  { %v5294_v27 = vpop.eup %5293 }
 0xe71   :  { %v5296_v11 = vpop.eup %5295  ;;  %v3227_v36 = vadd.f32 1.0, %v5294_v27  ;;  %v3614_v27 = vld [vmem:[%s6626_s9 + $0x60] sm:$0xff] }
 0xe72   :  { %v3233_v12 = vadd.f32 1.0, %v5296_v11  ;;  %v5298_v39 = vpop.eup %5297  ;;  %v4940_v11 = vpack.c.bf16 %v3613_v2, %v3612_v61 }
 0xe73   :  { %5301 = vrcp.f32 %v3227_v36  ;;  %v5300_v43 = vpop.eup %5299  ;;  %v3240_v60 = vadd.f32 1.0, %v5298_v39  ;;  %v3615_v36 = vld [vmem:[%s6626_s9 + $0x68] sm:$0xff]  ;;  %v3616_v39 = vld [vmem:[%s6626_s9 + $0x70] sm:$0xff] }
 0xe74   :  { %5303 = vrcp.f32 %v3233_v12  ;;  %v4943_v12 = vpack.c.bf16 %v3615_v36, %v3614_v27 }
 0xe75   :  { %5305 = vrcp.f32 %v3240_v60 }
 0xe7d   :  { %v5302_v16 = vpop.eup %5301 }
 0xe7e   :  { %v5304_v52 = vpop.eup %5303  ;;  %v3244_v18 = vmul.f32 %v5302_v16, %v5300_v43  ;;  %v3617_v43 = vld [vmem:[%s6626_s9 + $0x78] sm:$0xff] }
 0xe7f   :  { %v3243_v23 = vmul.f32 %v5304_v52, %v6466_v41  ;;  %v5306_v62 = vpop.eup %5305  ;;  %v3604_v41 = vld [vmem:[%s6626_s9 + $0x10] sm:$0xff]  ;;  %v4946_v16 = vpack.c.bf16 %v3617_v43, %v3616_v39 }
 0xe80   :  { %v4928_v30 = vpack.c.bf16 %v3605_v4, %v3604_v41 }
 0xe81   :  { %v6508_v49 = vadd.f32 %v3244_v18, %v3243_v23 }
 0xe83   :  { %5307 = vtanh.f32 %v6508_v49 }
 0xe8d   :  { %v5308_v10 = vpop.eup %5307 }
 0xe8e   :  { %v3247_v26 = vmul.f32 %v5308_v10, %v5306_v62 }
 0xe90   :  { %3313 = vmatmul.mubr.f32.vlgmr.msra.gmra.mrb[28].mxu0 %v3247_v26  ;;  %3384 = vmatmul.mubr.f32.vlgmr.msra.gmra.mrb[28].mxu1 %v3247_v26 }
 0xe91   :  { %4863 = vmatpush1.bf16.msra.mxu0 %v6128_v20  ;;  %4895 = vmatpush1.bf16.msra.mxu1 %v6131_v44 }
 0xe92   :  { %4865 = vmatprep.subr.bf16.mxu0 %v6136_v48  ;;  %4897 = vmatprep.subr.bf16.mxu1 %v6138_v9 }
 0xe93   :  { %3482 = vmatprep.mubr.f32.mxu0 %v5441_v0  ;;  %3553 = vmatprep.mubr.f32.mxu1 %v5441_v0 }
 0xe95   :  { %4867 = vmatpush1.bf16.msra.mxu0 %v6140_v59  ;;  %4899 = vmatpush1.bf16.msra.mxu1 %v6143_v51 }
 0xe96   :  { %4869 = vmatprep.subr.bf16.mxu0 %v6148_v29  ;;  %4901 = vmatprep.subr.bf16.mxu1 %v6150_v42 }
 0xe99   :  { %4871 = vmatpush1.bf16.msra.mxu0 %v6152_v47  ;;  %4903 = vmatpush1.bf16.msra.mxu1 %v6155_v58 }
 0xe9a   :  { %4873 = vmatprep.subr.bf16.mxu0 %v6160_v8  ;;  %4905 = vmatprep.subr.bf16.mxu1 %v6162_v24 }
 0xe9d   :  { %4875 = vmatpush1.bf16.msra.mxu0 %v6164_v28  ;;  %4907 = vmatpush1.bf16.msra.mxu1 %v6167_v46 }
 0xe9e   :  { %4877 = vmatprep.subr.bf16.mxu0 %v6171_v1  ;;  %4909 = vmatprep.subr.bf16.mxu1 %v6173_v31 }
 0xea1   :  { %4879 = vmatpush1.bf16.msra.mxu0 %v6176_v6  ;;  %4911 = vmatpush1.bf16.msra.mxu1 %v6180_v17 }
 0xea2   :  { %4881 = vmatprep.subr.bf16.mxu0 %v6182_v37  ;;  %4913 = vmatprep.subr.bf16.mxu1 %v6184_v53 }
 0xea5   :  { %4883 = vmatpush1.bf16.msra.mxu0 %v6187_v22  ;;  %4915 = vmatpush1.bf16.msra.mxu1 %v6191_v38 }
 0xea6   :  { %4885 = vmatprep.subr.bf16.mxu0 %v6193_v50  ;;  %4917 = vmatprep.subr.bf16.mxu1 %v6196_v5 }
 0xea9   :  { %4887 = vmatpush1.bf16.msra.mxu0 %v6199_v19  ;;  %4919 = vmatpush1.bf16.msra.mxu1 %v6203_v33 }
 0xeaa   :  { %4889 = vmatprep.subr.bf16.mxu0 %v6208_v56  ;;  %4921 = vmatprep.subr.bf16.mxu1 %v6210_v55  ;;  %v3602_v56 = vld [vmem:[%s6626_s9] sm:$0xff]  ;;  %v3603_v55 = vld [vmem:[%s6626_s9 + $0x8] sm:$0xff] }
 0xead   :  { %4891 = vmatpush1.bf16.msra.mxu0 %v6212_v63  ;;  %4923 = vmatpush1.bf16.msra.mxu1 %v6215_v21  ;;  %v4925_v63 = vpack.c.bf16 %v3603_v55, %v3602_v56  ;;  %v5442_v21 = vmov 0.0|0.0  }
 0xeae   :  { %4924 = vmatprep.subr.bf16.mxu0 %v5442_v21 }
 0xf63   :  { %v3314_v20 = vpop.f32.mrb[28].mxu0  ;;  %v3385_v44 = vpop.f32.mrb[28].mxu1 }
 0xf64   :  { %v4992_v48 = vadd.f32 %v3314_v20, %v6277_v7  ;;  %v3316_v9 = vpop.f32.mrb[29].mxu0  ;;  %v3387_v59 = vpop.f32.mrb[29].mxu1  ;;  %v5008_v8 = vadd.f32 %v3385_v44, %v6292_v14 }
 0xf65   :  { %v4993_v51 = vadd.f32 %v3316_v9, %v6281_v3  ;;  %v5009_v47 = vadd.f32 %v3387_v59, %v6287_v15 }
 0xf66   :  { %v3769_v29 = vmul.f32 -1.442695, %v4992_v48 }
 0xf67   :  { %v3770_v42 = vmul.f32 -1.442695, %v4993_v51  ;;  %v3771_v58 = vmul.f32 -1.442695, %v5009_v47 }
 0xf68   :  { %5309 = vpow2.f32 %v3769_v29 }
 0xf69   :  { %5311 = vpow2.f32 %v3770_v42 }
 0xf6a   :  { %5313 = vpow2.f32 %v3771_v58 }
 0xf6b   :  { %5315 = vtanh.f32 %v5008_v8 }
 0xf72   :  { %v5310_v24 = vpop.eup %5309 }
 0xf73   :  { %v5312_v28 = vpop.eup %5311  ;;  %v3397_v46 = vadd.f32 1.0, %v5310_v24 }
 0xf74   :  { %v3403_v1 = vadd.f32 1.0, %v5312_v28  ;;  %v5314_v31 = vpop.eup %5313 }
 0xf75   :  { %5317 = vrcp.f32 %v3397_v46  ;;  %v5316_v6 = vpop.eup %5315  ;;  %v3410_v22 = vadd.f32 1.0, %v5314_v31  ;;  %v3775_v46 = vld [vmem:[%s6627_s10] ss:$0 sm:$0xff] }
 0xf76   :  { %5319 = vrcp.f32 %v3403_v1 }
 0xf77   :  { %5321 = vrcp.f32 %v3410_v22 }
 0xf7f   :  { %v5318_v17 = vpop.eup %5317 }
 0xf80   :  { %v5320_v37 = vpop.eup %5319  ;;  %v3414_v53 = vmul.f32 %v5318_v17, %v5316_v6 }
 0xf81   :  { %v3413_v38 = vmul.f32 %v5320_v37, %v6508_v49  ;;  %v5322_v5 = vpop.eup %5321 }
 0xf83   :  { %v6548_v50 = vadd.f32 %v3414_v53, %v3413_v38 }
 0xf85   :  { %5323 = vtanh.f32 %v6548_v50 }
 0xf8f   :  { %v5324_v19 = vpop.eup %5323 }
 0xf90   :  { %v3417_v33 = vmul.f32 %v5324_v19, %v5322_v5 }
 0xf92   :  { %3483 = vmatmul.mubr.f32.vlgmr.msra.gmra.mrb[30].mxu0 %v3417_v33  ;;  %3554 = vmatmul.mubr.f32.vlgmr.msra.gmra.mrb[30].mxu1 %v3417_v33 }
 0xf93   :  { %4926 = vmatpush3.bf16.msra.mxu0 %v4925_v63  ;;  %3825 = vmatprep.mubr.msk.f32.mxu0 %vm5443_vm1, %v5441_v0 }
 0xf94   :  { %4927 = vmatprep.subr.bf16.mxu0 %v5442_v21 }
 0xf97   :  { %4929 = vmatpush3.bf16.msra.mxu0 %v4928_v30 }
 0xf98   :  { %4930 = vmatprep.subr.bf16.mxu0 %v5442_v21 }
 0xf9b   :  { %4932 = vmatpush3.bf16.msra.mxu0 %v4931_v45 }
 0xf9c   :  { %4933 = vmatprep.subr.bf16.mxu0 %v5442_v21 }
 0xf9f   :  { %4935 = vmatpush3.bf16.msra.mxu0 %v4934_v25 }
 0xfa0   :  { %4936 = vmatprep.subr.bf16.mxu0 %v5442_v21 }
 0xfa3   :  { %4938 = vmatpush3.bf16.msra.mxu0 %v4937_v54 }
 0xfa4   :  { %4939 = vmatprep.subr.bf16.mxu0 %v5442_v21 }
 0xfa7   :  { %4941 = vmatpush3.bf16.msra.mxu0 %v4940_v11 }
 0xfa8   :  { %4942 = vmatprep.subr.bf16.mxu0 %v5442_v21 }
 0xfab   :  { %4944 = vmatpush3.bf16.msra.mxu0 %v4943_v12 }
 0xfac   :  { %4945 = vmatprep.subr.bf16.mxu0 %v5442_v21 }
 0xfaf   :  { %4947 = vmatpush3.bf16.msra.mxu0 %v4946_v16 }
0x1065   :  { %v3484_v52 = vpop.f32.mrb[30].mxu0  ;;  %v3555_v18 = vpop.f32.mrb[30].mxu1 }
0x1066   :  { %v4994_v60 = vadd.f32 %v3484_v52, %v6277_v7  ;;  %v3486_v0 = vpop.f32.mrb[31].mxu0  ;;  %v3557_v23 = vpop.f32.mrb[31].mxu1  ;;  %v5010_v44 = vadd.f32 %v3555_v18, %v6292_v14 }
0x1067   :  { %v4995_v49 = vadd.f32 %v3486_v0, %v6281_v3  ;;  %v5011_v26 = vadd.f32 %v3557_v23, %v6287_v15 }
0x1068   :  { %v3772_v62 = vmul.f32 -1.442695, %v4994_v60 }
0x1069   :  { %v3773_v10 = vmul.f32 -1.442695, %v4995_v49  ;;  %v3774_v20 = vmul.f32 -1.442695, %v5011_v26 }
0x106a   :  { %5325 = vpow2.f32 %v3772_v62 }
0x106b   :  { %5327 = vpow2.f32 %v3773_v10 }
0x106c   :  { %5329 = vpow2.f32 %v3774_v20 }
0x106d   :  { %5331 = vtanh.f32 %v5010_v44 }
0x1074   :  { %v5326_v48 = vpop.eup %5325 }
0x1075   :  { %v5328_v9 = vpop.eup %5327  ;;  %v3567_v59 = vadd.f32 1.0, %v5326_v48 }
0x1076   :  { %v3573_v51 = vadd.f32 1.0, %v5328_v9  ;;  %v5330_v7 = vpop.eup %5329 }
0x1077   :  { %5333 = vrcp.f32 %v3567_v59  ;;  %v5332_v29 = vpop.eup %5331  ;;  %v3580_v58 = vadd.f32 1.0, %v5330_v7 }
0x1078   :  { %5335 = vrcp.f32 %v3573_v51 }
0x1079   :  { %5337 = vrcp.f32 %v3580_v58 }
0x1081   :  { %v5334_v3 = vpop.eup %5333 }
0x1082   :  { %v5336_v42 = vpop.eup %5335  ;;  %v3584_v47 = vmul.f32 %v5334_v3, %v5332_v29 }
0x1083   :  { %v3583_v8 = vmul.f32 %v5336_v42, %v6548_v50  ;;  %v5338_v14 = vpop.eup %5337 }
0x1085   :  { %v3585_v15 = vadd.f32 %v3584_v47, %v3583_v8 }
0x1087   :  { %3600 = vst [vmem:[%s6629_s12 + $0x8] sm:$0xff] %v3585_v15  ;;  %5339 = vtanh.f32 %v3585_v15 }
0x1091   :  { %v5340_v24 = vpop.eup %5339 }
0x1092   :  { %v3587_v28 = vmul.f32 %v5340_v24, %v5338_v14 }
0x1094   :  { %3596 = vst [vmem:[%s6628_s11 + $0x8] sm:$0xff] %v3587_v28  ;;  %3826 = vmatmul.mubr.f32.vlgmr.msra.gmra.mrb[32].mxu0 %v3587_v28 }
0x1167   :  { %v3691_v1 = vpop.f32.mrb[32].mxu0 }
0x1168   :  { %v3692_v31 = vadd.f32 %v3775_v46, %v3691_v1  ;;  %v3827_v6 = vpop.f32.mrb[33].mxu0 }
0x116a   :  { %3695 = vst [vmem:[%s6630_s13] sm:$0xff] %v3692_v31 }
0x116b   :  { %3708 = vsyncpa [#allocation6], 1 }
0x116c   :  { %3709 = vsyncpa [#allocation8], 1 }
0x116d   :  { %3710 = vsyncpa [#allocation11], 1 }

</bundles_post_ra>
